<compile_context>
chip_gen: v7x
topology: tpu7x:2x2x1
jax: 0.10.0
libtpu: 0.0.40
codegen_flags: <defaults>
</compile_context>

<pallas_src>
import jax
import jax.numpy as jnp
import numpy as np
from jax.experimental import pallas as pl
from jax.experimental.pallas import tpu as pltpu

EPS = 1e-5   # PyTorch InstanceNorm2d default eps
K = 3        # kernel_size


def residual_block_kernel(x_ref, w1_ref, g1_ref, b1_ref,
                          w2_ref, g2_ref, b2_ref, o_ref):
    _, H, W, C = x_ref.shape
    HW = H * W
    inv_n = 1.0 / float(HW)

    x = x_ref[0]                                   # (H, W, C)

    def reflect_pad(a):
        # ReflectionPad2d(1): (H, W, C) -> (H+2, W+2, C)
        a = jnp.concatenate([a[1:2], a, a[H - 2:H - 1]], axis=0)
        a = jnp.concatenate([a[:, 1:2], a, a[:, W - 2:W - 1]], axis=1)
        return a

    def conv3x3_in(a, w_ref, g_ref, b_ref):
        """reflect-pad 3x3 conv + InstanceNorm(affine); a: (H, W, C) -> (H*W, C).
        Conv bias omitted: it cancels exactly under the IN mean subtraction."""
        ap = reflect_pad(a)
        acc = jnp.zeros((HW, C), jnp.float32)
        for di in range(K):                         # 9 shifted-window MXU matmuls
            for dj in range(K):
                win = ap[di:di + H, dj:dj + W, :].reshape(HW, C)
                acc = acc + jnp.dot(win, w_ref[di * K + dj],
                                    preferred_element_type=jnp.float32)
        # single-pass per-channel (per-lane) spatial statistics
        s = jnp.sum(acc, axis=0, keepdims=True)            # (1, C)
        ss = jnp.sum(acc * acc, axis=0, keepdims=True)      # (1, C)
        mean = s * inv_n
        var = ss * inv_n - mean * mean
        scale = g_ref[...] * jax.lax.rsqrt(var + EPS)        # (1, C)
        shift = b_ref[...] - mean * scale                    # (1, C)
        return acc * scale + shift

    y = jnp.maximum(conv3x3_in(x, w1_ref, g1_ref, b1_ref), 0.0)   # (HW, C)
    z = conv3x3_in(y.reshape(H, W, C), w2_ref, g2_ref, b2_ref)    # (HW, C)
    o_ref[0] = (z + x.reshape(HW, C)).reshape(H, W, C)


def residual_block(x, params):
    """x: (N, C, H, W) float32.  params: (w1, b1, g1, be1, w2, b2, g2, be2)
    with conv weights in PyTorch OIHW layout."""
    w1, b1, g1, be1, w2, b2, g2, be2 = params
    del b1, b2        # conv bias cancels under InstanceNorm mean subtraction
    N, C, H, W = x.shape

    # Layout plumbing outside the kernel: channels-last activations,
    # weights as (K*K, C_in, C_out) matmul slices.
    x_nhwc = jnp.transpose(x, (0, 2, 3, 1))
    w1m = jnp.transpose(w1, (2, 3, 1, 0)).reshape(K * K, C, C)
    w2m = jnp.transpose(w2, (2, 3, 1, 0)).reshape(K * K, C, C)

    act_spec = pl.BlockSpec((1, H, W, C), lambda n: (n, 0, 0, 0))
    w_spec = pl.BlockSpec((K * K, C, C), lambda n: (0, 0, 0))
    vec_spec = pl.BlockSpec((1, C), lambda n: (0, 0))

    out_nhwc = pl.pallas_call(
        residual_block_kernel,
        out_shape=jax.ShapeDtypeStruct((N, H, W, C), jnp.float32),
        grid=(N,),
        in_specs=[act_spec, w_spec, vec_spec, vec_spec,
                  w_spec, vec_spec, vec_spec],
        out_specs=act_spec,
        compiler_params=pltpu.CompilerParams(
            dimension_semantics=("parallel",),
            vmem_limit_bytes=48 * 1024 * 1024),
    )(x_nhwc, w1m, g1.reshape(1, C), be1.reshape(1, C),
      w2m, g2.reshape(1, C), be2.reshape(1, C))

    return jnp.transpose(out_nhwc, (0, 3, 1, 2))


def reference_block(x, params):
    """Pure-JAX reference mirroring the PyTorch forward (for verification)."""
    w1, b1, g1, be1, w2, b2, g2, be2 = params

    def conv(xx, w, b):
        xp = jnp.pad(xx, ((0, 0), (0, 0), (1, 1), (1, 1)), mode="reflect")
        y = jax.lax.conv_general_dilated(
            xp, w, (1, 1), "VALID", dimension_numbers=("NCHW", "OIHW", "NCHW"))
        return y + b[None, :, None, None]

    def inorm(xx, g, be):
        m = xx.mean(axis=(2, 3), keepdims=True)
        v = ((xx - m) ** 2).mean(axis=(2, 3), keepdims=True)
        return (g[None, :, None, None] * (xx - m) / jnp.sqrt(v + EPS)
                + be[None, :, None, None])

    out = jax.nn.relu(inorm(conv(x, w1, b1), g1, be1))
    out = inorm(conv(out, w2, b2), g2, be2)
    return out + x


if __name__ == "__main__":
    N, C, H, W = 2, 4, 16, 16
    key = jax.random.PRNGKey(0)
    kx, k1, k2, k3, k4, k5, k6, k7, k8 = jax.random.split(key, 9)

    x = jax.random.normal(kx, (N, C, H, W), jnp.float32)

    # Conv weights in PyTorch OIHW layout; norm affine params per channel.
    w1 = jax.random.normal(k1, (C, C, K, K), jnp.float32) * 0.2
    b1 = jax.random.normal(k2, (C,), jnp.float32) * 0.1
    g1 = 1.0 + 0.1 * jax.random.normal(k3, (C,), jnp.float32)
    be1 = 0.1 * jax.random.normal(k4, (C,), jnp.float32)
    w2 = jax.random.normal(k5, (C, C, K, K), jnp.float32) * 0.2
    b2 = jax.random.normal(k6, (C,), jnp.float32) * 0.1
    g2 = 1.0 + 0.1 * jax.random.normal(k7, (C,), jnp.float32)
    be2 = 0.1 * jax.random.normal(k8, (C,), jnp.float32)

    params = (w1, b1, g1, be1, w2, b2, g2, be2)

    out = jax.block_until_ready(residual_block(x, params))
    ref = jax.block_until_ready(reference_block(x, params))
    np.testing.assert_allclose(np.asarray(out), np.asarray(ref),
                               rtol=5e-4, atol=5e-4)

    print("KERNEL_OK")
</pallas_src>

<mosaic_0001>
module attributes {stable_mosaic.version = 11 : i64} {
  func.func @residual_block_kernel(%arg0: i32, %arg1: memref<1x16x16x4xf32, #tpu.memory_space<vmem>>, %arg2: memref<9x4x4xf32, #tpu.memory_space<vmem>>, %arg3: memref<1x4xf32, #tpu.memory_space<vmem>>, %arg4: memref<1x4xf32, #tpu.memory_space<vmem>>, %arg5: memref<9x4x4xf32, #tpu.memory_space<vmem>>, %arg6: memref<1x4xf32, #tpu.memory_space<vmem>>, %arg7: memref<1x4xf32, #tpu.memory_space<vmem>>, %arg8: memref<1x16x16x4xf32, #tpu.memory_space<vmem>>) attributes {dimension_semantics = [#tpu.dimension_semantics<parallel>], iteration_bounds = array<i64: 2>, scalar_prefetch = 0 : i64, scratch_operands = 0 : i64, tpu.core_type = #tpu.core_type<tc>, window_params = [{transform_indices = @transform_0, window_bounds = array<i64: 1, 16, 16, 4>}, {pipeline_mode = #tpu.pipeline_mode<synchronous>, transform_indices = @transform_1, window_bounds = array<i64: 9, 4, 4>}, {pipeline_mode = #tpu.pipeline_mode<synchronous>, transform_indices = @transform_2, window_bounds = array<i64: 1, 4>}, {pipeline_mode = #tpu.pipeline_mode<synchronous>, transform_indices = @transform_3, window_bounds = array<i64: 1, 4>}, {pipeline_mode = #tpu.pipeline_mode<synchronous>, transform_indices = @transform_4, window_bounds = array<i64: 9, 4, 4>}, {pipeline_mode = #tpu.pipeline_mode<synchronous>, transform_indices = @transform_5, window_bounds = array<i64: 1, 4>}, {pipeline_mode = #tpu.pipeline_mode<synchronous>, transform_indices = @transform_6, window_bounds = array<i64: 1, 4>}, {transform_indices = @transform_7, window_bounds = array<i64: 1, 16, 16, 4>}]} {
    %c0 = arith.constant 0 : index
    %c0_0 = arith.constant 0 : index
    %c0_1 = arith.constant 0 : index
    %c0_2 = arith.constant 0 : index
    %0 = vector.load %arg1[%c0, %c0_0, %c0_1, %c0_2] : memref<1x16x16x4xf32, #tpu.memory_space<vmem>>, vector<1x16x16x4xf32>
    %1 = vector.shape_cast %0 : vector<1x16x16x4xf32> to vector<16x16x4xf32>
    %2 = vector.extract_strided_slice %1 {offsets = [1, 0, 0], sizes = [1, 16, 4], strides = [1, 1, 1]} : vector<16x16x4xf32> to vector<1x16x4xf32>
    %3 = vector.extract_strided_slice %1 {offsets = [14, 0, 0], sizes = [1, 16, 4], strides = [1, 1, 1]} : vector<16x16x4xf32> to vector<1x16x4xf32>
    %4 = tpu.concatenate %2, %1, %3 in 0 : vector<1x16x4xf32>, vector<16x16x4xf32>, vector<1x16x4xf32> -> vector<18x16x4xf32>
    %5 = vector.extract_strided_slice %4 {offsets = [0, 1, 0], sizes = [18, 1, 4], strides = [1, 1, 1]} : vector<18x16x4xf32> to vector<18x1x4xf32>
    %6 = vector.extract_strided_slice %4 {offsets = [0, 14, 0], sizes = [18, 1, 4], strides = [1, 1, 1]} : vector<18x16x4xf32> to vector<18x1x4xf32>
    %7 = tpu.concatenate %5, %4, %6 in 1 : vector<18x1x4xf32>, vector<18x16x4xf32>, vector<18x1x4xf32> -> vector<18x18x4xf32>
    %cst = arith.constant 0.000000e+00 : f32
    %8 = vector.broadcast %cst : f32 to vector<256x4xf32>
    %9 = vector.extract_strided_slice %7 {offsets = [0, 0, 0], sizes = [16, 16, 4], strides = [1, 1, 1]} : vector<18x18x4xf32> to vector<16x16x4xf32>
    %10 = vector.shape_cast %9 : vector<16x16x4xf32> to vector<256x4xf32>
    %c0_3 = arith.constant 0 : index
    %c0_4 = arith.constant 0 : index
    %c0_5 = arith.constant 0 : index
    %11 = vector.load %arg2[%c0_3, %c0_4, %c0_5] : memref<9x4x4xf32, #tpu.memory_space<vmem>>, vector<1x4x4xf32>
    %12 = vector.shape_cast %11 : vector<1x4x4xf32> to vector<4x4xf32>
    %cst_6 = arith.constant dense<0.000000e+00> : vector<256x4xf32>
    %13 = tpu.matmul %10, %12, %cst_6 {dimension_numbers = #tpu.dot_dimension_numbers<[1], [0], [0], [1], [0, 0, 1, 1], [], []>} : vector<256x4xf32>, vector<4x4xf32>, vector<256x4xf32> -> vector<256x4xf32>
    %14 = arith.addf %8, %13 : vector<256x4xf32>
    %15 = vector.extract_strided_slice %7 {offsets = [0, 1, 0], sizes = [16, 16, 4], strides = [1, 1, 1]} : vector<18x18x4xf32> to vector<16x16x4xf32>
    %16 = vector.shape_cast %15 : vector<16x16x4xf32> to vector<256x4xf32>
    %c1 = arith.constant 1 : index
    %c0_7 = arith.constant 0 : index
    %c0_8 = arith.constant 0 : index
    %17 = vector.load %arg2[%c1, %c0_7, %c0_8] : memref<9x4x4xf32, #tpu.memory_space<vmem>>, vector<1x4x4xf32>
    %18 = vector.shape_cast %17 : vector<1x4x4xf32> to vector<4x4xf32>
    %cst_9 = arith.constant dense<0.000000e+00> : vector<256x4xf32>
    %19 = tpu.matmul %16, %18, %cst_9 {dimension_numbers = #tpu.dot_dimension_numbers<[1], [0], [0], [1], [0, 0, 1, 1], [], []>} : vector<256x4xf32>, vector<4x4xf32>, vector<256x4xf32> -> vector<256x4xf32>
    %20 = arith.addf %14, %19 : vector<256x4xf32>
    %21 = vector.extract_strided_slice %7 {offsets = [0, 2, 0], sizes = [16, 16, 4], strides = [1, 1, 1]} : vector<18x18x4xf32> to vector<16x16x4xf32>
    %22 = vector.shape_cast %21 : vector<16x16x4xf32> to vector<256x4xf32>
    %c2 = arith.constant 2 : index
    %c0_10 = arith.constant 0 : index
    %c0_11 = arith.constant 0 : index
    %23 = vector.load %arg2[%c2, %c0_10, %c0_11] : memref<9x4x4xf32, #tpu.memory_space<vmem>>, vector<1x4x4xf32>
    %24 = vector.shape_cast %23 : vector<1x4x4xf32> to vector<4x4xf32>
    %cst_12 = arith.constant dense<0.000000e+00> : vector<256x4xf32>
    %25 = tpu.matmul %22, %24, %cst_12 {dimension_numbers = #tpu.dot_dimension_numbers<[1], [0], [0], [1], [0, 0, 1, 1], [], []>} : vector<256x4xf32>, vector<4x4xf32>, vector<256x4xf32> -> vector<256x4xf32>
    %26 = arith.addf %20, %25 : vector<256x4xf32>
    %27 = vector.extract_strided_slice %7 {offsets = [1, 0, 0], sizes = [16, 16, 4], strides = [1, 1, 1]} : vector<18x18x4xf32> to vector<16x16x4xf32>
    %28 = vector.shape_cast %27 : vector<16x16x4xf32> to vector<256x4xf32>
    %c3 = arith.constant 3 : index
    %c0_13 = arith.constant 0 : index
    %c0_14 = arith.constant 0 : index
    %29 = vector.load %arg2[%c3, %c0_13, %c0_14] : memref<9x4x4xf32, #tpu.memory_space<vmem>>, vector<1x4x4xf32>
    %30 = vector.shape_cast %29 : vector<1x4x4xf32> to vector<4x4xf32>
    %cst_15 = arith.constant dense<0.000000e+00> : vector<256x4xf32>
    %31 = tpu.matmul %28, %30, %cst_15 {dimension_numbers = #tpu.dot_dimension_numbers<[1], [0], [0], [1], [0, 0, 1, 1], [], []>} : vector<256x4xf32>, vector<4x4xf32>, vector<256x4xf32> -> vector<256x4xf32>
    %32 = arith.addf %26, %31 : vector<256x4xf32>
    %33 = vector.extract_strided_slice %7 {offsets = [1, 1, 0], sizes = [16, 16, 4], strides = [1, 1, 1]} : vector<18x18x4xf32> to vector<16x16x4xf32>
    %34 = vector.shape_cast %33 : vector<16x16x4xf32> to vector<256x4xf32>
    %c4 = arith.constant 4 : index
    %c0_16 = arith.constant 0 : index
    %c0_17 = arith.constant 0 : index
    %35 = vector.load %arg2[%c4, %c0_16, %c0_17] : memref<9x4x4xf32, #tpu.memory_space<vmem>>, vector<1x4x4xf32>
    %36 = vector.shape_cast %35 : vector<1x4x4xf32> to vector<4x4xf32>
    %cst_18 = arith.constant dense<0.000000e+00> : vector<256x4xf32>
    %37 = tpu.matmul %34, %36, %cst_18 {dimension_numbers = #tpu.dot_dimension_numbers<[1], [0], [0], [1], [0, 0, 1, 1], [], []>} : vector<256x4xf32>, vector<4x4xf32>, vector<256x4xf32> -> vector<256x4xf32>
    %38 = arith.addf %32, %37 : vector<256x4xf32>
    %39 = vector.extract_strided_slice %7 {offsets = [1, 2, 0], sizes = [16, 16, 4], strides = [1, 1, 1]} : vector<18x18x4xf32> to vector<16x16x4xf32>
    %40 = vector.shape_cast %39 : vector<16x16x4xf32> to vector<256x4xf32>
    %c5 = arith.constant 5 : index
    %c0_19 = arith.constant 0 : index
    %c0_20 = arith.constant 0 : index
    %41 = vector.load %arg2[%c5, %c0_19, %c0_20] : memref<9x4x4xf32, #tpu.memory_space<vmem>>, vector<1x4x4xf32>
    %42 = vector.shape_cast %41 : vector<1x4x4xf32> to vector<4x4xf32>
    %cst_21 = arith.constant dense<0.000000e+00> : vector<256x4xf32>
    %43 = tpu.matmul %40, %42, %cst_21 {dimension_numbers = #tpu.dot_dimension_numbers<[1], [0], [0], [1], [0, 0, 1, 1], [], []>} : vector<256x4xf32>, vector<4x4xf32>, vector<256x4xf32> -> vector<256x4xf32>
    %44 = arith.addf %38, %43 : vector<256x4xf32>
    %45 = vector.extract_strided_slice %7 {offsets = [2, 0, 0], sizes = [16, 16, 4], strides = [1, 1, 1]} : vector<18x18x4xf32> to vector<16x16x4xf32>
    %46 = vector.shape_cast %45 : vector<16x16x4xf32> to vector<256x4xf32>
    %c6 = arith.constant 6 : index
    %c0_22 = arith.constant 0 : index
    %c0_23 = arith.constant 0 : index
    %47 = vector.load %arg2[%c6, %c0_22, %c0_23] : memref<9x4x4xf32, #tpu.memory_space<vmem>>, vector<1x4x4xf32>
    %48 = vector.shape_cast %47 : vector<1x4x4xf32> to vector<4x4xf32>
    %cst_24 = arith.constant dense<0.000000e+00> : vector<256x4xf32>
    %49 = tpu.matmul %46, %48, %cst_24 {dimension_numbers = #tpu.dot_dimension_numbers<[1], [0], [0], [1], [0, 0, 1, 1], [], []>} : vector<256x4xf32>, vector<4x4xf32>, vector<256x4xf32> -> vector<256x4xf32>
    %50 = arith.addf %44, %49 : vector<256x4xf32>
    %51 = vector.extract_strided_slice %7 {offsets = [2, 1, 0], sizes = [16, 16, 4], strides = [1, 1, 1]} : vector<18x18x4xf32> to vector<16x16x4xf32>
    %52 = vector.shape_cast %51 : vector<16x16x4xf32> to vector<256x4xf32>
    %c7 = arith.constant 7 : index
    %c0_25 = arith.constant 0 : index
    %c0_26 = arith.constant 0 : index
    %53 = vector.load %arg2[%c7, %c0_25, %c0_26] : memref<9x4x4xf32, #tpu.memory_space<vmem>>, vector<1x4x4xf32>
    %54 = vector.shape_cast %53 : vector<1x4x4xf32> to vector<4x4xf32>
    %cst_27 = arith.constant dense<0.000000e+00> : vector<256x4xf32>
    %55 = tpu.matmul %52, %54, %cst_27 {dimension_numbers = #tpu.dot_dimension_numbers<[1], [0], [0], [1], [0, 0, 1, 1], [], []>} : vector<256x4xf32>, vector<4x4xf32>, vector<256x4xf32> -> vector<256x4xf32>
    %56 = arith.addf %50, %55 : vector<256x4xf32>
    %57 = vector.extract_strided_slice %7 {offsets = [2, 2, 0], sizes = [16, 16, 4], strides = [1, 1, 1]} : vector<18x18x4xf32> to vector<16x16x4xf32>
    %58 = vector.shape_cast %57 : vector<16x16x4xf32> to vector<256x4xf32>
    %c8 = arith.constant 8 : index
    %c0_28 = arith.constant 0 : index
    %c0_29 = arith.constant 0 : index
    %59 = vector.load %arg2[%c8, %c0_28, %c0_29] : memref<9x4x4xf32, #tpu.memory_space<vmem>>, vector<1x4x4xf32>
    %60 = vector.shape_cast %59 : vector<1x4x4xf32> to vector<4x4xf32>
    %cst_30 = arith.constant dense<0.000000e+00> : vector<256x4xf32>
    %61 = tpu.matmul %58, %60, %cst_30 {dimension_numbers = #tpu.dot_dimension_numbers<[1], [0], [0], [1], [0, 0, 1, 1], [], []>} : vector<256x4xf32>, vector<4x4xf32>, vector<256x4xf32> -> vector<256x4xf32>
    %62 = arith.addf %56, %61 : vector<256x4xf32>
    %cst_31 = arith.constant dense<0.000000e+00> : vector<4xf32>
    %63 = vector.multi_reduction <add>, %62, %cst_31 [0] : vector<256x4xf32> to vector<4xf32>
    %64 = vector.shape_cast %63 : vector<4xf32> to vector<1x4xf32>
    %65 = arith.mulf %62, %62 : vector<256x4xf32>
    %cst_32 = arith.constant dense<0.000000e+00> : vector<4xf32>
    %66 = vector.multi_reduction <add>, %65, %cst_32 [0] : vector<256x4xf32> to vector<4xf32>
    %67 = vector.shape_cast %66 : vector<4xf32> to vector<1x4xf32>
    %cst_33 = arith.constant 3.906250e-03 : f32
    %68 = vector.broadcast %cst_33 : f32 to vector<1x4xf32>
    %69 = arith.mulf %64, %68 : vector<1x4xf32>
    %cst_34 = arith.constant 3.906250e-03 : f32
    %70 = vector.broadcast %cst_34 : f32 to vector<1x4xf32>
    %71 = arith.mulf %67, %70 : vector<1x4xf32>
    %72 = arith.mulf %69, %69 : vector<1x4xf32>
    %73 = arith.subf %71, %72 : vector<1x4xf32>
    %c0_35 = arith.constant 0 : index
    %c0_36 = arith.constant 0 : index
    %74 = vector.load %arg3[%c0_35, %c0_36] : memref<1x4xf32, #tpu.memory_space<vmem>>, vector<1x4xf32>
    %cst_37 = arith.constant 9.99999974E-6 : f32
    %75 = vector.broadcast %cst_37 : f32 to vector<1x4xf32>
    %76 = arith.addf %73, %75 : vector<1x4xf32>
    %77 = math.rsqrt %76 : vector<1x4xf32>
    %78 = arith.mulf %74, %77 : vector<1x4xf32>
    %c0_38 = arith.constant 0 : index
    %c0_39 = arith.constant 0 : index
    %79 = vector.load %arg4[%c0_38, %c0_39] : memref<1x4xf32, #tpu.memory_space<vmem>>, vector<1x4xf32>
    %80 = arith.mulf %69, %78 : vector<1x4xf32>
    %81 = arith.subf %79, %80 : vector<1x4xf32>
    %82 = vector.broadcast %78 : vector<1x4xf32> to vector<256x4xf32>
    %83 = arith.mulf %62, %82 : vector<256x4xf32>
    %84 = vector.broadcast %81 : vector<1x4xf32> to vector<256x4xf32>
    %85 = arith.addf %83, %84 : vector<256x4xf32>
    %cst_40 = arith.constant 0.000000e+00 : f32
    %86 = vector.broadcast %cst_40 : f32 to vector<256x4xf32>
    %87 = arith.maximumf %85, %86 : vector<256x4xf32>
    %88 = vector.shape_cast %87 : vector<256x4xf32> to vector<16x16x4xf32>
    %89 = vector.extract_strided_slice %88 {offsets = [1, 0, 0], sizes = [1, 16, 4], strides = [1, 1, 1]} : vector<16x16x4xf32> to vector<1x16x4xf32>
    %90 = vector.extract_strided_slice %88 {offsets = [14, 0, 0], sizes = [1, 16, 4], strides = [1, 1, 1]} : vector<16x16x4xf32> to vector<1x16x4xf32>
    %91 = tpu.concatenate %89, %88, %90 in 0 : vector<1x16x4xf32>, vector<16x16x4xf32>, vector<1x16x4xf32> -> vector<18x16x4xf32>
    %92 = vector.extract_strided_slice %91 {offsets = [0, 1, 0], sizes = [18, 1, 4], strides = [1, 1, 1]} : vector<18x16x4xf32> to vector<18x1x4xf32>
    %93 = vector.extract_strided_slice %91 {offsets = [0, 14, 0], sizes = [18, 1, 4], strides = [1, 1, 1]} : vector<18x16x4xf32> to vector<18x1x4xf32>
    %94 = tpu.concatenate %92, %91, %93 in 1 : vector<18x1x4xf32>, vector<18x16x4xf32>, vector<18x1x4xf32> -> vector<18x18x4xf32>
    %cst_41 = arith.constant 0.000000e+00 : f32
    %95 = vector.broadcast %cst_41 : f32 to vector<256x4xf32>
    %96 = vector.extract_strided_slice %94 {offsets = [0, 0, 0], sizes = [16, 16, 4], strides = [1, 1, 1]} : vector<18x18x4xf32> to vector<16x16x4xf32>
    %97 = vector.shape_cast %96 : vector<16x16x4xf32> to vector<256x4xf32>
    %c0_42 = arith.constant 0 : index
    %c0_43 = arith.constant 0 : index
    %c0_44 = arith.constant 0 : index
    %98 = vector.load %arg5[%c0_42, %c0_43, %c0_44] : memref<9x4x4xf32, #tpu.memory_space<vmem>>, vector<1x4x4xf32>
    %99 = vector.shape_cast %98 : vector<1x4x4xf32> to vector<4x4xf32>
    %cst_45 = arith.constant dense<0.000000e+00> : vector<256x4xf32>
    %100 = tpu.matmul %97, %99, %cst_45 {dimension_numbers = #tpu.dot_dimension_numbers<[1], [0], [0], [1], [0, 0, 1, 1], [], []>} : vector<256x4xf32>, vector<4x4xf32>, vector<256x4xf32> -> vector<256x4xf32>
    %101 = arith.addf %95, %100 : vector<256x4xf32>
    %102 = vector.extract_strided_slice %94 {offsets = [0, 1, 0], sizes = [16, 16, 4], strides = [1, 1, 1]} : vector<18x18x4xf32> to vector<16x16x4xf32>
    %103 = vector.shape_cast %102 : vector<16x16x4xf32> to vector<256x4xf32>
    %c1_46 = arith.constant 1 : index
    %c0_47 = arith.constant 0 : index
    %c0_48 = arith.constant 0 : index
    %104 = vector.load %arg5[%c1_46, %c0_47, %c0_48] : memref<9x4x4xf32, #tpu.memory_space<vmem>>, vector<1x4x4xf32>
    %105 = vector.shape_cast %104 : vector<1x4x4xf32> to vector<4x4xf32>
    %cst_49 = arith.constant dense<0.000000e+00> : vector<256x4xf32>
    %106 = tpu.matmul %103, %105, %cst_49 {dimension_numbers = #tpu.dot_dimension_numbers<[1], [0], [0], [1], [0, 0, 1, 1], [], []>} : vector<256x4xf32>, vector<4x4xf32>, vector<256x4xf32> -> vector<256x4xf32>
    %107 = arith.addf %101, %106 : vector<256x4xf32>
    %108 = vector.extract_strided_slice %94 {offsets = [0, 2, 0], sizes = [16, 16, 4], strides = [1, 1, 1]} : vector<18x18x4xf32> to vector<16x16x4xf32>
    %109 = vector.shape_cast %108 : vector<16x16x4xf32> to vector<256x4xf32>
    %c2_50 = arith.constant 2 : index
    %c0_51 = arith.constant 0 : index
    %c0_52 = arith.constant 0 : index
    %110 = vector.load %arg5[%c2_50, %c0_51, %c0_52] : memref<9x4x4xf32, #tpu.memory_space<vmem>>, vector<1x4x4xf32>
    %111 = vector.shape_cast %110 : vector<1x4x4xf32> to vector<4x4xf32>
    %cst_53 = arith.constant dense<0.000000e+00> : vector<256x4xf32>
    %112 = tpu.matmul %109, %111, %cst_53 {dimension_numbers = #tpu.dot_dimension_numbers<[1], [0], [0], [1], [0, 0, 1, 1], [], []>} : vector<256x4xf32>, vector<4x4xf32>, vector<256x4xf32> -> vector<256x4xf32>
    %113 = arith.addf %107, %112 : vector<256x4xf32>
    %114 = vector.extract_strided_slice %94 {offsets = [1, 0, 0], sizes = [16, 16, 4], strides = [1, 1, 1]} : vector<18x18x4xf32> to vector<16x16x4xf32>
    %115 = vector.shape_cast %114 : vector<16x16x4xf32> to vector<256x4xf32>
    %c3_54 = arith.constant 3 : index
    %c0_55 = arith.constant 0 : index
    %c0_56 = arith.constant 0 : index
    %116 = vector.load %arg5[%c3_54, %c0_55, %c0_56] : memref<9x4x4xf32, #tpu.memory_space<vmem>>, vector<1x4x4xf32>
    %117 = vector.shape_cast %116 : vector<1x4x4xf32> to vector<4x4xf32>
    %cst_57 = arith.constant dense<0.000000e+00> : vector<256x4xf32>
    %118 = tpu.matmul %115, %117, %cst_57 {dimension_numbers = #tpu.dot_dimension_numbers<[1], [0], [0], [1], [0, 0, 1, 1], [], []>} : vector<256x4xf32>, vector<4x4xf32>, vector<256x4xf32> -> vector<256x4xf32>
    %119 = arith.addf %113, %118 : vector<256x4xf32>
    %120 = vector.extract_strided_slice %94 {offsets = [1, 1, 0], sizes = [16, 16, 4], strides = [1, 1, 1]} : vector<18x18x4xf32> to vector<16x16x4xf32>
    %121 = vector.shape_cast %120 : vector<16x16x4xf32> to vector<256x4xf32>
    %c4_58 = arith.constant 4 : index
    %c0_59 = arith.constant 0 : index
    %c0_60 = arith.constant 0 : index
    %122 = vector.load %arg5[%c4_58, %c0_59, %c0_60] : memref<9x4x4xf32, #tpu.memory_space<vmem>>, vector<1x4x4xf32>
    %123 = vector.shape_cast %122 : vector<1x4x4xf32> to vector<4x4xf32>
    %cst_61 = arith.constant dense<0.000000e+00> : vector<256x4xf32>
    %124 = tpu.matmul %121, %123, %cst_61 {dimension_numbers = #tpu.dot_dimension_numbers<[1], [0], [0], [1], [0, 0, 1, 1], [], []>} : vector<256x4xf32>, vector<4x4xf32>, vector<256x4xf32> -> vector<256x4xf32>
    %125 = arith.addf %119, %124 : vector<256x4xf32>
    %126 = vector.extract_strided_slice %94 {offsets = [1, 2, 0], sizes = [16, 16, 4], strides = [1, 1, 1]} : vector<18x18x4xf32> to vector<16x16x4xf32>
    %127 = vector.shape_cast %126 : vector<16x16x4xf32> to vector<256x4xf32>
    %c5_62 = arith.constant 5 : index
    %c0_63 = arith.constant 0 : index
    %c0_64 = arith.constant 0 : index
    %128 = vector.load %arg5[%c5_62, %c0_63, %c0_64] : memref<9x4x4xf32, #tpu.memory_space<vmem>>, vector<1x4x4xf32>
    %129 = vector.shape_cast %128 : vector<1x4x4xf32> to vector<4x4xf32>
    %cst_65 = arith.constant dense<0.000000e+00> : vector<256x4xf32>
    %130 = tpu.matmul %127, %129, %cst_65 {dimension_numbers = #tpu.dot_dimension_numbers<[1], [0], [0], [1], [0, 0, 1, 1], [], []>} : vector<256x4xf32>, vector<4x4xf32>, vector<256x4xf32> -> vector<256x4xf32>
    %131 = arith.addf %125, %130 : vector<256x4xf32>
    %132 = vector.extract_strided_slice %94 {offsets = [2, 0, 0], sizes = [16, 16, 4], strides = [1, 1, 1]} : vector<18x18x4xf32> to vector<16x16x4xf32>
    %133 = vector.shape_cast %132 : vector<16x16x4xf32> to vector<256x4xf32>
    %c6_66 = arith.constant 6 : index
    %c0_67 = arith.constant 0 : index
    %c0_68 = arith.constant 0 : index
    %134 = vector.load %arg5[%c6_66, %c0_67, %c0_68] : memref<9x4x4xf32, #tpu.memory_space<vmem>>, vector<1x4x4xf32>
    %135 = vector.shape_cast %134 : vector<1x4x4xf32> to vector<4x4xf32>
    %cst_69 = arith.constant dense<0.000000e+00> : vector<256x4xf32>
    %136 = tpu.matmul %133, %135, %cst_69 {dimension_numbers = #tpu.dot_dimension_numbers<[1], [0], [0], [1], [0, 0, 1, 1], [], []>} : vector<256x4xf32>, vector<4x4xf32>, vector<256x4xf32> -> vector<256x4xf32>
    %137 = arith.addf %131, %136 : vector<256x4xf32>
    %138 = vector.extract_strided_slice %94 {offsets = [2, 1, 0], sizes = [16, 16, 4], strides = [1, 1, 1]} : vector<18x18x4xf32> to vector<16x16x4xf32>
    %139 = vector.shape_cast %138 : vector<16x16x4xf32> to vector<256x4xf32>
    %c7_70 = arith.constant 7 : index
    %c0_71 = arith.constant 0 : index
    %c0_72 = arith.constant 0 : index
    %140 = vector.load %arg5[%c7_70, %c0_71, %c0_72] : memref<9x4x4xf32, #tpu.memory_space<vmem>>, vector<1x4x4xf32>
    %141 = vector.shape_cast %140 : vector<1x4x4xf32> to vector<4x4xf32>
    %cst_73 = arith.constant dense<0.000000e+00> : vector<256x4xf32>
    %142 = tpu.matmul %139, %141, %cst_73 {dimension_numbers = #tpu.dot_dimension_numbers<[1], [0], [0], [1], [0, 0, 1, 1], [], []>} : vector<256x4xf32>, vector<4x4xf32>, vector<256x4xf32> -> vector<256x4xf32>
    %143 = arith.addf %137, %142 : vector<256x4xf32>
    %144 = vector.extract_strided_slice %94 {offsets = [2, 2, 0], sizes = [16, 16, 4], strides = [1, 1, 1]} : vector<18x18x4xf32> to vector<16x16x4xf32>
    %145 = vector.shape_cast %144 : vector<16x16x4xf32> to vector<256x4xf32>
    %c8_74 = arith.constant 8 : index
    %c0_75 = arith.constant 0 : index
    %c0_76 = arith.constant 0 : index
    %146 = vector.load %arg5[%c8_74, %c0_75, %c0_76] : memref<9x4x4xf32, #tpu.memory_space<vmem>>, vector<1x4x4xf32>
    %147 = vector.shape_cast %146 : vector<1x4x4xf32> to vector<4x4xf32>
    %cst_77 = arith.constant dense<0.000000e+00> : vector<256x4xf32>
    %148 = tpu.matmul %145, %147, %cst_77 {dimension_numbers = #tpu.dot_dimension_numbers<[1], [0], [0], [1], [0, 0, 1, 1], [], []>} : vector<256x4xf32>, vector<4x4xf32>, vector<256x4xf32> -> vector<256x4xf32>
    %149 = arith.addf %143, %148 : vector<256x4xf32>
    %cst_78 = arith.constant dense<0.000000e+00> : vector<4xf32>
    %150 = vector.multi_reduction <add>, %149, %cst_78 [0] : vector<256x4xf32> to vector<4xf32>
    %151 = vector.shape_cast %150 : vector<4xf32> to vector<1x4xf32>
    %152 = arith.mulf %149, %149 : vector<256x4xf32>
    %cst_79 = arith.constant dense<0.000000e+00> : vector<4xf32>
    %153 = vector.multi_reduction <add>, %152, %cst_79 [0] : vector<256x4xf32> to vector<4xf32>
    %154 = vector.shape_cast %153 : vector<4xf32> to vector<1x4xf32>
    %cst_80 = arith.constant 3.906250e-03 : f32
    %155 = vector.broadcast %cst_80 : f32 to vector<1x4xf32>
    %156 = arith.mulf %151, %155 : vector<1x4xf32>
    %cst_81 = arith.constant 3.906250e-03 : f32
    %157 = vector.broadcast %cst_81 : f32 to vector<1x4xf32>
    %158 = arith.mulf %154, %157 : vector<1x4xf32>
    %159 = arith.mulf %156, %156 : vector<1x4xf32>
    %160 = arith.subf %158, %159 : vector<1x4xf32>
    %c0_82 = arith.constant 0 : index
    %c0_83 = arith.constant 0 : index
    %161 = vector.load %arg6[%c0_82, %c0_83] : memref<1x4xf32, #tpu.memory_space<vmem>>, vector<1x4xf32>
    %cst_84 = arith.constant 9.99999974E-6 : f32
    %162 = vector.broadcast %cst_84 : f32 to vector<1x4xf32>
    %163 = arith.addf %160, %162 : vector<1x4xf32>
    %164 = math.rsqrt %163 : vector<1x4xf32>
    %165 = arith.mulf %161, %164 : vector<1x4xf32>
    %c0_85 = arith.constant 0 : index
    %c0_86 = arith.constant 0 : index
    %166 = vector.load %arg7[%c0_85, %c0_86] : memref<1x4xf32, #tpu.memory_space<vmem>>, vector<1x4xf32>
    %167 = arith.mulf %156, %165 : vector<1x4xf32>
    %168 = arith.subf %166, %167 : vector<1x4xf32>
    %169 = vector.broadcast %165 : vector<1x4xf32> to vector<256x4xf32>
    %170 = arith.mulf %149, %169 : vector<256x4xf32>
    %171 = vector.broadcast %168 : vector<1x4xf32> to vector<256x4xf32>
    %172 = arith.addf %170, %171 : vector<256x4xf32>
    %173 = vector.shape_cast %1 : vector<16x16x4xf32> to vector<256x4xf32>
    %174 = arith.addf %172, %173 : vector<256x4xf32>
    %175 = vector.shape_cast %174 : vector<256x4xf32> to vector<16x16x4xf32>
    %c0_87 = arith.constant 0 : index
    %c0_88 = arith.constant 0 : index
    %c0_89 = arith.constant 0 : index
    %c0_90 = arith.constant 0 : index
    %176 = vector.load %arg8[%c0_87, %c0_88, %c0_89, %c0_90] : memref<1x16x16x4xf32, #tpu.memory_space<vmem>>, vector<1x16x16x4xf32>
    %177 = vector.shape_cast %176 : vector<1x16x16x4xf32> to vector<16x16x4xf32>
    %178 = vector.shape_cast %175 : vector<16x16x4xf32> to vector<1x16x16x4xf32>
    tpu.vector_store %arg8[%c0_87, %c0_88, %c0_89, %c0_90], %178 {strides = array<i32>} : memref<1x16x16x4xf32, #tpu.memory_space<vmem>>, vector<1x16x16x4xf32>,
    return
  }
  func.func @transform_0(%arg0: i32) -> (i32, i32, i32, i32) {
    %c0_i32 = arith.constant 0 : i32
    %c0_i32_0 = arith.constant 0 : i32
    %c0_i32_1 = arith.constant 0 : i32
    %c0_i32_2 = arith.constant 0 : i32
    return %arg0, %c0_i32, %c0_i32_0, %c0_i32_1 : i32, i32, i32, i32
  }
  func.func @transform_1(%arg0: i32) -> (i32, i32, i32) {
    %c0_i32 = arith.constant 0 : i32
    %c0_i32_0 = arith.constant 0 : i32
    %c0_i32_1 = arith.constant 0 : i32
    %c0_i32_2 = arith.constant 0 : i32
    return %c0_i32, %c0_i32_0, %c0_i32_1 : i32, i32, i32
  }
  func.func @transform_2(%arg0: i32) -> (i32, i32) {
    %c0_i32 = arith.constant 0 : i32
    %c0_i32_0 = arith.constant 0 : i32
    %c0_i32_1 = arith.constant 0 : i32
    return %c0_i32, %c0_i32_0 : i32, i32
  }
  func.func @transform_3(%arg0: i32) -> (i32, i32) {
    %c0_i32 = arith.constant 0 : i32
    %c0_i32_0 = arith.constant 0 : i32
    %c0_i32_1 = arith.constant 0 : i32
    return %c0_i32, %c0_i32_0 : i32, i32
  }
  func.func @transform_4(%arg0: i32) -> (i32, i32, i32) {
    %c0_i32 = arith.constant 0 : i32
    %c0_i32_0 = arith.constant 0 : i32
    %c0_i32_1 = arith.constant 0 : i32
    %c0_i32_2 = arith.constant 0 : i32
    return %c0_i32, %c0_i32_0, %c0_i32_1 : i32, i32, i32
  }
  func.func @transform_5(%arg0: i32) -> (i32, i32) {
    %c0_i32 = arith.constant 0 : i32
    %c0_i32_0 = arith.constant 0 : i32
    %c0_i32_1 = arith.constant 0 : i32
    return %c0_i32, %c0_i32_0 : i32, i32
  }
  func.func @transform_6(%arg0: i32) -> (i32, i32) {
    %c0_i32 = arith.constant 0 : i32
    %c0_i32_0 = arith.constant 0 : i32
    %c0_i32_1 = arith.constant 0 : i32
    return %c0_i32, %c0_i32_0 : i32, i32
  }
  func.func @transform_7(%arg0: i32) -> (i32, i32, i32, i32) {
    %c0_i32 = arith.constant 0 : i32
    %c0_i32_0 = arith.constant 0 : i32
    %c0_i32_1 = arith.constant 0 : i32
    %c0_i32_2 = arith.constant 0 : i32
    return %arg0, %c0_i32, %c0_i32_0, %c0_i32_1 : i32, i32, i32, i32
  }
}

</mosaic_0001>

<bundles_post_ra>
// kernel: tpu_custom_call.1
= control target key start
LH: loop header
LB: loop body
LE: loop exit
PB: predicated region body
PF: predicated region fallthrough
CT: control target
= control target key end

     0   :  { %s9472_s24 = smov 0   ;;  %s12634_s0 = inlined_call_operand.vmem [shape: f32[2,16,16,4], index: 0, kind: input, shape index: {}]   ;;  %s12635_s1 = inlined_call_operand.vmem [shape: f32[9,4,4], index: 1, kind: input, shape index: {}]   ;;  %s12636_s2 = inlined_call_operand.vmem [shape: f32[1,4], index: 2, kind: input, shape index: {}]   ;;  %s12637_s3 = inlined_call_operand.vmem [shape: f32[1,4], index: 3, kind: input, shape index: {}]   ;;  %s12638_s4 = inlined_call_operand.vmem [shape: f32[9,4,4], index: 4, kind: input, shape index: {}]   ;;  %s12639_s5 = inlined_call_operand.vmem [shape: f32[1,4], index: 5, kind: input, shape index: {}]   ;;  %s12640_s6 = inlined_call_operand.vmem [shape: f32[1,4], index: 6, kind: input, shape index: {}]   ;;  %s12641_s7 = inlined_call_operand.vmem [shape: f32[2,16,16,4], index: 7, kind: output, shape index: {}]  }
   0x1 LB: > { %s6751_s25 = sadd.s32 4294967295, %s9430_s24   ;;  %p6755_p0 = scmp.ge.s32.totalorder %s9430_s24, 1  ;;  %s9430_s24 = sphi %s9472_s24, %s17_s24  }
   0x2   : > { %p237_p1 = scmp.lt.s32.totalorder %s9430_s24, 3 }
   0x4   : > { %p238_p2 = pnand %p6755_p0, %p237_p1 }
   0x6   : > { %241 = sbr.rel (%p238_p2) target bundleno = 1755 (0x6db), region = 48 }
   0xd   : > { %v6760_v0 = vld [vmem:[%s12635_s1 + $0x4] sm:$0xf]  ;;  %vm690_vm0 = vcmask 1043456   ;;  %p269_p3 = scmp.lt.s32.totalorder %s6751_s25, 1  ;;  %v520_v1 = vld [vmem:[%s12635_s1] sm:$0xf] }
   0xe   : > { %7968 = vmatprep.subr.msk.mxu0 %vm690_vm0, %v6760_v0  ;;  %vm375_vm1 = vcmask 1040384   ;;  %vm551_vm2 = vcmask 1046528   ;;  %vm629_vm3 = vcmask 31744   ;;  %v9545_v37 = vld [vmem:[%s12635_s1 + $0x8] sm:$0xf]  ;;  %vm1207_vm4 = vcmask 1045504  }
   0xf   : > { %7969 = vmatpush3.msk.msra.mxu0 %vm690_vm0, %v6760_v0  ;;  %s13154_s25 = smov (!%p269_p3, %s6751_s25), 1 }
  0x10   : > { %8018 = vmatprep.subr.msk.mxu0 %vm690_vm0, %v520_v1  ;;  %s7372_s30 = sshll.u32 %s13154_s25, 8 }
  0x11   : > { %s9497_s10 = scalar_lea.vmem %s12634_s0, %s7372_s30  ;;  %s12513_s15 = scalar_lea.vmem %s12641_s7, %s7372_s30 }
  0x12   : > { %v281_v2 = vld [vmem:[%s9497_s10 + $0x10] sm:$0xff]  ;;  %v282_v3 = vld [vmem:[%s9497_s10 + $0x18] sm:$0xff]  ;;  %v279_v4 = vld [vmem:[%s9497_s10] sm:$0xff] }
  0x13   : > { %v327_v5 = vrot.slane %v281_v2, 1  ;;  %v376_v6 = vrot.slane %v281_v2, 7  ;;  %v377_v7 = vrot.slane %v282_v3, 7  ;;  %v456_v8 = vrot.slane %v282_v3, 5  ;;  %v280_v9 = vld [vmem:[%s9497_s10 + $0x8] sm:$0xff]  ;;  %v283_v10 = vld [vmem:[%s9497_s10 + $0x20] sm:$0xff] }
  0x14   : > { %v328_v11 = vrot.slane %v279_v4, 1  ;;  %v379_v12 = vrot.slane %v279_v4, 7  ;;  %v380_v13 = vrot.slane %v280_v9, 7  ;;  %v457_v14 = vrot.slane %v280_v9, 5  ;;  %v284_v22 = vld [vmem:[%s9497_s10 + $0x28] sm:$0xff]  ;;  %v285_v27 = vld [vmem:[%s9497_s10 + $0x30] sm:$0xff] }
  0x15   : > { %v9505_v15 = vsel %vm375_vm1, %v376_v6, %v377_v7  ;;  %v9508_v16 = vsel %vm375_vm1, %v327_v5, %v376_v6  ;;  %v9511_v17 = vsel %vm375_vm1, %v377_v7, %v456_v8  ;;  %v329_v18 = vrot.slane %v283_v10, 1  ;;  %v286_v32 = vld [vmem:[%s9497_s10 + $0x38] sm:$0xff]  ;;  %v287_v41 = vld [vmem:[%s9497_s10 + $0x40] sm:$0xff]  ;;  %v288_v50 = vld [vmem:[%s9497_s10 + $0x48] sm:$0xff] }
  0x16   : > { %v552_v19 = vrot.slane %v9508_v16, 1  ;;  %v553_v20 = vrot.slane %v9505_v15, 1  ;;  %v555_v21 = vrot.slane %v9511_v17, 1  ;;  %v9518_v23 = vsel %vm375_vm1, %v379_v12, %v380_v13  ;;  %v289_v54 = vld [vmem:[%s9497_s10 + $0x50] sm:$0xff]  ;;  %v290_v57 = vld [vmem:[%s9497_s10 + $0x58] sm:$0xff]  ;;  %v291_v4 = vld [vmem:[%s9497_s10 + $0x60] sm:$0xff] }
  0x17   : > { %v9521_v24 = vsel %vm375_vm1, %v328_v11, %v379_v12  ;;  %v9524_v25 = vsel %vm375_vm1, %v380_v13, %v457_v14  ;;  %v382_v26 = vrot.slane %v283_v10, 7  ;;  %v558_v31 = vrot.slane %v9518_v23, 1  ;;  %v292_v7 = vld [vmem:[%s9497_s10 + $0x68] sm:$0xff] }
  0x18   : > { %v9528_v28 = vsel %vm551_vm2, %v552_v19, %v553_v20  ;;  %v9531_v29 = vsel %vm551_vm2, %v553_v20, %v555_v21  ;;  %v557_v30 = vrot.slane %v9521_v24, 1  ;;  %v560_v33 = vrot.slane %v9524_v25, 1 }
  0x19   : > { %12842 = vst [vmem:[#allocation2_spill] sm:$0xff] %v9528_v28  ;;  %12843 = vst [vmem:[#allocation3_spill] sm:$0xff] %v9531_v29  ;;  %7970 = vmatprep.mubr.msk.f32.mxu0 %vm629_vm3, %v9528_v28  ;;  %v383_v34 = vrot.slane %v284_v22, 7  ;;  %v9540_v35 = vsel %vm375_vm1, %v329_v18, %v382_v26  ;;  %v458_v36 = vrot.slane %v284_v22, 5  ;;  %v330_v39 = vrot.slane %v285_v27, 1 }
  0x1a   : > { %7971 = vmatmul.mubr.msk.f32.vlgmr.msra.gmra.mrb[0].mxu0 %vm629_vm3, %v9531_v29  ;;  %v9550_v38 = vsel %vm551_vm2, %v557_v30, %v558_v31  ;;  %v385_v40 = vrot.slane %v285_v27, 7  ;;  %v9557_v42 = vsel %vm551_vm2, %v558_v31, %v560_v33  ;;  %v386_v45 = vrot.slane %v286_v32, 7  ;;  %v294_v27 = vld [vmem:[%s9497_s10 + $0x78] sm:$0xff] }
  0x1b   : > { %8019 = vmatpush3.msk.msra.mxu0 %vm690_vm0, %v520_v1  ;;  %7973 = vmatprep.mubr.msk.f32.mxu0 %vm629_vm3, %v9550_v38  ;;  %v9560_v43 = vsel %vm375_vm1, %v382_v26, %v383_v34  ;;  %v9563_v44 = vsel %vm375_vm1, %v383_v34, %v458_v36  ;;  %v562_v46 = vrot.slane %v9540_v35, 1  ;;  %v459_v49 = vrot.slane %v286_v32, 5  ;;  %v293_v26 = vld [vmem:[%s9497_s10 + $0x70] sm:$0xff] }
  0x1c   : > { %v563_v47 = vrot.slane %v9560_v43, 1  ;;  %v9568_v48 = vsel %vm375_vm1, %v330_v39, %v385_v40  ;;  %8068 = vmatprep.subr.msk.mxu0 %vm690_vm0, %v9545_v37  ;;  %v9574_v51 = vsel %vm375_vm1, %v385_v40, %v386_v45  ;;  %v331_v52 = vrot.slane %v287_v41, 1  ;;  %v295_v39 = vld [vmem:[%s9497_s10 + $0x80] sm:$0xff]  ;;  %v296_v40 = vld [vmem:[%s9497_s10 + $0x88] sm:$0xff] }
  0x1d   : > { %v388_v53 = vrot.slane %v287_v41, 7  ;;  %v565_v55 = vrot.slane %v9563_v44, 1  ;;  %v567_v56 = vrot.slane %v9568_v48, 1  ;;  %v568_v58 = vrot.slane %v9574_v51, 1 }
  0x1e   : > { %7974 = vmatmul.mubr.msk.f32.gmra.mrb[2].mxu0 %vm629_vm3, %v9557_v42  ;;  %v9586_v59 = vsel %vm375_vm1, %v386_v45, %v459_v49  ;;  %v389_v60 = vrot.slane %v288_v50, 7  ;;  %v460_v61 = vrot.slane %v288_v50, 5  ;;  %v9589_v62 = vsel %vm551_vm2, %v562_v46, %v563_v47 }
  0x1f   : > { %7976 = vmatprep.mubr.msk.f32.mxu0 %vm629_vm3, %v9528_v28  ;;  %12844 = vst [vmem:[#allocation4_spill] sm:$0xff] %v9589_v62  ;;  %v9592_v63 = vsel %vm375_vm1, %v331_v52, %v388_v53  ;;  %v332_v0 = vrot.slane %v289_v54, 1  ;;  %v391_v1 = vrot.slane %v289_v54, 7  ;;  %v392_v3 = vrot.slane %v290_v57, 7 }
  0x20   : > { %v9595_v2 = vsel %vm375_vm1, %v388_v53, %v389_v60  ;;  %v9601_v5 = vsel %vm551_vm2, %v563_v47, %v565_v55  ;;  %v570_v6 = vrot.slane %v9586_v59, 1  ;;  %v9608_v8 = vsel %vm551_vm2, %v567_v56, %v568_v58 }
  0x21   : > { %12845 = vst [vmem:[#allocation5_spill] sm:$0xff] %v9601_v5  ;;  %12846 = vst [vmem:[#allocation6_spill] sm:$0xff] %v9608_v8  ;;  %v572_v9 = vrot.slane %v9592_v63, 1  ;;  %v573_v10 = vrot.slane %v9595_v2, 1  ;;  %v9613_v11 = vsel %vm375_vm1, %v389_v60, %v460_v61  ;;  %v9616_v12 = vsel %vm375_vm1, %v332_v0, %v391_v1  ;;  %v298_v0 = vld [vmem:[%s9497_s10 + $0x98] sm:$0xff] }
  0x22   : > { %7977 = vmatmul.mubr.msk.f32.gmra.mrb[4].mxu0 %vm629_vm3, %v9531_v29  ;;  %v461_v13 = vrot.slane %v290_v57, 5  ;;  %v333_v14 = vrot.slane %v291_v4, 1  ;;  %v394_v18 = vrot.slane %v291_v4, 7  ;;  %v9619_v19 = vsel %vm375_vm1, %v391_v1, %v392_v3  ;;  %v297_v57 = vld [vmem:[%s9497_s10 + $0x90] sm:$0xff] }
  0x23   : > { %7979 = vmatprep.mubr.msk.f32.mxu0 %vm629_vm3, %v9589_v62  ;;  %v395_v20 = vrot.slane %v292_v7, 7  ;;  %v575_v21 = vrot.slane %v9613_v11, 1  ;;  %v462_v22 = vrot.slane %v292_v7, 5  ;;  %v9629_v30 = vsel %vm551_vm2, %v568_v58, %v570_v6 }
  0x24   : > { %12847 = vst [vmem:[#allocation7_spill] sm:$0xff] %v9629_v30  ;;  %v577_v31 = vrot.slane %v9616_v12, 1  ;;  %v9633_v32 = vsel %vm551_vm2, %v572_v9, %v573_v10  ;;  %v578_v33 = vrot.slane %v9619_v19, 1  ;;  %v9637_v34 = vsel %vm375_vm1, %v392_v3, %v461_v13 }
  0x25   : > { %12848 = vst [vmem:[#allocation8_spill] sm:$0xff] %v9633_v32  ;;  %v9640_v36 = vsel %vm375_vm1, %v333_v14, %v394_v18  ;;  %v9645_v41 = vsel %vm375_vm1, %v394_v18, %v395_v20  ;;  %v334_v45 = vrot.slane %v293_v26, 1  ;;  %v397_v46 = vrot.slane %v293_v26, 7 }
  0x26   : > { %7980 = vmatmul.mubr.msk.f32.gmra.mrb[6].mxu0 %vm629_vm3, %v9601_v5  ;;  %v398_v47 = vrot.slane %v294_v27, 7  ;;  %v9650_v49 = vsel %vm551_vm2, %v573_v10, %v575_v21  ;;  %v9653_v50 = vsel %vm375_vm1, %v395_v20, %v462_v22  ;;  %v463_v52 = vrot.slane %v294_v27, 5  ;;  %v299_v27 = vld [vmem:[%s9497_s10 + $0xa0] sm:$0xff]  ;;  %v308_v5 = vld [vmem:[%s9497_s10 + $0xe8] sm:$0xff] }
  0x27   : > { %7982 = vmatprep.mubr.msk.f32.mxu0 %vm629_vm3, %v9608_v8  ;;  %12849 = vst [vmem:[#allocation9_spill] sm:$0xff] %v9650_v49  ;;  %v580_v53 = vrot.slane %v9637_v34, 1  ;;  %v335_v54 = vrot.slane %v295_v39, 1  ;;  %v400_v55 = vrot.slane %v295_v39, 7  ;;  %v401_v56 = vrot.slane %v296_v40, 7  ;;  %v300_v39 = vld [vmem:[%s9497_s10 + $0xa8] sm:$0xff] }
  0x28   : > { %v9660_v58 = vsel %vm551_vm2, %v577_v31, %v578_v33  ;;  %v582_v60 = vrot.slane %v9640_v36, 1  ;;  %v583_v61 = vrot.slane %v9645_v41, 1  ;;  %v585_v1 = vrot.slane %v9653_v50, 1 }
  0x29   : > { %12850 = vst [vmem:[#allocation10_spill] sm:$0xff] %v9660_v58  ;;  %v9667_v3 = vsel %vm375_vm1, %v397_v46, %v398_v47  ;;  %v9670_v4 = vsel %vm375_vm1, %v334_v45, %v397_v46  ;;  %v9675_v6 = vsel %vm375_vm1, %v398_v47, %v463_v52  ;;  %v464_v7 = vrot.slane %v296_v40, 5 }
  0x2a   : > { %7983 = vmatmul.mubr.msk.f32.gmra.mrb[8].mxu0 %vm629_vm3, %v9629_v30  ;;  %v336_v9 = vrot.slane %v297_v57, 1  ;;  %v403_v10 = vrot.slane %v297_v57, 7  ;;  %v9680_v13 = vsel %vm551_vm2, %v578_v33, %v580_v53  ;;  %v9683_v14 = vsel %vm375_vm1, %v400_v55, %v401_v56 }
  0x2b   : > { %7985 = vmatprep.mubr.msk.f32.mxu0 %vm629_vm3, %v9633_v32  ;;  %12851 = vst [vmem:[#allocation11_spill] sm:$0xff] %v9680_v13  ;;  %v9686_v18 = vsel %vm375_vm1, %v335_v54, %v400_v55  ;;  %v404_v20 = vrot.slane %v298_v0, 7  ;;  %v9689_v21 = vsel %vm551_vm2, %v582_v60, %v583_v61  ;;  %v587_v22 = vrot.slane %v9670_v4, 1  ;;  %v305_v32 = vld [vmem:[%s9497_s10 + $0xd0] sm:$0xff] }
  0x2c   : > { %12852 = vst [vmem:[#allocation12_spill] sm:$0xff] %v9689_v21  ;;  %v588_v26 = vrot.slane %v9667_v3, 1  ;;  %v9695_v31 = vsel %vm551_vm2, %v583_v61, %v585_v1  ;;  %v590_v33 = vrot.slane %v9675_v6, 1  ;;  %v592_v40 = vrot.slane %v9686_v18, 1  ;;  %v301_v61 = vld [vmem:[%s9497_s10 + $0xb0] sm:$0xff] }
  0x2d   : > { %12853 = vst [vmem:[#allocation13_spill] sm:$0xff] %v9695_v31  ;;  %v593_v45 = vrot.slane %v9683_v14, 1  ;;  %v9704_v46 = vsel %vm375_vm1, %v401_v56, %v464_v7  ;;  %v9707_v47 = vsel %vm375_vm1, %v336_v9, %v403_v10  ;;  %v9712_v52 = vsel %vm375_vm1, %v403_v10, %v404_v20  ;;  %v302_v56 = vld [vmem:[%s9497_s10 + $0xb8] sm:$0xff] }
  0x2e   : > { %7986 = vmatmul.mubr.msk.f32.gmra.mrb[10].mxu0 %vm629_vm3, %v9650_v49  ;;  %v465_v53 = vrot.slane %v298_v0, 5  ;;  %v337_v54 = vrot.slane %v299_v27, 1  ;;  %v406_v55 = vrot.slane %v299_v27, 7  ;;  %v9715_v57 = vsel %vm551_vm2, %v587_v22, %v588_v26 }
  0x2f   : > { %7988 = vmatprep.mubr.msk.f32.mxu0 %vm629_vm3, %v9660_v58  ;;  %12854 = vst [vmem:[#allocation14_spill] sm:$0xff] %v9715_v57  ;;  %v407_v60 = vrot.slane %v300_v39, 7  ;;  %v9722_v1 = vsel %vm551_vm2, %v588_v26, %v590_v33  ;;  %v595_v7 = vrot.slane %v9704_v46, 1  ;;  %v597_v9 = vrot.slane %v9707_v47, 1  ;;  %v303_v58 = vld [vmem:[%s9497_s10 + $0xc0] sm:$0xff] }
  0x30   : > { %12855 = vst [vmem:[#allocation15_spill] sm:$0xff] %v9722_v1  ;;  %v598_v0 = vrot.slane %v9712_v52, 1  ;;  %v9730_v10 = vsel %vm551_vm2, %v592_v40, %v593_v45  ;;  %v9733_v22 = vsel %vm375_vm1, %v404_v20, %v465_v53  ;;  %v9736_v27 = vsel %vm375_vm1, %v337_v54, %v406_v55 }
  0x31   : > { %12856 = vst [vmem:[#allocation16_spill] sm:$0xff] %v9730_v10  ;;  %v466_v26 = vrot.slane %v300_v39, 5  ;;  %v9739_v33 = vsel %vm375_vm1, %v406_v55, %v407_v60  ;;  %v9745_v40 = vsel %vm551_vm2, %v593_v45, %v595_v7  ;;  %v600_v53 = vrot.slane %v9733_v22, 1  ;;  %v304_v39 = vld [vmem:[%s9497_s10 + $0xc8] sm:$0xff] }
  0x32   : > { %7989 = vmatmul.mubr.msk.f32.gmra.mrb[12].mxu0 %vm629_vm3, %v9680_v13  ;;  %v410_v13 = vrot.slane %v302_v56, 7  ;;  %12857 = vst [vmem:[#allocation17_spill] sm:$0xff] %v9745_v40  ;;  %v9748_v20 = vsel %vm551_vm2, %v597_v9, %v598_v0  ;;  %v602_v54 = vrot.slane %v9736_v27, 1  ;;  %v603_v55 = vrot.slane %v9739_v33, 1 }
  0x33   : > { %7991 = vmatprep.mubr.msk.f32.mxu0 %vm629_vm3, %v9689_v21  ;;  %v409_v21 = vrot.slane %v301_v61, 7  ;;  %12858 = vst [vmem:[#allocation18_spill] sm:$0xff] %v9748_v20  ;;  %v339_v9 = vrot.slane %v303_v58, 1  ;;  %v413_v49 = vrot.slane %v304_v39, 7  ;;  %v415_v30 = vrot.slane %v305_v32, 7 }
  0x35   : > { %v9760_v45 = vsel %vm375_vm1, %v409_v21, %v410_v13 }
  0x36   : > { %7992 = vmatmul.mubr.msk.f32.gmra.mrb[14].mxu0 %vm629_vm3, %v9695_v31  ;;  %v338_v31 = vrot.slane %v301_v61, 1  ;;  %v9757_v61 = vsel %vm375_vm1, %v407_v60, %v466_v26 }
  0x37   : > { %7994 = vmatprep.mubr.msk.f32.mxu0 %vm629_vm3, %v9715_v57  ;;  %v412_v57 = vrot.slane %v303_v58, 7  ;;  %v605_v60 = vrot.slane %v9757_v61, 1 }
  0x38   : > { %v9763_v7 = vsel %vm375_vm1, %v338_v31, %v409_v21  ;;  %v9776_v21 = vsel %vm551_vm2, %v602_v54, %v603_v55  ;;  %v608_v31 = vrot.slane %v9760_v45, 1  ;;  %v307_v54 = vld [vmem:[%s9497_s10 + $0xe0] sm:$0xff] }
  0x39   : > { %12860 = vst [vmem:[#allocation20_spill] sm:$0xff] %v9776_v21  ;;  %v607_v58 = vrot.slane %v9763_v7, 1  ;;  %v9787_v8 = vsel %vm375_vm1, %v412_v57, %v413_v49 }
  0x3a   : > { %7995 = vmatmul.mubr.msk.f32.gmra.mrb[16].mxu0 %vm629_vm3, %v9722_v1  ;;  %v467_v1 = vrot.slane %v302_v56, 5  ;;  %v306_v56 = vld [vmem:[%s9497_s10 + $0xd8] sm:$0xff] }
  0x3b   : > { %7997 = vmatprep.mubr.msk.f32.mxu0 %vm629_vm3, %v9730_v10  ;;  %v9769_v10 = vsel %vm551_vm2, %v598_v0, %v600_v53  ;;  %v9784_v0 = vsel %vm375_vm1, %v339_v9, %v412_v57  ;;  %v468_v53 = vrot.slane %v304_v39, 5  ;;  %v613_v39 = vrot.slane %v9787_v8, 1 }
  0x3c   : > { %12859 = vst [vmem:[#allocation19_spill] sm:$0xff] %v9769_v10  ;;  %v9781_v26 = vsel %vm375_vm1, %v410_v13, %v467_v1  ;;  %v9796_v13 = vsel %vm551_vm2, %v603_v55, %v605_v60  ;;  %v9799_v1 = vsel %vm551_vm2, %v607_v58, %v608_v31  ;;  %v612_v57 = vrot.slane %v9784_v0, 1 }
  0x3d   : > { %12861 = vst [vmem:[#allocation21_spill] sm:$0xff] %v9796_v13  ;;  %12862 = vst [vmem:[#allocation22_spill] sm:$0xff] %v9799_v1  ;;  %v9805_v9 = vsel %vm375_vm1, %v413_v49, %v468_v53  ;;  %v469_v62 = vrot.slane %v306_v56, 5  ;;  %v341_v55 = vrot.slane %v307_v54, 1  ;;  %v418_v60 = vrot.slane %v307_v54, 7 }
  0x3e   : > { %7998 = vmatmul.mubr.msk.f32.gmra.mrb[18].mxu0 %vm629_vm3, %v9745_v40  ;;  %v340_v40 = vrot.slane %v305_v32, 1  ;;  %v610_v32 = vrot.slane %v9781_v26, 1  ;;  %v419_v58 = vrot.slane %v308_v5, 7  ;;  %v615_v49 = vrot.slane %v9805_v9, 1 }
  0x3f   : > { %8000 = vmatprep.mubr.msk.f32.mxu0 %vm629_vm3, %v9748_v20  ;;  %v416_v20 = vrot.slane %v306_v56, 7  ;;  %v9823_v56 = vsel %vm551_vm2, %v612_v57, %v613_v39  ;;  %v470_v54 = vrot.slane %v308_v5, 5 }
  0x40   : > { %v9818_v29 = vsel %vm551_vm2, %v608_v31, %v610_v32  ;;  %12863 = vst [vmem:[#allocation23_spill] sm:$0xff] %v9823_v56  ;;  %v9840_v31 = vsel %vm551_vm2, %v613_v39, %v615_v49  ;;  %v6861_v49 = vld [vmem:[%s12635_s1 + $0xc] sm:$0xf] }
  0x41   : > { %v9827_v53 = vsel %vm375_vm1, %v416_v20, %v469_v62  ;;  %v9849_v57 = vsel %vm375_vm1, %v419_v58, %v470_v54 }
  0x42   : > { %8001 = vmatmul.mubr.msk.f32.gmra.mrb[20].mxu0 %vm629_vm3, %v9769_v10  ;;  %v9808_v10 = vsel %vm375_vm1, %v340_v40, %v415_v30  ;;  %v620_v32 = vrot.slane %v9827_v53, 1 }
  0x43   : > { %8003 = vmatprep.mubr.msk.f32.mxu0 %vm629_vm3, %v9776_v21  ;;  %v9811_v21 = vsel %vm375_vm1, %v415_v30, %v416_v20  ;;  %v617_v40 = vrot.slane %v9808_v10, 1 }
  0x44   : > { %v618_v30 = vrot.slane %v9811_v21, 1 }
  0x46   : > { %8004 = vmatmul.mubr.msk.f32.gmra.mrb[22].mxu0 %vm629_vm3, %v9796_v13  ;;  %v9830_v13 = vsel %vm375_vm1, %v418_v60, %v419_v58  ;;  %v9844_v62 = vsel %vm551_vm2, %v617_v40, %v618_v30  ;;  %v9856_v39 = vsel %vm551_vm2, %v618_v30, %v620_v32  ;;  %v1209_v40 = vrot.slane %v9505_v15, 2 }
  0x47   : > { %8006 = vmatprep.mubr.msk.f32.mxu0 %vm629_vm3, %v9799_v1  ;;  %v9833_v1 = vsel %vm375_vm1, %v341_v55, %v418_v60  ;;  %12864 = vst [vmem:[#allocation24_spill] sm:$0xff] %v9844_v62  ;;  %v623_v20 = vrot.slane %v9830_v13, 1  ;;  %v625_v55 = vrot.slane %v9849_v57, 1  ;;  %v1211_v30 = vrot.slane %v9511_v17, 2 }
  0x48   : > { %v622_v5 = vrot.slane %v9833_v1, 1  ;;  %v1213_v32 = vrot.slane %v9521_v24, 2  ;;  %v1216_v17 = vrot.slane %v9524_v25, 2  ;;  %v1218_v25 = vrot.slane %v9540_v35, 2 }
  0x49   : > { %v9867_v58 = vsel %vm551_vm2, %v623_v20, %v625_v55 }
  0x4a   : > { %8007 = vmatmul.mubr.msk.f32.gmra.mrb[24].mxu0 %vm629_vm3, %v9818_v29  ;;  %v9860_v60 = vsel %vm551_vm2, %v622_v5, %v623_v20  ;;  %12865 = vst [vmem:[#allocation25_spill] sm:$0xff] %v9867_v58  ;;  %v1214_v5 = vrot.slane %v9518_v23, 2  ;;  %v9952_v20 = vsel %vm1207_vm4, %v1209_v40, %v1211_v30  ;;  %v1219_v30 = vrot.slane %v9560_v43, 2 }
  0x4b   : > { %8009 = vmatprep.mubr.msk.f32.mxu0 %vm629_vm3, %v9823_v56 }
  0x4c   : > { %v9956_v55 = vsel %vm1207_vm4, %v1213_v32, %v1214_v5  ;;  %v9981_v32 = vsel %vm1207_vm4, %v1218_v25, %v1219_v30  ;;  %v1228_v25 = vrot.slane %v9592_v63, 2 }
  0x4d   : > { %12867 = vst [vmem:[#allocation27_spill] sm:$0xff] %v9956_v55  ;;  %12869 = vst [vmem:[#allocation29_spill] sm:$0xff] %v9981_v32 }
  0x4e   : > { %8010 = vmatmul.mubr.msk.f32.gmra.mrb[26].mxu0 %vm629_vm3, %v9840_v31 }
  0x4f   : > { %8012 = vmatprep.mubr.msk.f32.mxu0 %vm629_vm3, %v9844_v62 }
  0x52   : > { %8013 = vmatmul.mubr.msk.f32.gmra.mrb[28].mxu0 %vm629_vm3, %v9856_v39 }
  0x53   : > { %8015 = vmatprep.mubr.msk.f32.mxu0 %vm629_vm3, %v9860_v60 }
  0x56   : > { %8016 = vmatmul.mubr.msk.f32.gmra.mrb[30].mxu0 %vm629_vm3, %v9867_v58 }
  0x57   : > { %8020 = vmatprep.mubr.msk.f32.mxu0 %vm629_vm3, %v9508_v16 }
  0x5a   : > { %8021 = vmatmul.mubr.msk.f32.vlgmr.msra.gmra.mrb[0].mxu0 %vm629_vm3, %v9505_v15 }
  0x5b   : > { %8069 = vmatpush3.msk.msra.mxu0 %vm690_vm0, %v9545_v37  ;;  %8023 = vmatprep.mubr.msk.f32.mxu0 %vm629_vm3, %v9521_v24  ;;  %v1208_v37 = vrot.slane %v9508_v16, 2 }
  0x5c   : > { %8118 = vmatprep.subr.msk.mxu0 %vm690_vm0, %v6861_v49 }
  0x5d   : > { %v9943_v54 = vsel %vm1207_vm4, %v1208_v37, %v1209_v40  ;;  %v9961_v37 = vld [vmem:[%s12635_s1 + $0x10] sm:$0xf]  ;;  %v9969_v40 = vsel %vm1207_vm4, %v1214_v5, %v1216_v17  ;;  %v1223_v5 = vrot.slane %v9568_v48, 2  ;;  %v1224_v17 = vrot.slane %v9574_v51, 2 }
  0x5e   : > { %8024 = vmatmul.mubr.msk.f32.gmra.mrb[2].mxu0 %vm629_vm3, %v9518_v23  ;;  %12866 = vst [vmem:[#allocation26_spill] sm:$0xff] %v9943_v54  ;;  %12868 = vst [vmem:[#allocation28_spill] sm:$0xff] %v9969_v40 }
  0x5f   : > { %8026 = vmatprep.mubr.msk.f32.mxu0 %vm629_vm3, %v9508_v16 }
  0x62   : > { %8027 = vmatmul.mubr.msk.f32.gmra.mrb[4].mxu0 %vm629_vm3, %v9505_v15 }
  0x63   : > { %8029 = vmatprep.mubr.msk.f32.mxu0 %vm629_vm3, %v9540_v35 }
  0x66   : > { %8030 = vmatmul.mubr.msk.f32.gmra.mrb[6].mxu0 %vm629_vm3, %v9560_v43 }
  0x67   : > { %8032 = vmatprep.mubr.msk.f32.mxu0 %vm629_vm3, %v9568_v48 }
  0x6a   : > { %8033 = vmatmul.mubr.msk.f32.gmra.mrb[8].mxu0 %vm629_vm3, %v9574_v51 }
  0x6b   : > { %8035 = vmatprep.mubr.msk.f32.mxu0 %vm629_vm3, %v9592_v63 }
  0x6e   : > { %8036 = vmatmul.mubr.msk.f32.gmra.mrb[10].mxu0 %vm629_vm3, %v9595_v2 }
  0x6f   : > { %8038 = vmatprep.mubr.msk.f32.mxu0 %vm629_vm3, %v9616_v12 }
  0x72   : > { %8039 = vmatmul.mubr.msk.f32.gmra.mrb[12].mxu0 %vm629_vm3, %v9619_v19 }
  0x73   : > { %8041 = vmatprep.mubr.msk.f32.mxu0 %vm629_vm3, %v9640_v36 }
  0x76   : > { %8042 = vmatmul.mubr.msk.f32.gmra.mrb[14].mxu0 %vm629_vm3, %v9645_v41 }
  0x77   : > { %8044 = vmatprep.mubr.msk.f32.mxu0 %vm629_vm3, %v9670_v4 }
  0x7a   : > { %8045 = vmatmul.mubr.msk.f32.gmra.mrb[16].mxu0 %vm629_vm3, %v9667_v3 }
  0x7b   : > { %8047 = vmatprep.mubr.msk.f32.mxu0 %vm629_vm3, %v9686_v18 }
  0x7e   : > { %8048 = vmatmul.mubr.msk.f32.gmra.mrb[18].mxu0 %vm629_vm3, %v9683_v14 }
  0x7f   : > { %8050 = vmatprep.mubr.msk.f32.mxu0 %vm629_vm3, %v9707_v47 }
  0x82   : > { %8051 = vmatmul.mubr.msk.f32.gmra.mrb[20].mxu0 %vm629_vm3, %v9712_v52 }
  0x83   : > { %8053 = vmatprep.mubr.msk.f32.mxu0 %vm629_vm3, %v9736_v27 }
  0x86   : > { %8054 = vmatmul.mubr.msk.f32.gmra.mrb[22].mxu0 %vm629_vm3, %v9739_v33 }
  0x87   : > { %8056 = vmatprep.mubr.msk.f32.mxu0 %vm629_vm3, %v9763_v7 }
  0x8a   : > { %8057 = vmatmul.mubr.msk.f32.gmra.mrb[24].mxu0 %vm629_vm3, %v9760_v45 }
  0x8b   : > { %8059 = vmatprep.mubr.msk.f32.mxu0 %vm629_vm3, %v9784_v0 }
  0x8e   : > { %8060 = vmatmul.mubr.msk.f32.gmra.mrb[26].mxu0 %vm629_vm3, %v9787_v8 }
  0x8f   : > { %8062 = vmatprep.mubr.msk.f32.mxu0 %vm629_vm3, %v9808_v10 }
  0x92   : > { %8063 = vmatmul.mubr.msk.f32.gmra.mrb[28].mxu0 %vm629_vm3, %v9811_v21 }
  0x93   : > { %8065 = vmatprep.mubr.msk.f32.mxu0 %vm629_vm3, %v9833_v1 }
  0x96   : > { %8066 = vmatmul.mubr.msk.f32.gmra.mrb[30].mxu0 %vm629_vm3, %v9830_v13 }
  0x97   : > { %8070 = vmatprep.mubr.msk.f32.mxu0 %vm629_vm3, %v9943_v54 }
  0x9a   : > { %8071 = vmatmul.mubr.msk.f32.vlgmr.msra.gmra.mrb[0].mxu0 %vm629_vm3, %v9952_v20 }
  0x9b   : > { %8119 = vmatpush3.msk.msra.mxu0 %vm690_vm0, %v6861_v49  ;;  %8073 = vmatprep.mubr.msk.f32.mxu0 %vm629_vm3, %v9956_v55  ;;  %v1221_v49 = vrot.slane %v9563_v44, 2  ;;  %v9994_v44 = vsel %vm1207_vm4, %v1223_v5, %v1224_v17  ;;  %v1229_v55 = vrot.slane %v9595_v2, 2  ;;  %v1234_v5 = vrot.slane %v9619_v19, 2 }
  0x9c   : > { %8168 = vmatprep.subr.msk.mxu0 %vm690_vm0, %v9961_v37  ;;  %12870 = vst [vmem:[#allocation30_spill] sm:$0xff] %v9994_v44 }
  0x9e   : > { %8074 = vmatmul.mubr.msk.f32.gmra.mrb[2].mxu0 %vm629_vm3, %v9969_v40  ;;  %v9990_v40 = vsel %vm1207_vm4, %v1219_v30, %v1221_v49  ;;  %v1231_v30 = vrot.slane %v9613_v11, 2  ;;  %v1233_v49 = vrot.slane %v9616_v12, 2 }
  0x9f   : > { %8076 = vmatprep.mubr.msk.f32.mxu0 %vm629_vm3, %v9943_v54  ;;  %v1226_v54 = vrot.slane %v9586_v59, 2  ;;  %v10007_v59 = vsel %vm1207_vm4, %v1228_v25, %v1229_v55  ;;  %v1239_v25 = vrot.slane %v9645_v41, 2 }
  0xa0   : > { %12871 = vst [vmem:[#allocation31_spill] sm:$0xff] %v10007_v59  ;;  %v10020_v11 = vsel %vm1207_vm4, %v1233_v49, %v1234_v5  ;;  %v1244_v49 = vrot.slane %v9667_v3, 2 }
  0xa1   : > { %12872 = vst [vmem:[#allocation32_spill] sm:$0xff] %v10020_v11 }
  0xa2   : > { %8077 = vmatmul.mubr.msk.f32.gmra.mrb[4].mxu0 %vm629_vm3, %v9952_v20 }
  0xa3   : > { %8079 = vmatprep.mubr.msk.f32.mxu0 %vm629_vm3, %v9981_v32  ;;  %v10003_v32 = vsel %vm1207_vm4, %v1224_v17, %v1226_v54  ;;  %v1236_v54 = vrot.slane %v9637_v34, 2  ;;  %v1238_v17 = vrot.slane %v9640_v36, 2 }
  0xa5   : > { %v10033_v34 = vsel %vm1207_vm4, %v1238_v17, %v1239_v25  ;;  %v1249_v17 = vrot.slane %v9683_v14, 2 }
  0xa6   : > { %8080 = vmatmul.mubr.msk.f32.gmra.mrb[6].mxu0 %vm629_vm3, %v9990_v40  ;;  %12873 = vst [vmem:[#allocation33_spill] sm:$0xff] %v10033_v34 }
  0xa7   : > { %8082 = vmatprep.mubr.msk.f32.mxu0 %vm629_vm3, %v9994_v44  ;;  %v10016_v44 = vsel %vm1207_vm4, %v1229_v55, %v1231_v30  ;;  %v1241_v55 = vrot.slane %v9653_v50, 2  ;;  %v1243_v30 = vrot.slane %v9670_v4, 2 }
  0xa9   : > { %v10046_v50 = vsel %vm1207_vm4, %v1243_v30, %v1244_v49  ;;  %v1254_v30 = vrot.slane %v9712_v52, 2 }
  0xaa   : > { %8083 = vmatmul.mubr.msk.f32.gmra.mrb[8].mxu0 %vm629_vm3, %v10003_v32  ;;  %12874 = vst [vmem:[#allocation34_spill] sm:$0xff] %v10046_v50 }
  0xab   : > { %8085 = vmatprep.mubr.msk.f32.mxu0 %vm629_vm3, %v10007_v59  ;;  %v10029_v59 = vsel %vm1207_vm4, %v1234_v5, %v1236_v54  ;;  %v1246_v5 = vrot.slane %v9675_v6, 2  ;;  %v1248_v54 = vrot.slane %v9686_v18, 2 }
  0xad   : > { %v10059_v6 = vsel %vm1207_vm4, %v1248_v54, %v1249_v17  ;;  %v1259_v54 = vrot.slane %v9739_v33, 2 }
  0xae   : > { %8086 = vmatmul.mubr.msk.f32.gmra.mrb[10].mxu0 %vm629_vm3, %v10016_v44  ;;  %12875 = vst [vmem:[#allocation35_spill] sm:$0xff] %v10059_v6 }
  0xaf   : > { %8088 = vmatprep.mubr.msk.f32.mxu0 %vm629_vm3, %v10020_v11  ;;  %v10042_v11 = vsel %vm1207_vm4, %v1239_v25, %v1241_v55  ;;  %v1251_v25 = vrot.slane %v9704_v46, 2  ;;  %v1253_v55 = vrot.slane %v9707_v47, 2 }
  0xb1   : > { %v10072_v46 = vsel %vm1207_vm4, %v1253_v55, %v1254_v30  ;;  %v1264_v55 = vrot.slane %v9760_v45, 2 }
  0xb2   : > { %8089 = vmatmul.mubr.msk.f32.gmra.mrb[12].mxu0 %vm629_vm3, %v10029_v59  ;;  %12876 = vst [vmem:[#allocation36_spill] sm:$0xff] %v10072_v46 }
  0xb3   : > { %8091 = vmatprep.mubr.msk.f32.mxu0 %vm629_vm3, %v10033_v34  ;;  %v10055_v34 = vsel %vm1207_vm4, %v1244_v49, %v1246_v5  ;;  %v1256_v49 = vrot.slane %v9733_v22, 2  ;;  %v1258_v5 = vrot.slane %v9736_v27, 2 }
  0xb5   : > { %v10085_v22 = vsel %vm1207_vm4, %v1258_v5, %v1259_v54  ;;  %v1269_v5 = vrot.slane %v9787_v8, 2 }
  0xb6   : > { %8092 = vmatmul.mubr.msk.f32.gmra.mrb[14].mxu0 %vm629_vm3, %v10042_v11  ;;  %12878 = vst [vmem:[#allocation38_spill] sm:$0xff] %v10085_v22 }
  0xb7   : > { %8094 = vmatprep.mubr.msk.f32.mxu0 %vm629_vm3, %v10046_v50  ;;  %v10068_v50 = vsel %vm1207_vm4, %v1249_v17, %v1251_v25  ;;  %v1261_v17 = vrot.slane %v9757_v61, 2  ;;  %v1263_v25 = vrot.slane %v9763_v7, 2 }
  0xb9   : > { %v10098_v61 = vsel %vm1207_vm4, %v1263_v25, %v1264_v55  ;;  %v1274_v25 = vrot.slane %v9811_v21, 2 }
  0xba   : > { %8095 = vmatmul.mubr.msk.f32.gmra.mrb[16].mxu0 %vm629_vm3, %v10055_v34  ;;  %12879 = vst [vmem:[#allocation39_spill] sm:$0xff] %v10098_v61 }
  0xbb   : > { %8097 = vmatprep.mubr.msk.f32.mxu0 %vm629_vm3, %v10059_v6  ;;  %v10081_v6 = vsel %vm1207_vm4, %v1254_v30, %v1256_v49  ;;  %v1266_v30 = vrot.slane %v9781_v26, 2  ;;  %v1268_v49 = vrot.slane %v9784_v0, 2 }
  0xbc   : > { %12877 = vst [vmem:[#allocation37_spill] sm:$0xff] %v10081_v6 }
  0xbd   : > { %v10111_v26 = vsel %vm1207_vm4, %v1268_v49, %v1269_v5  ;;  %v1279_v49 = vrot.slane %v9830_v13, 2 }
  0xbe   : > { %8098 = vmatmul.mubr.msk.f32.gmra.mrb[18].mxu0 %vm629_vm3, %v10068_v50  ;;  %12881 = vst [vmem:[#allocation41_spill] sm:$0xff] %v10111_v26 }
  0xbf   : > { %8100 = vmatprep.mubr.msk.f32.mxu0 %vm629_vm3, %v10072_v46  ;;  %v10094_v46 = vsel %vm1207_vm4, %v1259_v54, %v1261_v17  ;;  %v1271_v54 = vrot.slane %v9805_v9, 2  ;;  %v1273_v17 = vrot.slane %v9808_v10, 2 }
  0xc1   : > { %v10124_v9 = vsel %vm1207_vm4, %v1273_v17, %v1274_v25  ;;  %v310_v17 = vld [vmem:[%s9497_s10 + $0xf8] sm:$0xff] }
  0xc2   : > { %8101 = vmatmul.mubr.msk.f32.gmra.mrb[20].mxu0 %vm629_vm3, %v10081_v6  ;;  %12882 = vst [vmem:[#allocation42_spill] sm:$0xff] %v10124_v9 }
  0xc3   : > { %8103 = vmatprep.mubr.msk.f32.mxu0 %vm629_vm3, %v10085_v22  ;;  %v10107_v22 = vsel %vm1207_vm4, %v1264_v55, %v1266_v30  ;;  %v1276_v55 = vrot.slane %v9827_v53, 2  ;;  %v1278_v30 = vrot.slane %v9833_v1, 2 }
  0xc4   : > { %12880 = vst [vmem:[#allocation40_spill] sm:$0xff] %v10107_v22 }
  0xc5   : > { %v10137_v53 = vsel %vm1207_vm4, %v1278_v30, %v1279_v49 }
  0xc6   : > { %8104 = vmatmul.mubr.msk.f32.gmra.mrb[22].mxu0 %vm629_vm3, %v10094_v46 }
  0xc7   : > { %8106 = vmatprep.mubr.msk.f32.mxu0 %vm629_vm3, %v10098_v61  ;;  %v10120_v61 = vsel %vm1207_vm4, %v1269_v5, %v1271_v54  ;;  %v1281_v5 = vrot.slane %v9849_v57, 2  ;;  %v6929_v57 = vld [vmem:[%s12635_s1 + $0x14] sm:$0xf] }
  0xc9   : > { %v10144_v54 = vsel %vm1207_vm4, %v1279_v49, %v1281_v5  ;;  %v6963_v49 = vld [vmem:[%s12635_s1 + $0x18] sm:$0xf]  ;;  %v12883_v5 = vld [vmem:[#allocation3_spill] sm:$0xff] }
  0xca   : > { %8107 = vmatmul.mubr.msk.f32.gmra.mrb[24].mxu0 %vm629_vm3, %v10107_v22 }
  0xcb   : > { %8109 = vmatprep.mubr.msk.f32.mxu0 %vm629_vm3, %v10111_v26  ;;  %v10133_v26 = vsel %vm1207_vm4, %v1274_v25, %v1276_v55  ;;  %v422_v25 = vrot.slane %v310_v17, 7 }
  0xce   : > { %8110 = vmatmul.mubr.msk.f32.gmra.mrb[26].mxu0 %vm629_vm3, %v10120_v61 }
  0xcf   : > { %8112 = vmatprep.mubr.msk.f32.mxu0 %vm629_vm3, %v10124_v9 }
  0xd2   : > { %8113 = vmatmul.mubr.msk.f32.gmra.mrb[28].mxu0 %vm629_vm3, %v10133_v26 }
  0xd3   : > { %8115 = vmatprep.mubr.msk.f32.mxu0 %vm629_vm3, %v10137_v53 }
  0xd6   : > { %8116 = vmatmul.mubr.msk.f32.gmra.mrb[30].mxu0 %vm629_vm3, %v10144_v54 }
  0xd7   : > { %8120 = vmatprep.mubr.msk.f32.mxu0 %vm629_vm3, %v9521_v24 }
  0xda   : > { %8121 = vmatmul.mubr.msk.f32.vlgmr.msra.gmra.mrb[0].mxu0 %vm629_vm3, %v9518_v23  ;;  %v309_v23 = vld [vmem:[%s9497_s10 + $0xf0] sm:$0xff] }
  0xdb   : > { %8169 = vmatpush3.msk.msra.mxu0 %vm690_vm0, %v9961_v37  ;;  %8123 = vmatprep.mubr.msk.f32.mxu0 %vm629_vm3, %v9508_v16  ;;  %v342_v24 = vrot.slane %v309_v23, 1  ;;  %v421_v37 = vrot.slane %v309_v23, 7  ;;  %v12884_v23 = vld [vmem:[#allocation4_spill] sm:$0xff] }
  0xdc   : > { %8218 = vmatprep.subr.msk.mxu0 %vm690_vm0, %v6929_v57 }
  0xdd   : > { %v10215_v55 = vsel %vm375_vm1, %v342_v24, %v421_v37  ;;  %v10222_v30 = vsel %vm375_vm1, %v421_v37, %v422_v25  ;;  %v12886_v24 = vld [vmem:[#allocation6_spill] sm:$0xff]  ;;  %v12889_v37 = vld [vmem:[#allocation9_spill] sm:$0xff] }
  0xde   : > { %8124 = vmatmul.mubr.msk.f32.gmra.mrb[2].mxu0 %vm629_vm3, %v9505_v15 }
  0xdf   : > { %8126 = vmatprep.mubr.msk.f32.mxu0 %vm629_vm3, %v9540_v35 }
  0xe2   : > { %8127 = vmatmul.mubr.msk.f32.gmra.mrb[4].mxu0 %vm629_vm3, %v9560_v43 }
  0xe3   : > { %8129 = vmatprep.mubr.msk.f32.mxu0 %vm629_vm3, %v9568_v48 }
  0xe6   : > { %8130 = vmatmul.mubr.msk.f32.gmra.mrb[6].mxu0 %vm629_vm3, %v9574_v51 }
  0xe7   : > { %8132 = vmatprep.mubr.msk.f32.mxu0 %vm629_vm3, %v9592_v63 }
  0xea   : > { %8133 = vmatmul.mubr.msk.f32.gmra.mrb[8].mxu0 %vm629_vm3, %v9595_v2 }
  0xeb   : > { %8135 = vmatprep.mubr.msk.f32.mxu0 %vm629_vm3, %v9616_v12 }
  0xee   : > { %8136 = vmatmul.mubr.msk.f32.gmra.mrb[10].mxu0 %vm629_vm3, %v9619_v19 }
  0xef   : > { %8138 = vmatprep.mubr.msk.f32.mxu0 %vm629_vm3, %v9640_v36 }
  0xf2   : > { %8139 = vmatmul.mubr.msk.f32.gmra.mrb[12].mxu0 %vm629_vm3, %v9645_v41 }
  0xf3   : > { %8141 = vmatprep.mubr.msk.f32.mxu0 %vm629_vm3, %v9670_v4 }
  0xf6   : > { %8142 = vmatmul.mubr.msk.f32.gmra.mrb[14].mxu0 %vm629_vm3, %v9667_v3 }
  0xf7   : > { %8144 = vmatprep.mubr.msk.f32.mxu0 %vm629_vm3, %v9686_v18 }
  0xfa   : > { %8145 = vmatmul.mubr.msk.f32.gmra.mrb[16].mxu0 %vm629_vm3, %v9683_v14 }
  0xfb   : > { %8147 = vmatprep.mubr.msk.f32.mxu0 %vm629_vm3, %v9707_v47 }
  0xfe   : > { %8148 = vmatmul.mubr.msk.f32.gmra.mrb[18].mxu0 %vm629_vm3, %v9712_v52 }
  0xff   : > { %8150 = vmatprep.mubr.msk.f32.mxu0 %vm629_vm3, %v9736_v27 }
 0x102   : > { %8151 = vmatmul.mubr.msk.f32.gmra.mrb[20].mxu0 %vm629_vm3, %v9739_v33 }
 0x103   : > { %8153 = vmatprep.mubr.msk.f32.mxu0 %vm629_vm3, %v9763_v7 }
 0x106   : > { %8154 = vmatmul.mubr.msk.f32.gmra.mrb[22].mxu0 %vm629_vm3, %v9760_v45 }
 0x107   : > { %8156 = vmatprep.mubr.msk.f32.mxu0 %vm629_vm3, %v9784_v0 }
 0x10a   : > { %8157 = vmatmul.mubr.msk.f32.gmra.mrb[24].mxu0 %vm629_vm3, %v9787_v8 }
 0x10b   : > { %8159 = vmatprep.mubr.msk.f32.mxu0 %vm629_vm3, %v9808_v10 }
 0x10e   : > { %8160 = vmatmul.mubr.msk.f32.gmra.mrb[26].mxu0 %vm629_vm3, %v9811_v21 }
 0x10f   : > { %8162 = vmatprep.mubr.msk.f32.mxu0 %vm629_vm3, %v9833_v1 }
 0x112   : > { %8163 = vmatmul.mubr.msk.f32.gmra.mrb[28].mxu0 %vm629_vm3, %v9830_v13 }
 0x113   : > { %8165 = vmatprep.mubr.msk.f32.mxu0 %vm629_vm3, %v10215_v55 }
 0x116   : > { %8166 = vmatmul.mubr.msk.f32.gmra.mrb[30].mxu0 %vm629_vm3, %v10222_v30 }
 0x117   : > { %8170 = vmatprep.mubr.msk.f32.mxu0 %vm629_vm3, %v9550_v38  ;;  %v12885_v38 = vld [vmem:[#allocation5_spill] sm:$0xff] }
 0x11a   : > { %8171 = vmatmul.mubr.msk.f32.vlgmr.msra.gmra.mrb[0].mxu0 %vm629_vm3, %v9557_v42  ;;  %v12887_v42 = vld [vmem:[#allocation7_spill] sm:$0xff] }
 0x11b   : > { %8219 = vmatpush3.msk.msra.mxu0 %vm690_vm0, %v6929_v57  ;;  %8173 = vmatprep.mubr.msk.f32.mxu0 %vm629_vm3, %v9528_v28  ;;  %v12888_v57 = vld [vmem:[#allocation8_spill] sm:$0xff]  ;;  %v12890_v28 = vld [vmem:[#allocation10_spill] sm:$0xff] }
 0x11c   : > { %8268 = vmatprep.subr.msk.mxu0 %vm690_vm0, %v6963_v49 }
 0x11e   : > { %8174 = vmatmul.mubr.msk.f32.gmra.mrb[2].mxu0 %vm629_vm3, %v12883_v5  ;;  %v12891_v5 = vld [vmem:[#allocation11_spill] sm:$0xff] }
 0x11f   : > { %8176 = vmatprep.mubr.msk.f32.mxu0 %vm629_vm3, %v12884_v23  ;;  %v12892_v23 = vld [vmem:[#allocation12_spill] sm:$0xff] }
 0x122   : > { %8177 = vmatmul.mubr.msk.f32.gmra.mrb[4].mxu0 %vm629_vm3, %v12885_v38  ;;  %v12893_v38 = vld [vmem:[#allocation13_spill] sm:$0xff] }
 0x123   : > { %8179 = vmatprep.mubr.msk.f32.mxu0 %vm629_vm3, %v12886_v24  ;;  %v12894_v24 = vld [vmem:[#allocation14_spill] sm:$0xff] }
 0x126   : > { %8180 = vmatmul.mubr.msk.f32.gmra.mrb[6].mxu0 %vm629_vm3, %v12887_v42  ;;  %v12895_v42 = vld [vmem:[#allocation15_spill] sm:$0xff] }
 0x127   : > { %8182 = vmatprep.mubr.msk.f32.mxu0 %vm629_vm3, %v12888_v57  ;;  %v12896_v57 = vld [vmem:[#allocation16_spill] sm:$0xff] }
 0x12a   : > { %8183 = vmatmul.mubr.msk.f32.gmra.mrb[8].mxu0 %vm629_vm3, %v12889_v37  ;;  %v12897_v37 = vld [vmem:[#allocation17_spill] sm:$0xff] }
 0x12b   : > { %8185 = vmatprep.mubr.msk.f32.mxu0 %vm629_vm3, %v12890_v28  ;;  %v12898_v28 = vld [vmem:[#allocation18_spill] sm:$0xff] }
 0x12e   : > { %8186 = vmatmul.mubr.msk.f32.gmra.mrb[10].mxu0 %vm629_vm3, %v12891_v5  ;;  %v12899_v5 = vld [vmem:[#allocation19_spill] sm:$0xff] }
 0x12f   : > { %8188 = vmatprep.mubr.msk.f32.mxu0 %vm629_vm3, %v12892_v23  ;;  %v12900_v23 = vld [vmem:[#allocation20_spill] sm:$0xff] }
 0x132   : > { %8189 = vmatmul.mubr.msk.f32.gmra.mrb[12].mxu0 %vm629_vm3, %v12893_v38  ;;  %v12901_v38 = vld [vmem:[#allocation21_spill] sm:$0xff] }
 0x133   : > { %8191 = vmatprep.mubr.msk.f32.mxu0 %vm629_vm3, %v12894_v24  ;;  %v12902_v24 = vld [vmem:[#allocation22_spill] sm:$0xff] }
 0x136   : > { %8192 = vmatmul.mubr.msk.f32.gmra.mrb[14].mxu0 %vm629_vm3, %v12895_v42 }
 0x137   : > { %8194 = vmatprep.mubr.msk.f32.mxu0 %vm629_vm3, %v12896_v57 }
 0x13a   : > { %8195 = vmatmul.mubr.msk.f32.gmra.mrb[16].mxu0 %vm629_vm3, %v12897_v37  ;;  %v471_v37 = vrot.slane %v310_v17, 5 }
 0x13b   : > { %8197 = vmatprep.mubr.msk.f32.mxu0 %vm629_vm3, %v12898_v28 }
 0x13e   : > { %8198 = vmatmul.mubr.msk.f32.gmra.mrb[18].mxu0 %vm629_vm3, %v12899_v5  ;;  %v519_v5 = vsel %vm375_vm1, %v422_v25, %v471_v37  ;;  %v12903_v25 = vld [vmem:[#allocation27_spill] sm:$0xff]  ;;  %v12904_v37 = vld [vmem:[#allocation28_spill] sm:$0xff] }
 0x13f   : > { %8200 = vmatprep.mubr.msk.f32.mxu0 %vm629_vm3, %v12900_v23  ;;  %v1873_v23 = vrot.slane %v10215_v55, 1 }
 0x142   : > { %8201 = vmatmul.mubr.msk.f32.gmra.mrb[20].mxu0 %vm629_vm3, %v12901_v38  ;;  %v1874_v38 = vrot.slane %v10222_v30, 1 }
 0x143   : > { %8203 = vmatprep.mubr.msk.f32.mxu0 %vm629_vm3, %v12902_v24 }
 0x144   : > { %v10293_v17 = vsel %vm551_vm2, %v1873_v23, %v1874_v38  ;;  %v6997_v23 = vld [vmem:[%s12635_s1 + $0x1c] sm:$0xf] }
 0x146   : > { %8204 = vmatmul.mubr.msk.f32.gmra.mrb[22].mxu0 %vm629_vm3, %v9818_v29 }
 0x147   : > { %8206 = vmatprep.mubr.msk.f32.mxu0 %vm629_vm3, %v9823_v56  ;;  %v1876_v56 = vrot.slane %v519_v5, 1 }
 0x14a   : > { %8207 = vmatmul.mubr.msk.f32.gmra.mrb[24].mxu0 %vm629_vm3, %v9840_v31 }
 0x14b   : > { %8209 = vmatprep.mubr.msk.f32.mxu0 %vm629_vm3, %v9844_v62  ;;  %v10300_v62 = vsel %vm551_vm2, %v1874_v38, %v1876_v56  ;;  %v12906_v56 = vld [vmem:[#allocation29_spill] sm:$0xff]  ;;  %v12907_v38 = vld [vmem:[#allocation30_spill] sm:$0xff] }
 0x14e   : > { %8210 = vmatmul.mubr.msk.f32.gmra.mrb[26].mxu0 %vm629_vm3, %v9856_v39 }
 0x14f   : > { %8212 = vmatprep.mubr.msk.f32.mxu0 %vm629_vm3, %v9860_v60 }
 0x152   : > { %8213 = vmatmul.mubr.msk.f32.gmra.mrb[28].mxu0 %vm629_vm3, %v9867_v58  ;;  %v12905_v58 = vld [vmem:[#allocation26_spill] sm:$0xff] }
 0x153   : > { %8215 = vmatprep.mubr.msk.f32.mxu0 %vm629_vm3, %v10293_v17 }
 0x156   : > { %8216 = vmatmul.mubr.msk.f32.gmra.mrb[30].mxu0 %vm629_vm3, %v10300_v62 }
 0x157   : > { %8220 = vmatprep.mubr.msk.f32.mxu0 %vm629_vm3, %v12903_v25  ;;  %v12909_v25 = vld [vmem:[#allocation32_spill] sm:$0xff] }
 0x15a   : > { %8221 = vmatmul.mubr.msk.f32.vlgmr.msra.gmra.mrb[0].mxu0 %vm629_vm3, %v12904_v37  ;;  %v12910_v37 = vld [vmem:[#allocation33_spill] sm:$0xff] }
 0x15b   : > { %8269 = vmatpush3.msk.msra.mxu0 %vm690_vm0, %v6963_v49  ;;  %8223 = vmatprep.mubr.msk.f32.mxu0 %vm629_vm3, %v12905_v58  ;;  %v12908_v49 = vld [vmem:[#allocation31_spill] sm:$0xff] }
 0x15c   : > { %8318 = vmatprep.subr.msk.mxu0 %vm690_vm0, %v6997_v23 }
 0x15e   : > { %8224 = vmatmul.mubr.msk.f32.gmra.mrb[2].mxu0 %vm629_vm3, %v9952_v20 }
 0x15f   : > { %8226 = vmatprep.mubr.msk.f32.mxu0 %vm629_vm3, %v12906_v56 }
 0x162   : > { %8227 = vmatmul.mubr.msk.f32.gmra.mrb[4].mxu0 %vm629_vm3, %v9990_v40 }
 0x163   : > { %8229 = vmatprep.mubr.msk.f32.mxu0 %vm629_vm3, %v12907_v38  ;;  %v12911_v38 = vld [vmem:[#allocation34_spill] sm:$0xff] }
 0x166   : > { %8230 = vmatmul.mubr.msk.f32.gmra.mrb[6].mxu0 %vm629_vm3, %v10003_v32 }
 0x167   : > { %8232 = vmatprep.mubr.msk.f32.mxu0 %vm629_vm3, %v12908_v49  ;;  %v12912_v49 = vld [vmem:[#allocation35_spill] sm:$0xff] }
 0x16a   : > { %8233 = vmatmul.mubr.msk.f32.gmra.mrb[8].mxu0 %vm629_vm3, %v10016_v44 }
 0x16b   : > { %8235 = vmatprep.mubr.msk.f32.mxu0 %vm629_vm3, %v12909_v25  ;;  %v12913_v25 = vld [vmem:[#allocation36_spill] sm:$0xff] }
 0x16e   : > { %8236 = vmatmul.mubr.msk.f32.gmra.mrb[10].mxu0 %vm629_vm3, %v10029_v59 }
 0x16f   : > { %8238 = vmatprep.mubr.msk.f32.mxu0 %vm629_vm3, %v12910_v37  ;;  %v12914_v37 = vld [vmem:[#allocation38_spill] sm:$0xff] }
 0x172   : > { %8239 = vmatmul.mubr.msk.f32.gmra.mrb[12].mxu0 %vm629_vm3, %v10042_v11 }
 0x173   : > { %8241 = vmatprep.mubr.msk.f32.mxu0 %vm629_vm3, %v12911_v38  ;;  %v12915_v38 = vld [vmem:[#allocation39_spill] sm:$0xff] }
 0x176   : > { %8242 = vmatmul.mubr.msk.f32.gmra.mrb[14].mxu0 %vm629_vm3, %v10055_v34 }
 0x177   : > { %8244 = vmatprep.mubr.msk.f32.mxu0 %vm629_vm3, %v12912_v49  ;;  %v12916_v49 = vld [vmem:[#allocation41_spill] sm:$0xff] }
 0x17a   : > { %8245 = vmatmul.mubr.msk.f32.gmra.mrb[16].mxu0 %vm629_vm3, %v10068_v50 }
 0x17b   : > { %8247 = vmatprep.mubr.msk.f32.mxu0 %vm629_vm3, %v12913_v25 }
 0x17e   : > { %8248 = vmatmul.mubr.msk.f32.gmra.mrb[18].mxu0 %vm629_vm3, %v10081_v6  ;;  %v2145_v6 = vrot.slane %v10222_v30, 2 }
 0x17f   : > { %8250 = vmatprep.mubr.msk.f32.mxu0 %vm629_vm3, %v12914_v37  ;;  %v2144_v37 = vrot.slane %v10215_v55, 2 }
 0x182   : > { %8251 = vmatmul.mubr.msk.f32.gmra.mrb[20].mxu0 %vm629_vm3, %v10094_v46 }
 0x183   : > { %8253 = vmatprep.mubr.msk.f32.mxu0 %vm629_vm3, %v12915_v38  ;;  %v10370_v38 = vsel %vm1207_vm4, %v2144_v37, %v2145_v6 }
 0x186   : > { %8254 = vmatmul.mubr.msk.f32.gmra.mrb[22].mxu0 %vm629_vm3, %v10107_v22  ;;  %v2147_v22 = vrot.slane %v519_v5, 2  ;;  %v7031_v5 = vld [vmem:[%s12635_s1 + $0x20] sm:$0xf] }
 0x187   : > { %8256 = vmatprep.mubr.msk.f32.mxu0 %vm629_vm3, %v12916_v49 }
 0x18a   : > { %8257 = vmatmul.mubr.msk.f32.gmra.mrb[24].mxu0 %vm629_vm3, %v10120_v61 }
 0x18b   : > { %8259 = vmatprep.mubr.msk.f32.mxu0 %vm629_vm3, %v10124_v9  ;;  %v10377_v9 = vsel %vm1207_vm4, %v2145_v6, %v2147_v22 }
 0x18e   : > { %8260 = vmatmul.mubr.msk.f32.gmra.mrb[26].mxu0 %vm629_vm3, %v10133_v26 }
 0x18f   : > { %8262 = vmatprep.mubr.msk.f32.mxu0 %vm629_vm3, %v10137_v53 }
 0x192   : > { %8263 = vmatmul.mubr.msk.f32.gmra.mrb[28].mxu0 %vm629_vm3, %v10144_v54 }
 0x193   : > { %8265 = vmatprep.mubr.msk.f32.mxu0 %vm629_vm3, %v10370_v38 }
 0x196   : > { %8266 = vmatmul.mubr.msk.f32.gmra.mrb[30].mxu0 %vm629_vm3, %v10377_v9 }
 0x197   : > { %8270 = vmatprep.mubr.msk.f32.mxu0 %vm629_vm3, %v9508_v16  ;;  %v12918_v16 = vld [vmem:[#allocation3_spill] sm:$0xff] }
 0x19a   : > { %8271 = vmatmul.mubr.msk.f32.vlgmr.msra.gmra.mrb[0].mxu0 %vm629_vm3, %v9505_v15  ;;  %v12917_v15 = vld [vmem:[#allocation2_spill] sm:$0xff] }
 0x19b   : > { %8319 = vmatpush3.msk.msra.mxu0 %vm690_vm0, %v6997_v23  ;;  %8273 = vmatprep.mubr.msk.f32.mxu0 %vm629_vm3, %v9540_v35  ;;  %v12919_v35 = vld [vmem:[#allocation4_spill] sm:$0xff] }
 0x19c   : > { %8368 = vmatprep.subr.msk.mxu0 %vm690_vm0, %v7031_v5 }
 0x19e   : > { %8274 = vmatmul.mubr.msk.f32.gmra.mrb[2].mxu0 %vm629_vm3, %v9560_v43  ;;  %v12920_v43 = vld [vmem:[#allocation5_spill] sm:$0xff] }
 0x19f   : > { %8276 = vmatprep.mubr.msk.f32.mxu0 %vm629_vm3, %v9568_v48  ;;  %v12921_v48 = vld [vmem:[#allocation6_spill] sm:$0xff] }
 0x1a2   : > { %8277 = vmatmul.mubr.msk.f32.gmra.mrb[4].mxu0 %vm629_vm3, %v9574_v51  ;;  %v12922_v51 = vld [vmem:[#allocation7_spill] sm:$0xff] }
 0x1a3   : > { %8279 = vmatprep.mubr.msk.f32.mxu0 %vm629_vm3, %v9592_v63  ;;  %v12923_v63 = vld [vmem:[#allocation8_spill] sm:$0xff] }
 0x1a6   : > { %8280 = vmatmul.mubr.msk.f32.gmra.mrb[6].mxu0 %vm629_vm3, %v9595_v2  ;;  %v12924_v2 = vld [vmem:[#allocation9_spill] sm:$0xff] }
 0x1a7   : > { %8282 = vmatprep.mubr.msk.f32.mxu0 %vm629_vm3, %v9616_v12  ;;  %v12926_v12 = vld [vmem:[#allocation11_spill] sm:$0xff] }
 0x1aa   : > { %8283 = vmatmul.mubr.msk.f32.gmra.mrb[8].mxu0 %vm629_vm3, %v9619_v19  ;;  %v12927_v19 = vld [vmem:[#allocation12_spill] sm:$0xff] }
 0x1ab   : > { %8285 = vmatprep.mubr.msk.f32.mxu0 %vm629_vm3, %v9640_v36  ;;  %v12928_v36 = vld [vmem:[#allocation13_spill] sm:$0xff] }
 0x1ae   : > { %8286 = vmatmul.mubr.msk.f32.gmra.mrb[10].mxu0 %vm629_vm3, %v9645_v41  ;;  %v12929_v41 = vld [vmem:[#allocation14_spill] sm:$0xff] }
 0x1af   : > { %8288 = vmatprep.mubr.msk.f32.mxu0 %vm629_vm3, %v9670_v4  ;;  %v12931_v4 = vld [vmem:[#allocation19_spill] sm:$0xff] }
 0x1b2   : > { %8289 = vmatmul.mubr.msk.f32.gmra.mrb[12].mxu0 %vm629_vm3, %v9667_v3  ;;  %v12930_v3 = vld [vmem:[#allocation17_spill] sm:$0xff] }
 0x1b3   : > { %8291 = vmatprep.mubr.msk.f32.mxu0 %vm629_vm3, %v9686_v18  ;;  %v12933_v18 = vld [vmem:[#allocation21_spill] sm:$0xff] }
 0x1b6   : > { %8292 = vmatmul.mubr.msk.f32.gmra.mrb[14].mxu0 %vm629_vm3, %v9683_v14  ;;  %v12932_v14 = vld [vmem:[#allocation20_spill] sm:$0xff] }
 0x1b7   : > { %8294 = vmatprep.mubr.msk.f32.mxu0 %vm629_vm3, %v9707_v47  ;;  %v12934_v47 = vld [vmem:[#allocation23_spill] sm:$0xff] }
 0x1ba   : > { %8295 = vmatmul.mubr.msk.f32.gmra.mrb[16].mxu0 %vm629_vm3, %v9712_v52  ;;  %v12936_v52 = vld [vmem:[#allocation25_spill] sm:$0xff] }
 0x1bb   : > { %8297 = vmatprep.mubr.msk.f32.mxu0 %vm629_vm3, %v9736_v27  ;;  %v12939_v27 = vld [vmem:[#allocation32_spill] sm:$0xff] }
 0x1be   : > { %8298 = vmatmul.mubr.msk.f32.gmra.mrb[18].mxu0 %vm629_vm3, %v9739_v33  ;;  %v12940_v33 = vld [vmem:[#allocation33_spill] sm:$0xff] }
 0x1bf   : > { %8300 = vmatprep.mubr.msk.f32.mxu0 %vm629_vm3, %v9763_v7  ;;  %v12942_v7 = vld [vmem:[#allocation35_spill] sm:$0xff] }
 0x1c2   : > { %8301 = vmatmul.mubr.msk.f32.gmra.mrb[20].mxu0 %vm629_vm3, %v9760_v45  ;;  %v12941_v45 = vld [vmem:[#allocation34_spill] sm:$0xff] }
 0x1c3   : > { %8303 = vmatprep.mubr.msk.f32.mxu0 %vm629_vm3, %v9784_v0  ;;  %v12944_v0 = vld [vmem:[#allocation38_spill] sm:$0xff] }
 0x1c6   : > { %8304 = vmatmul.mubr.msk.f32.gmra.mrb[22].mxu0 %vm629_vm3, %v9787_v8  ;;  %v12925_v8 = vld [vmem:[#allocation10_spill] sm:$0xff] }
 0x1c7   : > { %8306 = vmatprep.mubr.msk.f32.mxu0 %vm629_vm3, %v9808_v10  ;;  %v12938_v10 = vld [vmem:[#allocation31_spill] sm:$0xff] }
 0x1ca   : > { %8307 = vmatmul.mubr.msk.f32.gmra.mrb[24].mxu0 %vm629_vm3, %v9811_v21  ;;  %v12943_v21 = vld [vmem:[#allocation37_spill] sm:$0xff] }
 0x1cb   : > { %8309 = vmatprep.mubr.msk.f32.mxu0 %vm629_vm3, %v9833_v1 }
 0x1ce   : > { %8310 = vmatmul.mubr.msk.f32.gmra.mrb[26].mxu0 %vm629_vm3, %v9830_v13 }
 0x1cf   : > { %8312 = vmatprep.mubr.msk.f32.mxu0 %vm629_vm3, %v10215_v55 }
 0x1d2   : > { %8313 = vmatmul.mubr.msk.f32.gmra.mrb[28].mxu0 %vm629_vm3, %v10222_v30 }
 0x1d3   : > { %8315 = vmatprep.mubr.msk.f32.mxu0 %vm629_vm3, %v9833_v1  ;;  %v12946_v1 = vld [vmem:[#allocation40_spill] sm:$0xff] }
 0x1d6   : > { %8316 = vmatmul.mubr.msk.f32.gmra.mrb[30].mxu0 %vm629_vm3, %v9830_v13  ;;  %v12945_v13 = vld [vmem:[#allocation39_spill] sm:$0xff] }
 0x1d7   : > { %8320 = vmatprep.mubr.msk.f32.mxu0 %vm629_vm3, %v12917_v15 }
 0x1da   : > { %8321 = vmatmul.mubr.msk.f32.vlgmr.msra.gmra.mrb[0].mxu0 %vm629_vm3, %v12918_v16 }
 0x1db   : > { %8369 = vmatpush3.msk.msra.mxu0 %vm690_vm0, %v7031_v5  ;;  %8323 = vmatprep.mubr.msk.f32.mxu0 %vm629_vm3, %v12919_v35 }
 0x1de   : > { %8324 = vmatmul.mubr.msk.f32.gmra.mrb[2].mxu0 %vm629_vm3, %v12920_v43 }
 0x1df   : > { %8326 = vmatprep.mubr.msk.f32.mxu0 %vm629_vm3, %v12921_v48 }
 0x1e2   : > { %8327 = vmatmul.mubr.msk.f32.gmra.mrb[4].mxu0 %vm629_vm3, %v12922_v51 }
 0x1e3   : > { %8329 = vmatprep.mubr.msk.f32.mxu0 %vm629_vm3, %v12923_v63 }
 0x1e6   : > { %8330 = vmatmul.mubr.msk.f32.gmra.mrb[6].mxu0 %vm629_vm3, %v12924_v2 }
 0x1e7   : > { %8332 = vmatprep.mubr.msk.f32.mxu0 %vm629_vm3, %v12925_v8 }
 0x1ea   : > { %8333 = vmatmul.mubr.msk.f32.gmra.mrb[8].mxu0 %vm629_vm3, %v12926_v12 }
 0x1eb   : > { %8335 = vmatprep.mubr.msk.f32.mxu0 %vm629_vm3, %v12927_v19 }
 0x1ee   : > { %8336 = vmatmul.mubr.msk.f32.gmra.mrb[10].mxu0 %vm629_vm3, %v12928_v36 }
 0x1ef   : > { %8338 = vmatprep.mubr.msk.f32.mxu0 %vm629_vm3, %v12929_v41 }
 0x1f2   : > { %8339 = vmatmul.mubr.msk.f32.gmra.mrb[12].mxu0 %vm629_vm3, %v12895_v42 }
 0x1f3   : > { %8341 = vmatprep.mubr.msk.f32.mxu0 %vm629_vm3, %v12896_v57 }
 0x1f6   : > { %8342 = vmatmul.mubr.msk.f32.gmra.mrb[14].mxu0 %vm629_vm3, %v12930_v3 }
 0x1f7   : > { %8344 = vmatprep.mubr.msk.f32.mxu0 %vm629_vm3, %v12898_v28  ;;  %v12935_v28 = vld [vmem:[#allocation24_spill] sm:$0xff] }
 0x1fa   : > { %8345 = vmatmul.mubr.msk.f32.gmra.mrb[16].mxu0 %vm629_vm3, %v12931_v4 }
 0x1fb   : > { %8347 = vmatprep.mubr.msk.f32.mxu0 %vm629_vm3, %v12932_v14 }
 0x1fe   : > { %8348 = vmatmul.mubr.msk.f32.gmra.mrb[18].mxu0 %vm629_vm3, %v12933_v18 }
 0x1ff   : > { %8350 = vmatprep.mubr.msk.f32.mxu0 %vm629_vm3, %v12902_v24 }
 0x202   : > { %8351 = vmatmul.mubr.msk.f32.gmra.mrb[20].mxu0 %vm629_vm3, %v9818_v29  ;;  %v12937_v29 = vld [vmem:[#allocation30_spill] sm:$0xff] }
 0x203   : > { %8353 = vmatprep.mubr.msk.f32.mxu0 %vm629_vm3, %v12934_v47 }
 0x206   : > { %8354 = vmatmul.mubr.msk.f32.gmra.mrb[22].mxu0 %vm629_vm3, %v9840_v31  ;;  %v12947_v31 = vld [vmem:[#allocation42_spill] sm:$0xff] }
 0x207   : > { %8356 = vmatprep.mubr.msk.f32.mxu0 %vm629_vm3, %v12935_v28 }
 0x20a   : > { %8357 = vmatmul.mubr.msk.f32.gmra.mrb[24].mxu0 %vm629_vm3, %v9856_v39 }
 0x20b   : > { %8359 = vmatprep.mubr.msk.f32.mxu0 %vm629_vm3, %v9860_v60 }
 0x20e   : > { %8360 = vmatmul.mubr.msk.f32.gmra.mrb[26].mxu0 %vm629_vm3, %v12936_v52 }
 0x20f   : > { %8362 = vmatprep.mubr.msk.f32.mxu0 %vm629_vm3, %v10293_v17 }
 0x212   : > { %8363 = vmatmul.mubr.msk.f32.gmra.mrb[28].mxu0 %vm629_vm3, %v10300_v62 }
 0x213   : > { %8365 = vmatprep.mubr.msk.f32.mxu0 %vm629_vm3, %v9860_v60 }
 0x216   : > { %8366 = vmatmul.mubr.msk.f32.gmra.mrb[30].mxu0 %vm629_vm3, %v12936_v52 }
 0x217   : > { %8370 = vmatprep.mubr.msk.f32.mxu0 %vm629_vm3, %v12905_v58 }
 0x21a   : > { %8371 = vmatmul.mubr.msk.f32.vlgmr.msra.gmra.mrb[0].mxu0 %vm629_vm3, %v9952_v20 }
 0x21b   : > { %8373 = vmatprep.mubr.msk.f32.mxu0 %vm629_vm3, %v12906_v56 }
 0x21e   : > { %8374 = vmatmul.mubr.msk.f32.gmra.mrb[2].mxu0 %vm629_vm3, %v9990_v40 }
 0x21f   : > { %8376 = vmatprep.mubr.msk.f32.mxu0 %vm629_vm3, %v12937_v29 }
 0x222   : > { %8377 = vmatmul.mubr.msk.f32.gmra.mrb[4].mxu0 %vm629_vm3, %v10003_v32 }
 0x223   : > { %8379 = vmatprep.mubr.msk.f32.mxu0 %vm629_vm3, %v12938_v10 }
 0x226   : > { %8380 = vmatmul.mubr.msk.f32.gmra.mrb[6].mxu0 %vm629_vm3, %v10016_v44 }
 0x227   : > { %8382 = vmatprep.mubr.msk.f32.mxu0 %vm629_vm3, %v12939_v27 }
 0x22a   : > { %8383 = vmatmul.mubr.msk.f32.gmra.mrb[8].mxu0 %vm629_vm3, %v10029_v59 }
 0x22b   : > { %8385 = vmatprep.mubr.msk.f32.mxu0 %vm629_vm3, %v12940_v33 }
 0x22e   : > { %8386 = vmatmul.mubr.msk.f32.gmra.mrb[10].mxu0 %vm629_vm3, %v10042_v11 }
 0x22f   : > { %8388 = vmatprep.mubr.msk.f32.mxu0 %vm629_vm3, %v12941_v45 }
 0x232   : > { %8389 = vmatmul.mubr.msk.f32.gmra.mrb[12].mxu0 %vm629_vm3, %v10055_v34 }
 0x233   : > { %8391 = vmatprep.mubr.msk.f32.mxu0 %vm629_vm3, %v12942_v7  ;;  %v7065_v7 = vld [vmem:[%s12638_s4 + $0x4] sm:$0xf] }
 0x234   : > { %8418 = vmatprep.subr.msk.mxu1 %vm690_vm0, %v7065_v7 }
 0x235   : > { %8419 = vmatpush3.msk.msra.mxu1 %vm690_vm0, %v7065_v7 }
 0x236   : > { %8392 = vmatmul.mubr.msk.f32.gmra.mrb[14].mxu0 %vm629_vm3, %v10068_v50 }
 0x237   : > { %8394 = vmatprep.mubr.msk.f32.mxu0 %vm629_vm3, %v12913_v25 }
 0x23a   : > { %8395 = vmatmul.mubr.msk.f32.gmra.mrb[16].mxu0 %vm629_vm3, %v12943_v21 }
 0x23b   : > { %8397 = vmatprep.mubr.msk.f32.mxu0 %vm629_vm3, %v12944_v0 }
 0x23e   : > { %8398 = vmatmul.mubr.msk.f32.gmra.mrb[18].mxu0 %vm629_vm3, %v10094_v46 }
 0x23f   : > { %8400 = vmatprep.mubr.msk.f32.mxu0 %vm629_vm3, %v12945_v13 }
 0x242   : > { %8401 = vmatmul.mubr.msk.f32.gmra.mrb[20].mxu0 %vm629_vm3, %v12946_v1 }
 0x243   : > { %8403 = vmatprep.mubr.msk.f32.mxu0 %vm629_vm3, %v12916_v49 }
 0x246   : > { %8404 = vmatmul.mubr.msk.f32.gmra.mrb[22].mxu0 %vm629_vm3, %v10120_v61 }
 0x247   : > { %8406 = vmatprep.mubr.msk.f32.mxu0 %vm629_vm3, %v12947_v31 }
 0x24a   : > { %8407 = vmatmul.mubr.msk.f32.gmra.mrb[24].mxu0 %vm629_vm3, %v10133_v26 }
 0x24b   : > { %8409 = vmatprep.mubr.msk.f32.mxu0 %vm629_vm3, %v10137_v53 }
 0x24e   : > { %8410 = vmatmul.mubr.msk.f32.gmra.mrb[26].mxu0 %vm629_vm3, %v10144_v54 }
 0x24f   : > { %8412 = vmatprep.mubr.msk.f32.mxu0 %vm629_vm3, %v10370_v38 }
 0x252   : > { %8413 = vmatmul.mubr.msk.f32.gmra.mrb[28].mxu0 %vm629_vm3, %v10377_v9 }
 0x253   : > { %8415 = vmatprep.mubr.msk.f32.mxu0 %vm629_vm3, %v10137_v53 }
 0x256   : > { %8416 = vmatmul.mubr.msk.f32.gmra.mrb[30].mxu0 %vm629_vm3, %v10144_v54 }
 0x2ed   : > { %v10579_v62 = vpop.f32.mrb[0].mxu0 }
 0x2ee   : > { %v3202_v39 = vsel %vm629_vm3, %v10579_v62, 0.0  ;;  %v3271_v60 = vmul.f32 %v10579_v62, %v10579_v62  ;;  %v10585_v58 = vpop.f32.mrb[1].mxu0 }
 0x2ef   : > { %v3201_v20 = vsel %vm629_vm3, %v10585_v58, 0.0  ;;  %v3270_v40 = vmul.f32 %v10585_v58, %v10585_v58 }
 0x2f0   : > { %v3303_v32 = vsel %vm629_vm3, %v3271_v60, 0.0  ;;  %v3203_v44 = vadd.f32 %v3202_v39, %v3201_v20 }
 0x2f1   : > { %v3302_v59 = vsel %vm629_vm3, %v3270_v40, 0.0  ;;  %v10593_v11 = vpop.f32.mrb[2].mxu0 }
 0x2f2   : > { %v3304_v34 = vadd.f32 %v3303_v32, %v3302_v59  ;;  %v10595_v50 = vpop.f32.mrb[3].mxu0  ;;  %v3273_v6 = vmul.f32 %v10593_v11, %v10593_v11  ;;  %v3206_v26 = vsel %vm629_vm3, %v10593_v11, 0.0  ;;  %v10672_v32 = vld [vmem:[%s12638_s4] sm:$0xf] }
 0x2f3   : > { %v3204_v46 = vsel %vm629_vm3, %v10595_v50, 0.0  ;;  %v3272_v22 = vmul.f32 %v10595_v50, %v10595_v50  ;;  %8468 = vmatprep.subr.msk.mxu1 %vm690_vm0, %v10672_v32 }
 0x2f4   : > { %v3205_v61 = vadd.f32 %v3204_v46, %v3203_v44  ;;  %v3307_v24 = vsel %vm629_vm3, %v3273_v6, 0.0 }
 0x2f5   : > { %v3305_v9 = vsel %vm629_vm3, %v3272_v22, 0.0  ;;  %v10606_v53 = vpop.f32.mrb[4].mxu0 }
 0x2f6   : > { %v3306_v54 = vadd.f32 %v3305_v9, %v3304_v34  ;;  %v10608_v55 = vpop.f32.mrb[5].mxu0  ;;  %v3207_v30 = vadd.f32 %v3206_v26, %v3205_v61  ;;  %v3275_v42 = vmul.f32 %v10606_v53, %v10606_v53  ;;  %v3210_v38 = vsel %vm629_vm3, %v10606_v53, 0.0 }
 0x2f7   : > { %v3208_v57 = vsel %vm629_vm3, %v10608_v55, 0.0  ;;  %v3274_v17 = vmul.f32 %v10608_v55, %v10608_v55 }
 0x2f8   : > { %v3209_v23 = vadd.f32 %v3208_v57, %v3207_v30  ;;  %v3308_v56 = vadd.f32 %v3307_v24, %v3306_v54  ;;  %v3311_v16 = vsel %vm629_vm3, %v3275_v42, 0.0 }
 0x2f9   : > { %v3309_v49 = vsel %vm629_vm3, %v3274_v17, 0.0  ;;  %v10620_v25 = vpop.f32.mrb[6].mxu0 }
 0x2fa   : > { %v3310_v37 = vadd.f32 %v3309_v49, %v3308_v56  ;;  %v10622_v5 = vpop.f32.mrb[7].mxu0  ;;  %v3211_v15 = vadd.f32 %v3210_v38, %v3209_v23  ;;  %v3277_v35 = vmul.f32 %v10620_v25, %v10620_v25  ;;  %v3214_v2 = vsel %vm629_vm3, %v10620_v25, 0.0 }
 0x2fb   : > { %v3212_v43 = vsel %vm629_vm3, %v10622_v5, 0.0  ;;  %v3276_v48 = vmul.f32 %v10622_v5, %v10622_v5 }
 0x2fc   : > { %v3213_v51 = vadd.f32 %v3212_v43, %v3211_v15  ;;  %v3312_v63 = vadd.f32 %v3311_v16, %v3310_v37  ;;  %v3315_v3 = vsel %vm629_vm3, %v3277_v35, 0.0 }
 0x2fd   : > { %v3313_v8 = vsel %vm629_vm3, %v3276_v48, 0.0  ;;  %v10634_v12 = vpop.f32.mrb[8].mxu0 }
 0x2fe   : > { %v3314_v19 = vadd.f32 %v3313_v8, %v3312_v63  ;;  %v10636_v36 = vpop.f32.mrb[9].mxu0  ;;  %v3215_v41 = vadd.f32 %v3214_v2, %v3213_v51  ;;  %v3279_v4 = vmul.f32 %v10634_v12, %v10634_v12  ;;  %v3218_v52 = vsel %vm629_vm3, %v10634_v12, 0.0 }
 0x2ff   : > { %v3216_v14 = vsel %vm629_vm3, %v10636_v36, 0.0  ;;  %v3278_v18 = vmul.f32 %v10636_v36, %v10636_v36 }
 0x300   : > { %v3217_v47 = vadd.f32 %v3216_v14, %v3215_v41  ;;  %v3316_v28 = vadd.f32 %v3315_v3, %v3314_v19  ;;  %v3319_v21 = vsel %vm629_vm3, %v3279_v4, 0.0 }
 0x301   : > { %v3317_v29 = vsel %vm629_vm3, %v3278_v18, 0.0  ;;  %v10648_v10 = vpop.f32.mrb[10].mxu0 }
 0x302   : > { %v3318_v27 = vadd.f32 %v3317_v29, %v3316_v28  ;;  %v10650_v33 = vpop.f32.mrb[11].mxu0  ;;  %v3219_v45 = vadd.f32 %v3218_v52, %v3217_v47  ;;  %v3281_v0 = vmul.f32 %v10648_v10, %v10648_v10  ;;  %v3222_v60 = vsel %vm629_vm3, %v10648_v10, 0.0 }
 0x303   : > { %v3220_v13 = vsel %vm629_vm3, %v10650_v33, 0.0  ;;  %v3280_v1 = vmul.f32 %v10650_v33, %v10650_v33 }
 0x304   : > { %v3221_v31 = vadd.f32 %v3220_v13, %v3219_v45  ;;  %v3320_v39 = vadd.f32 %v3319_v21, %v3318_v27  ;;  %v3323_v6 = vsel %vm629_vm3, %v3281_v0, 0.0 }
 0x305   : > { %v3321_v20 = vsel %vm629_vm3, %v3280_v1, 0.0  ;;  %v10667_v40 = vpop.f32.mrb[12].mxu0 }
 0x306   : > { %v3322_v44 = vadd.f32 %v3321_v20, %v3320_v39  ;;  %v10674_v59 = vpop.f32.mrb[13].mxu0  ;;  %v3223_v34 = vadd.f32 %v3222_v60, %v3221_v31  ;;  %v3283_v46 = vmul.f32 %v10667_v40, %v10667_v40  ;;  %v3226_v54 = vsel %vm629_vm3, %v10667_v40, 0.0 }
 0x307   : > { %v3224_v22 = vsel %vm629_vm3, %v10674_v59, 0.0  ;;  %v3282_v61 = vmul.f32 %v10674_v59, %v10674_v59 }
 0x308   : > { %v3225_v26 = vadd.f32 %v3224_v22, %v3223_v34  ;;  %v3324_v9 = vadd.f32 %v3323_v6, %v3322_v44  ;;  %v3327_v23 = vsel %vm629_vm3, %v3283_v46, 0.0 }
 0x309   : > { %v3325_v30 = vsel %vm629_vm3, %v3282_v61, 0.0  ;;  %v10688_v24 = vpop.f32.mrb[14].mxu0 }
 0x30a   : > { %v3326_v42 = vadd.f32 %v3325_v30, %v3324_v9  ;;  %v10690_v57 = vpop.f32.mrb[15].mxu0  ;;  %v3227_v17 = vadd.f32 %v3226_v54, %v3225_v26  ;;  %v3285_v56 = vmul.f32 %v10688_v24, %v10688_v24  ;;  %v3230_v16 = vsel %vm629_vm3, %v10688_v24, 0.0 }
 0x30b   : > { %v3228_v38 = vsel %vm629_vm3, %v10690_v57, 0.0  ;;  %v3284_v49 = vmul.f32 %v10690_v57, %v10690_v57 }
 0x30c   : > { %v3229_v37 = vadd.f32 %v3228_v38, %v3227_v17  ;;  %v3328_v15 = vadd.f32 %v3327_v23, %v3326_v42  ;;  %v3331_v2 = vsel %vm629_vm3, %v3285_v56, 0.0 }
 0x30d   : > { %v3329_v35 = vsel %vm629_vm3, %v3284_v49, 0.0  ;;  %v10702_v43 = vpop.f32.mrb[16].mxu0 }
 0x30e   : > { %v3330_v48 = vadd.f32 %v3329_v35, %v3328_v15  ;;  %v10704_v51 = vpop.f32.mrb[17].mxu0  ;;  %v3231_v63 = vadd.f32 %v3230_v16, %v3229_v37  ;;  %v3287_v8 = vmul.f32 %v10702_v43, %v10702_v43  ;;  %v3234_v14 = vsel %vm629_vm3, %v10702_v43, 0.0 }
 0x30f   : > { %v3232_v19 = vsel %vm629_vm3, %v10704_v51, 0.0  ;;  %v3286_v41 = vmul.f32 %v10704_v51, %v10704_v51 }
 0x310   : > { %v3233_v3 = vadd.f32 %v3232_v19, %v3231_v63  ;;  %v3332_v4 = vadd.f32 %v3331_v2, %v3330_v48  ;;  %v3335_v27 = vsel %vm629_vm3, %v3287_v8, 0.0 }
 0x311   : > { %v3333_v18 = vsel %vm629_vm3, %v3286_v41, 0.0  ;;  %v10716_v47 = vpop.f32.mrb[18].mxu0 }
 0x312   : > { %v3334_v28 = vadd.f32 %v3333_v18, %v3332_v4  ;;  %v10718_v52 = vpop.f32.mrb[19].mxu0  ;;  %v3235_v29 = vadd.f32 %v3234_v14, %v3233_v3  ;;  %v3289_v45 = vmul.f32 %v10716_v47, %v10716_v47  ;;  %v3238_v1 = vsel %vm629_vm3, %v10716_v47, 0.0 }
 0x313   : > { %v3236_v7 = vsel %vm629_vm3, %v10718_v52, 0.0  ;;  %v3288_v21 = vmul.f32 %v10718_v52, %v10718_v52 }
 0x314   : > { %v3237_v0 = vadd.f32 %v3236_v7, %v3235_v29  ;;  %v3336_v13 = vadd.f32 %v3335_v27, %v3334_v28  ;;  %v3339_v34 = vsel %vm629_vm3, %v3289_v45, 0.0 }
 0x315   : > { %v3337_v31 = vsel %vm629_vm3, %v3288_v21, 0.0  ;;  %v10730_v39 = vpop.f32.mrb[20].mxu0 }
 0x316   : > { %v3338_v60 = vadd.f32 %v3337_v31, %v3336_v13  ;;  %v10732_v20 = vpop.f32.mrb[21].mxu0  ;;  %v3239_v44 = vadd.f32 %v3238_v1, %v3237_v0  ;;  %v3291_v6 = vmul.f32 %v10730_v39, %v10730_v39  ;;  %v3242_v9 = vsel %vm629_vm3, %v10730_v39, 0.0 }
 0x317   : > { %v3240_v46 = vsel %vm629_vm3, %v10732_v20, 0.0  ;;  %v3290_v22 = vmul.f32 %v10732_v20, %v10732_v20 }
 0x318   : > { %v3241_v61 = vadd.f32 %v3240_v46, %v3239_v44  ;;  %v3340_v26 = vadd.f32 %v3339_v34, %v3338_v60  ;;  %v3343_v56 = vsel %vm629_vm3, %v3291_v6, 0.0 }
 0x319   : > { %v3341_v54 = vsel %vm629_vm3, %v3290_v22, 0.0  ;;  %v10744_v30 = vpop.f32.mrb[22].mxu0 }
 0x31a   : > { %v3342_v42 = vadd.f32 %v3341_v54, %v3340_v26  ;;  %v10746_v17 = vpop.f32.mrb[23].mxu0  ;;  %v3243_v23 = vadd.f32 %v3242_v9, %v3241_v61  ;;  %v3293_v38 = vmul.f32 %v10744_v30, %v10744_v30  ;;  %v3246_v35 = vsel %vm629_vm3, %v10744_v30, 0.0 }
 0x31b   : > { %v3244_v49 = vsel %vm629_vm3, %v10746_v17, 0.0  ;;  %v3292_v37 = vmul.f32 %v10746_v17, %v10746_v17 }
 0x31c   : > { %v3245_v15 = vadd.f32 %v3244_v49, %v3243_v23  ;;  %v3344_v16 = vadd.f32 %v3343_v56, %v3342_v42  ;;  %v3347_v41 = vsel %vm629_vm3, %v3293_v38, 0.0 }
 0x31d   : > { %v3345_v48 = vsel %vm629_vm3, %v3292_v37, 0.0  ;;  %v10758_v63 = vpop.f32.mrb[24].mxu0 }
 0x31e   : > { %v3346_v2 = vadd.f32 %v3345_v48, %v3344_v16  ;;  %v10760_v8 = vpop.f32.mrb[25].mxu0  ;;  %v3247_v19 = vadd.f32 %v3246_v35, %v3245_v15  ;;  %v3295_v3 = vmul.f32 %v10758_v63, %v10758_v63  ;;  %v3250_v29 = vsel %vm629_vm3, %v10758_v63, 0.0 }
 0x31f   : > { %v3248_v4 = vsel %vm629_vm3, %v10760_v8, 0.0  ;;  %v3294_v14 = vmul.f32 %v10760_v8, %v10760_v8 }
 0x320   : > { %v3249_v18 = vadd.f32 %v3248_v4, %v3247_v19  ;;  %v3348_v28 = vadd.f32 %v3347_v41, %v3346_v2  ;;  %v3351_v13 = vsel %vm629_vm3, %v3295_v3, 0.0 }
 0x321   : > { %v3349_v27 = vsel %vm629_vm3, %v3294_v14, 0.0  ;;  %v10772_v45 = vpop.f32.mrb[26].mxu0 }
 0x322   : > { %v3350_v7 = vadd.f32 %v3349_v27, %v3348_v28  ;;  %v10774_v21 = vpop.f32.mrb[27].mxu0  ;;  %v3251_v0 = vadd.f32 %v3250_v29, %v3249_v18  ;;  %v3297_v1 = vmul.f32 %v10772_v45, %v10772_v45  ;;  %v3254_v6 = vsel %vm629_vm3, %v10772_v45, 0.0 }
 0x323   : > { %v3252_v31 = vsel %vm629_vm3, %v10774_v21, 0.0  ;;  %v3296_v60 = vmul.f32 %v10774_v21, %v10774_v21 }
 0x324   : > { %v3253_v44 = vadd.f32 %v3252_v31, %v3251_v0  ;;  %v3352_v34 = vadd.f32 %v3351_v13, %v3350_v7  ;;  %v3355_v54 = vsel %vm629_vm3, %v3297_v1, 0.0 }
 0x325   : > { %v3353_v46 = vsel %vm629_vm3, %v3296_v60, 0.0  ;;  %v10786_v22 = vpop.f32.mrb[28].mxu0 }
 0x326   : > { %v3354_v61 = vadd.f32 %v3353_v46, %v3352_v34  ;;  %v10788_v26 = vpop.f32.mrb[29].mxu0  ;;  %v3255_v9 = vadd.f32 %v3254_v6, %v3253_v44  ;;  %v3299_v42 = vmul.f32 %v10786_v22, %v10786_v22  ;;  %v3258_v37 = vsel %vm629_vm3, %v10786_v22, 0.0 }
 0x327   : > { %v3256_v23 = vsel %vm629_vm3, %v10788_v26, 0.0  ;;  %v3298_v56 = vmul.f32 %v10788_v26, %v10788_v26 }
 0x328   : > { %v3257_v38 = vadd.f32 %v3256_v23, %v3255_v9  ;;  %v3356_v49 = vadd.f32 %v3355_v54, %v3354_v61  ;;  %v3359_v19 = vsel %vm629_vm3, %v3299_v42, 0.0 }
 0x329   : > { %v3357_v15 = vsel %vm629_vm3, %v3298_v56, 0.0  ;;  %v10800_v16 = vpop.f32.mrb[30].mxu0 }
 0x32a   : > { %v3358_v35 = vadd.f32 %v3357_v15, %v3356_v49  ;;  %v3160_v48 = vpop.f32.mrb[31].mxu0  ;;  %v3259_v2 = vadd.f32 %v3258_v37, %v3257_v38  ;;  %v3301_v41 = vmul.f32 %v10800_v16, %v10800_v16  ;;  %v3262_v28 = vsel %vm629_vm3, %v10800_v16, 0.0 }
 0x32b   : > { %v3260_v3 = vsel %vm629_vm3, %v3160_v48, 0.0  ;;  %v3300_v4 = vmul.f32 %v3160_v48, %v3160_v48 }
 0x32c   : > { %v3261_v14 = vadd.f32 %v3260_v3, %v3259_v2  ;;  %v3360_v18 = vadd.f32 %v3359_v19, %v3358_v35  ;;  %v3363_v0 = vsel %vm629_vm3, %v3301_v41, 0.0  ;;  %v3383_v35 = vlaneseq  ;;  %v3375_v19 = vld [vmem:[%s12636_s2] sm:$0x1] }
 0x32d   : > { %v3361_v29 = vsel %vm629_vm3, %v3300_v4, 0.0 }
 0x32e   : > { %v3263_v27 = vadd.f32 %v3262_v28, %v3261_v14  ;;  %v3362_v7 = vadd.f32 %v3361_v29, %v3360_v18  ;;  %v3384_v2 = vshrl.u32 %v3383_v35, 7  ;;  %v3379_v14 = vld [vmem:[%s12637_s3] sm:$0x1] }
 0x330   : > { %v3264_v13 = vrot.slane %v3263_v27, 4  ;;  %v3364_v1 = vadd.f32 %v3363_v0, %v3362_v7  ;;  %v10813_v41 = vsub.s32 0, %v3384_v2 }
 0x332   : > { %v3265_v31 = vadd.f32 %v3264_v13, %v3263_v27  ;;  %v3365_v60 = vrot.slane %v3364_v1, 4  ;;  %12948 = vst [vmem:[#allocation15_spill] sm:$0xff] %v10813_v41 }
 0x334   : > { %v3266_v44 = vrot.slane %v3265_v31, 2  ;;  %v3366_v34 = vadd.f32 %v3365_v60, %v3364_v1 }
 0x336   : > { %v3267_v6 = vadd.f32 %v3266_v44, %v3265_v31  ;;  %v3367_v46 = vrot.slane %v3366_v34, 2 }
 0x338   : > { %v3268_v61 = vrot.slane %v3267_v6, 1  ;;  %v3368_v9 = vadd.f32 %v3367_v46, %v3366_v34 }
 0x33a   : > { %v3269_v54 = vadd.f32 %v3268_v61, %v3267_v6  ;;  %v3369_v42 = vrot.slane %v3368_v9, 1 }
 0x33c   : > { %v3370_v23 = vadd.f32 %v3369_v42, %v3368_v9  ;;  %v3371_v56 = vmul.f32 0.00390625, %v3269_v54 }
 0x33e   : > { %v3372_v38 = vmul.f32 0.00390625, %v3370_v23  ;;  %v3373_v49 = vmul.f32 %v3371_v56, %v3371_v56 }
 0x340   : > { %v3374_v37 = vsub.f32 %v3372_v38, %v3373_v49 }
 0x342   : > { %v3376_v15 = vadd.f32 1e-05, %v3374_v37 }
 0x344   : > { %9388 = vrsqrt.f32 %v3376_v15 }
 0x34e   : > { %v9389_v3 = vpop.eup %9388 }
 0x34f   : > { %v3378_v4 = vmul.f32 %v9389_v3, %v3375_v19 }
 0x351   : > { %v3380_v18 = vmul.f32 %v3378_v4, %v3371_v56  ;;  %v3386_v28 = vrot.slane %v3378_v4, %v10813_v41 }
 0x353   : > { %v3381_v29 = vsub.f32 %v3379_v14, %v3380_v18  ;;  %v3418_v27 = vmul.f32 %v3386_v28, %v3160_v48  ;;  %v3388_v7 = vmul.f32 %v3386_v28, %v10585_v58  ;;  %v3389_v0 = vmul.f32 %v10579_v62, %v3386_v28 }
 0x354   : > { %v3390_v13 = vmul.f32 %v3386_v28, %v10595_v50  ;;  %v3391_v1 = vmul.f32 %v10593_v11, %v3386_v28  ;;  %v3392_v31 = vmul.f32 %v3386_v28, %v10608_v55  ;;  %v3393_v60 = vmul.f32 %v10606_v53, %v3386_v28 }
 0x355   : > { %v3424_v44 = vrot.slane %v3381_v29, %v10813_v41  ;;  %v3394_v34 = vmul.f32 %v3386_v28, %v10622_v5  ;;  %v3395_v6 = vmul.f32 %v10620_v25, %v3386_v28  ;;  %v3396_v48 = vmul.f32 %v3386_v28, %v10636_v36 }
 0x356   : > { %v3397_v58 = vmul.f32 %v10634_v12, %v3386_v28  ;;  %v3398_v62 = vmul.f32 %v3386_v28, %v10650_v33  ;;  %v3399_v50 = vmul.f32 %v10648_v10, %v3386_v28  ;;  %v3400_v11 = vmul.f32 %v3386_v28, %v10674_v59 }
 0x357   : > { %v10833_v46 = vadd.f32 %v3424_v44, %v3418_v27  ;;  %v3401_v53 = vmul.f32 %v10667_v40, %v3386_v28  ;;  %v3402_v55 = vmul.f32 %v3386_v28, %v10690_v57  ;;  %v3403_v5 = vmul.f32 %v10688_v24, %v3386_v28 }
 0x358   : > { %v3404_v25 = vmul.f32 %v3386_v28, %v10704_v51  ;;  %v3405_v36 = vmul.f32 %v10702_v43, %v3386_v28  ;;  %v3406_v12 = vmul.f32 %v3386_v28, %v10718_v52  ;;  %v3407_v33 = vmul.f32 %v10716_v47, %v3386_v28 }
 0x359   : > { %12949 = vst [vmem:[#allocation16_spill] sm:$0xff] %v10833_v46  ;;  %v3408_v10 = vmul.f32 %v3386_v28, %v10732_v20  ;;  %v3409_v59 = vmul.f32 %v10730_v39, %v3386_v28  ;;  %v3410_v61 = vmul.f32 %v3386_v28, %v10746_v17  ;;  %v3411_v40 = vmul.f32 %v10744_v30, %v3386_v28 }
 0x35a   : > { %v3412_v57 = vmul.f32 %v3386_v28, %v10760_v8  ;;  %v3413_v24 = vmul.f32 %v10758_v63, %v3386_v28  ;;  %v3414_v51 = vmul.f32 %v3386_v28, %v10774_v21  ;;  %v3415_v43 = vmul.f32 %v10772_v45, %v3386_v28 }
 0x35b   : > { %v3416_v52 = vmul.f32 %v3386_v28, %v10788_v26  ;;  %v3417_v47 = vmul.f32 %v10786_v22, %v3386_v28  ;;  %v3419_v20 = vmul.f32 %v10800_v16, %v3386_v28  ;;  %v10853_v9 = vadd.f32 %v3424_v44, %v3388_v7 }
 0x35c   : > { %v10855_v39 = vadd.f32 %v3424_v44, %v3389_v0  ;;  %v10857_v17 = vadd.f32 %v3424_v44, %v3390_v13  ;;  %v10859_v30 = vadd.f32 %v3424_v44, %v3391_v1  ;;  %v10861_v8 = vadd.f32 %v3424_v44, %v3392_v31 }
 0x35d   : > { %v10863_v63 = vadd.f32 %v3424_v44, %v3393_v60  ;;  %v10865_v21 = vadd.f32 %v3424_v44, %v3394_v34  ;;  %v10867_v45 = vadd.f32 %v3424_v44, %v3395_v6  ;;  %v10869_v26 = vadd.f32 %v3424_v44, %v3396_v48 }
 0x35e   : > { %v10871_v22 = vadd.f32 %v3424_v44, %v3397_v58  ;;  %v10873_v16 = vadd.f32 %v3424_v44, %v3398_v62  ;;  %v10875_v54 = vadd.f32 %v3424_v44, %v3399_v50  ;;  %v10877_v42 = vadd.f32 %v3424_v44, %v3400_v11 }
 0x35f   : > { %v10879_v23 = vadd.f32 %v3424_v44, %v3401_v53  ;;  %v10881_v56 = vadd.f32 %v3424_v44, %v3402_v55  ;;  %v10883_v38 = vadd.f32 %v3424_v44, %v3403_v5  ;;  %v10885_v49 = vadd.f32 %v3424_v44, %v3404_v25 }
 0x360   : > { %v10887_v37 = vadd.f32 %v3424_v44, %v3405_v36  ;;  %v10889_v15 = vadd.f32 %v3424_v44, %v3406_v12  ;;  %v10891_v35 = vadd.f32 %v3424_v44, %v3407_v33  ;;  %v10893_v2 = vadd.f32 %v3424_v44, %v3408_v10 }
 0x361   : > { %v10895_v19 = vadd.f32 %v3424_v44, %v3409_v59  ;;  %v10897_v3 = vadd.f32 %v3424_v44, %v3410_v61  ;;  %v10899_v4 = vadd.f32 %v3424_v44, %v3411_v40  ;;  %v10901_v14 = vadd.f32 %v3424_v44, %v3412_v57 }
 0x362   : > { %12950 = vst [vmem:[#allocation18_spill] sm:$0xff] %v10891_v35  ;;  %12951 = vst [vmem:[#allocation22_spill] sm:$0xff] %v10893_v2  ;;  %v10903_v18 = vadd.f32 %v3424_v44, %v3413_v24  ;;  %v10905_v28 = vadd.f32 %v3424_v44, %v3414_v51  ;;  %v10907_v29 = vadd.f32 %v3424_v44, %v3415_v43  ;;  %v12716_v13 = vmax.f32 %v10857_v17, 0.0 }
 0x363   : > { %12952 = vst [vmem:[#allocation27_spill] sm:$0xff] %v10895_v19  ;;  %12953 = vst [vmem:[#allocation28_spill] sm:$0xff] %v10897_v3  ;;  %v10909_v27 = vadd.f32 %v3424_v44, %v3416_v52  ;;  %v10911_v7 = vadd.f32 %v3424_v44, %v3417_v47  ;;  %v10913_v0 = vadd.f32 %v3424_v44, %v3419_v20  ;;  %v12717_v1 = vmax.f32 %v10859_v30, 0.0 }
 0x364   : > { %12954 = vst [vmem:[#allocation26_spill] sm:$0xff] %v10899_v4  ;;  %12955 = vst [vmem:[#allocation29_spill] sm:$0xff] %v10901_v14  ;;  %v12718_v31 = vmax.f32 %v10861_v8, 0.0  ;;  %v12719_v60 = vmax.f32 %v10863_v63, 0.0  ;;  %v12720_v34 = vmax.f32 %v10865_v21, 0.0  ;;  %v12722_v6 = vmax.f32 %v10867_v45, 0.0 }
 0x365   : > { %12956 = vst [vmem:[#allocation36_spill] sm:$0xff] %v10903_v18  ;;  %12957 = vst [vmem:[#allocation41_spill] sm:$0xff] %v10905_v28  ;;  %v12721_v48 = vmax.f32 %v10869_v26, 0.0  ;;  %v12723_v58 = vmax.f32 %v10871_v22, 0.0  ;;  %v12724_v62 = vmax.f32 %v10873_v16, 0.0  ;;  %v12725_v44 = vmax.f32 %v10875_v54, 0.0 }
 0x366   : > { %12958 = vst [vmem:[#allocation2_spill] sm:$0xff] %v10907_v29  ;;  %12959 = vst [vmem:[#allocation3_spill] sm:$0xff] %v10909_v27  ;;  %v12726_v50 = vmax.f32 %v10877_v42, 0.0  ;;  %v12727_v11 = vmax.f32 %v10879_v23, 0.0  ;;  %v12728_v53 = vmax.f32 %v10881_v56, 0.0  ;;  %v12729_v55 = vmax.f32 %v10883_v38, 0.0 }
 0x367   : > { %12960 = vst [vmem:[#allocation4_spill] sm:$0xff] %v10911_v7  ;;  %12961 = vst [vmem:[#allocation5_spill] sm:$0xff] %v10913_v0  ;;  %v12730_v5 = vmax.f32 %v10885_v49, 0.0  ;;  %v12731_v25 = vmax.f32 %v10887_v37, 0.0  ;;  %v12734_v36 = vmax.f32 %v10889_v15, 0.0  ;;  %v12737_v12 = vmax.f32 %v10891_v35, 0.0 }
 0x368   : > { %v12739_v33 = vmax.f32 %v10893_v2, 0.0  ;;  %v3554_v43 = vrot.slane %v12716_v13, 7  ;;  %v3555_v20 = vrot.slane %v12717_v1, 7  ;;  %v10949_v61 = vrot.slane %v12718_v31, 7 }
 0x369   : > { %v10953_v57 = vrot.slane %v12719_v60, 7  ;;  %v10957_v51 = vrot.slane %v12720_v34, 7  ;;  %v10961_v13 = vrot.slane %v12722_v6, 7  ;;  %v10965_v47 = vrot.slane %v12721_v48, 7 }
 0x36a   : > { %v10968_v1 = vsel %vm375_vm1, %v3554_v43, %v3555_v20  ;;  %v10972_v31 = vrot.slane %v12723_v58, 7  ;;  %v10976_v60 = vrot.slane %v12724_v62, 7  ;;  %v10980_v34 = vrot.slane %v12725_v44, 7 }
 0x36b   : > { %v10985_v48 = vsel %vm375_vm1, %v10949_v61, %v10953_v57  ;;  %v10990_v6 = vsel %vm375_vm1, %v10957_v51, %v10961_v13  ;;  %v10994_v58 = vrot.slane %v12726_v50, 7  ;;  %v10998_v62 = vrot.slane %v12727_v11, 7 }
 0x36c   : > { %v11003_v44 = vsel %vm375_vm1, %v10965_v47, %v10972_v31  ;;  %v11008_v52 = vsel %vm375_vm1, %v10976_v60, %v10980_v34  ;;  %v11012_v24 = vrot.slane %v12728_v53, 7  ;;  %v11016_v50 = vrot.slane %v12729_v55, 7 }
 0x36d   : > { %v11021_v11 = vsel %vm375_vm1, %v10994_v58, %v10998_v62  ;;  %v11025_v40 = vrot.slane %v12730_v5, 7  ;;  %v11029_v59 = vrot.slane %v12731_v25, 7  ;;  %v11033_v53 = vrot.slane %v12734_v36, 7 }
 0x36e   : > { %v11038_v55 = vsel %vm375_vm1, %v11012_v24, %v11016_v50  ;;  %v11042_v10 = vrot.slane %v12737_v12, 7  ;;  %v11046_v5 = vrot.slane %v12739_v33, 7  ;;  %v12963_v25 = vmax.f32 %v10895_v19, 0.0 }
 0x36f   : > { %v11055_v36 = vsel %vm375_vm1, %v11025_v40, %v11029_v59  ;;  %v12965_v0 = vmax.f32 %v10897_v3, 0.0  ;;  %v12966_v12 = vmax.f32 %v10899_v4, 0.0  ;;  %v12968_v33 = vmax.f32 %v10901_v14, 0.0 }
 0x370   : > { %12962 = vst [vmem:[#allocation6_spill] sm:$0xff] %v11042_v10  ;;  %v11050_v41 = vrot.slane %v12963_v25, 7  ;;  %v11072_v25 = vsel %vm375_vm1, %v11033_v53, %v11042_v10  ;;  %v12973_v14 = vmax.f32 %v10907_v29, 0.0 }
 0x371   : > { %v11059_v46 = vrot.slane %v12965_v0, 7  ;;  %v11063_v35 = vrot.slane %v12966_v12, 7  ;;  %v11067_v2 = vrot.slane %v12968_v33, 7  ;;  %v12970_v0 = vmax.f32 %v10903_v18, 0.0 }
 0x372   : > { %12964 = vst [vmem:[#allocation7_spill] sm:$0xff] %v11050_v41  ;;  %v11077_v19 = vsel %vm375_vm1, %v11046_v5, %v11050_v41  ;;  %v12972_v12 = vmax.f32 %v10905_v28, 0.0  ;;  %v11094_v10 = vrot.slane %v12973_v14, 7  ;;  %v12975_v41 = vmax.f32 %v10909_v27, 0.0 }
 0x373   : > { %12967 = vst [vmem:[#allocation8_spill] sm:$0xff] %v11063_v35  ;;  %12969 = vst [vmem:[#allocation9_spill] sm:$0xff] %v11077_v19  ;;  %v11081_v3 = vrot.slane %v12970_v0, 7  ;;  %v11090_v33 = vsel %vm375_vm1, %v11059_v46, %v11063_v35  ;;  %v12976_v0 = vmax.f32 %v10911_v7, 0.0  ;;  %v3459_v35 = vmax.f32 %v10855_v39, 0.0 }
 0x374   : > { %v11085_v4 = vrot.slane %v12972_v12, 7  ;;  %12974 = vst [vmem:[#allocation11_spill] sm:$0xff] %v11094_v10  ;;  %v11098_v19 = vrot.slane %v12975_v41, 7  ;;  %v3458_v12 = vmax.f32 %v10853_v9, 0.0  ;;  %v12979_v14 = vmax.f32 %v10857_v17, 0.0 }
 0x375   : > { %12971 = vst [vmem:[#allocation10_spill] sm:$0xff] %v11081_v3  ;;  %v11102_v18 = vrot.slane %v12976_v0, 7  ;;  %v11108_v28 = vsel %vm375_vm1, %v11067_v2, %v11081_v3  ;;  %v12982_v9 = vmax.f32 %v10859_v30, 0.0  ;;  %v3635_v17 = vrot.slane %v3459_v35, 5 }
 0x376   : > { %12978 = vst [vmem:[#allocation13_spill] sm:$0xff] %v11108_v28  ;;  %v3506_v29 = vrot.slane %v12979_v14, 1  ;;  %v11116_v41 = vsel %vm375_vm1, %v11085_v4, %v11094_v10  ;;  %v3507_v27 = vrot.slane %v3458_v12, 1  ;;  %v3557_v3 = vrot.slane %v3458_v12, 7 }
 0x377   : > { %12977 = vst [vmem:[#allocation12_spill] sm:$0xff] %v11102_v18  ;;  %12980 = vst [vmem:[#allocation14_spill] sm:$0xff] %v11116_v41  ;;  %v11121_v0 = vsel %vm375_vm1, %v11098_v19, %v11102_v18  ;;  %v3634_v7 = vrot.slane %v12982_v9, 5  ;;  %v3558_v28 = vrot.slane %v3459_v35, 7  ;;  %v3730_v10 = vrot.slane %v10968_v1, 1 }
 0x378   : > { %12981 = vst [vmem:[#allocation17_spill] sm:$0xff] %v11121_v0  ;;  %v11126_v39 = vsel %vm375_vm1, %v3506_v29, %v3554_v43  ;;  %v12983_v18 = vmax.f32 %v10861_v8, 0.0  ;;  %v11140_v12 = vsel %vm375_vm1, %v3507_v27, %v3557_v3  ;;  %v12986_v27 = vmax.f32 %v10863_v63, 0.0 }
 0x379   : > { %v3729_v14 = vrot.slane %v11126_v39, 1  ;;  %v11131_v41 = vsel %vm375_vm1, %v3555_v20, %v3634_v7  ;;  %v11137_v9 = vsel %vm375_vm1, %v3557_v3, %v3558_v28  ;;  %v3734_v29 = vrot.slane %v11140_v12, 1  ;;  %v11159_v3 = vld [vmem:[%s12638_s4 + $0x8] sm:$0xf] }
 0x37a   : > { %v3508_v0 = vrot.slane %v12983_v18, 1  ;;  %v3732_v30 = vrot.slane %v11131_v41, 1  ;;  %v3735_v43 = vrot.slane %v11137_v9, 1  ;;  %v11148_v7 = vsel %vm375_vm1, %v3558_v28, %v3635_v17 }
 0x37b   : > { %v11143_v35 = vsel %vm551_vm2, %v3729_v14, %v3730_v10  ;;  %v3737_v18 = vrot.slane %v11148_v7, 1  ;;  %v3636_v20 = vrot.slane %v12986_v27, 5  ;;  %v12987_v17 = vmax.f32 %v10865_v21, 0.0 }
 0x37c   : > { %12984 = vst [vmem:[#allocation19_spill] sm:$0xff] %v11143_v35  ;;  %8420 = vmatprep.mubr.msk.f32.mxu1 %vm629_vm3, %v11143_v35  ;;  %v11153_v8 = vsel %vm551_vm2, %v3730_v10, %v3732_v30  ;;  %v11166_v28 = vsel %vm551_vm2, %v3734_v29, %v3735_v43  ;;  %v11172_v14 = vsel %vm375_vm1, %v3508_v0, %v10949_v61  ;;  %v12989_v30 = vmax.f32 %v10867_v45, 0.0 }
 0x37d   : > { %12985 = vst [vmem:[#allocation20_spill] sm:$0xff] %v11153_v8  ;;  %8421 = vmatmul.mubr.msk.f32.vlgmr.msra.gmra.mrb[0].mxu1 %vm629_vm3, %v11153_v8  ;;  %v3509_v10 = vrot.slane %v12987_v17, 1  ;;  %v11181_v63 = vsel %vm551_vm2, %v3735_v43, %v3737_v18  ;;  %v3739_v61 = vrot.slane %v11172_v14, 1  ;;  %v3740_v0 = vrot.slane %v10985_v48, 1 }
 0x37e   : > { %8469 = vmatpush3.msk.msra.mxu1 %vm690_vm0, %v10672_v32  ;;  %8423 = vmatprep.mubr.msk.f32.mxu1 %vm629_vm3, %v11166_v28  ;;  %12988 = vst [vmem:[#allocation21_spill] sm:$0xff] %v11181_v63  ;;  %v3637_v21 = vrot.slane %v12989_v30, 5  ;;  %v11191_v32 = vsel %vm375_vm1, %v10953_v57, %v3636_v20  ;;  %v12990_v29 = vmax.f32 %v10869_v26, 0.0  ;;  %v12991_v45 = vmax.f32 %v10871_v22, 0.0 }
 0x37f   : > { %8518 = vmatprep.subr.msk.mxu1 %vm690_vm0, %v11159_v3  ;;  %v11197_v43 = vsel %vm375_vm1, %v3509_v10, %v10957_v51  ;;  %v3742_v17 = vrot.slane %v11191_v32, 1  ;;  %v11207_v57 = vsel %vm551_vm2, %v3739_v61, %v3740_v0  ;;  %v3745_v20 = vrot.slane %v10990_v6, 1 }
 0x380   : > { %v3510_v27 = vrot.slane %v12990_v29, 1  ;;  %v3638_v18 = vrot.slane %v12991_v45, 5  ;;  %12992 = vst [vmem:[#allocation23_spill] sm:$0xff] %v11207_v57  ;;  %v3744_v26 = vrot.slane %v11197_v43, 1  ;;  %v11213_v51 = vsel %vm375_vm1, %v10961_v13, %v3637_v21 }
 0x381   : > { %8424 = vmatmul.mubr.msk.f32.gmra.mrb[2].mxu1 %vm629_vm3, %v11181_v63  ;;  %v12993_v10 = vmax.f32 %v10873_v16, 0.0  ;;  %v12994_v61 = vmax.f32 %v10875_v54, 0.0  ;;  %v11226_v45 = vsel %vm551_vm2, %v3740_v0, %v3742_v17  ;;  %v12997_v54 = vmax.f32 %v10877_v42, 0.0 }
 0x382   : > { %8426 = vmatprep.mubr.msk.f32.mxu1 %vm629_vm3, %v11143_v35  ;;  %v11219_v30 = vsel %vm375_vm1, %v3510_v27, %v10965_v47  ;;  %12995 = vst [vmem:[#allocation24_spill] sm:$0xff] %v11226_v45  ;;  %v11232_v16 = vsel %vm551_vm2, %v3744_v26, %v3745_v20  ;;  %v3750_v47 = vrot.slane %v11003_v44, 1  ;;  %v11238_v21 = vsel %vm375_vm1, %v10972_v31, %v3638_v18 }
 0x383   : > { %v3511_v22 = vrot.slane %v12993_v10, 1  ;;  %v3639_v29 = vrot.slane %v12994_v61, 5  ;;  %12996 = vst [vmem:[#allocation25_spill] sm:$0xff] %v11232_v16  ;;  %v3749_v13 = vrot.slane %v11219_v30, 1  ;;  %v3512_v0 = vrot.slane %v12997_v54, 1 }
 0x384   : > { %v12998_v17 = vmax.f32 %v10879_v23, 0.0  ;;  %v3752_v61 = vrot.slane %v11238_v21, 1  ;;  %v13001_v23 = vmax.f32 %v10881_v56, 0.0 }
 0x385   : > { %8427 = vmatmul.mubr.msk.f32.gmra.mrb[4].mxu1 %vm629_vm3, %v11153_v8  ;;  %v3747_v8 = vrot.slane %v11213_v51, 1  ;;  %v11244_v27 = vsel %vm375_vm1, %v3511_v22, %v10976_v60  ;;  %v11257_v42 = vsel %vm551_vm2, %v3749_v13, %v3750_v47  ;;  %v3755_v60 = vrot.slane %v11008_v52, 1 }
 0x386   : > { %8429 = vmatprep.mubr.msk.f32.mxu1 %vm629_vm3, %v11207_v57  ;;  %v3640_v26 = vrot.slane %v12998_v17, 5  ;;  %13000 = vst [vmem:[#allocation31_spill] sm:$0xff] %v11257_v42  ;;  %v3754_v31 = vrot.slane %v11244_v27, 1  ;;  %v11263_v18 = vsel %vm375_vm1, %v10980_v34, %v3639_v29  ;;  %v13002_v22 = vmax.f32 %v10883_v38, 0.0 }
 0x387   : > { %v11251_v10 = vsel %vm551_vm2, %v3745_v20, %v3747_v8  ;;  %v3513_v8 = vrot.slane %v13001_v23, 1  ;;  %v11269_v20 = vsel %vm375_vm1, %v3512_v0, %v10994_v58  ;;  %v11276_v54 = vsel %vm551_vm2, %v3750_v47, %v3752_v61 }
 0x388   : > { %12999 = vst [vmem:[#allocation30_spill] sm:$0xff] %v11251_v10  ;;  %v3641_v13 = vrot.slane %v13002_v22, 5  ;;  %13003 = vst [vmem:[#allocation32_spill] sm:$0xff] %v11276_v54  ;;  %v3757_v17 = vrot.slane %v11263_v18, 1  ;;  %v11282_v56 = vsel %vm551_vm2, %v3754_v31, %v3755_v60  ;;  %v3759_v34 = vrot.slane %v11269_v20, 1 }
 0x389   : > { %8430 = vmatmul.mubr.msk.f32.gmra.mrb[6].mxu1 %vm629_vm3, %v11226_v45  ;;  %13004 = vst [vmem:[#allocation33_spill] sm:$0xff] %v11282_v56  ;;  %v3760_v58 = vrot.slane %v11021_v11, 1  ;;  %v11288_v29 = vsel %vm375_vm1, %v10998_v62, %v3640_v26  ;;  %v13005_v38 = vmax.f32 %v10885_v49, 0.0  ;;  %v11294_v0 = vsel %vm375_vm1, %v3513_v8, %v11012_v24 }
 0x38a   : > { %8432 = vmatprep.mubr.msk.f32.mxu1 %vm629_vm3, %v11232_v16  ;;  %v13006_v61 = vmax.f32 %v10887_v37, 0.0  ;;  %v11301_v23 = vsel %vm551_vm2, %v3755_v60, %v3757_v17  ;;  %v3762_v22 = vrot.slane %v11288_v29, 1  ;;  %v3764_v62 = vrot.slane %v11294_v0, 1  ;;  %v13010_v17 = vld [vmem:[#allocation18_spill] sm:$0xff] }
 0x38b   : > { %v3514_v47 = vrot.slane %v13005_v38, 1  ;;  %13007 = vst [vmem:[#allocation34_spill] sm:$0xff] %v11301_v23  ;;  %v11307_v49 = vsel %vm551_vm2, %v3759_v34, %v3760_v58  ;;  %v3765_v24 = vrot.slane %v11038_v55, 1  ;;  %v11313_v26 = vsel %vm375_vm1, %v11016_v50, %v3641_v13 }
 0x38c   : > { %v3642_v31 = vrot.slane %v13006_v61, 5  ;;  %13008 = vst [vmem:[#allocation35_spill] sm:$0xff] %v11307_v49  ;;  %v13009_v37 = vmax.f32 %v10889_v15, 0.0  ;;  %v13011_v34 = vmax.f32 %v13010_v17, 0.0  ;;  %v11326_v61 = vsel %vm551_vm2, %v3760_v58, %v3762_v22 }
 0x38d   : > { %8433 = vmatmul.mubr.msk.f32.gmra.mrb[8].mxu1 %vm629_vm3, %v11251_v10  ;;  %v11319_v8 = vsel %vm375_vm1, %v3514_v47, %v11025_v40  ;;  %13012 = vst [vmem:[#allocation37_spill] sm:$0xff] %v11326_v61  ;;  %v11332_v15 = vsel %vm551_vm2, %v3764_v62, %v3765_v24  ;;  %v3770_v40 = vrot.slane %v11055_v36, 1  ;;  %v13014_v47 = vld [vmem:[#allocation22_spill] sm:$0xff]  ;;  %v13016_v62 = vld [vmem:[#allocation16_spill] sm:$0xff] }
 0x38e   : > { %8435 = vmatprep.mubr.msk.f32.mxu1 %vm629_vm3, %v11257_v42  ;;  %v3515_v60 = vrot.slane %v13009_v37, 1  ;;  %v3643_v38 = vrot.slane %v13011_v34, 5  ;;  %13013 = vst [vmem:[#allocation38_spill] sm:$0xff] %v11332_v15  ;;  %v3769_v50 = vrot.slane %v11319_v8, 1  ;;  %v11338_v13 = vsel %vm375_vm1, %v11029_v59, %v3642_v31  ;;  %v13017_v34 = vld [vmem:[#allocation27_spill] sm:$0xff]  ;;  %v13036_v10 = vld [vmem:[#allocation36_spill] sm:$0xff] }
 0x38f   : > { %v13015_v37 = vmax.f32 %v13014_v47, 0.0  ;;  %v3772_v59 = vrot.slane %v11338_v13, 1  ;;  %v13021_v47 = vld [vmem:[#allocation6_spill] sm:$0xff]  ;;  %v13037_v16 = vmax.f32 %v13036_v10, 0.0  ;;  %v13040_v10 = vld [vmem:[#allocation8_spill] sm:$0xff] }
 0x390   : > { %v11344_v22 = vsel %vm375_vm1, %v3515_v60, %v11033_v53  ;;  %v11358_v31 = vsel %vm551_vm2, %v3769_v50, %v3770_v40  ;;  %v3775_v60 = vrot.slane %v11072_v25, 1  ;;  %v13025_v50 = vmax.f32 %v13016_v62, 0.0 }
 0x391   : > { %8436 = vmatmul.mubr.msk.f32.gmra.mrb[10].mxu1 %vm629_vm3, %v11276_v54  ;;  %v3516_v58 = vrot.slane %v13015_v37, 1  ;;  %13020 = vst [vmem:[#allocation40_spill] sm:$0xff] %v11358_v31  ;;  %v3774_v53 = vrot.slane %v11344_v22, 1  ;;  %v11364_v37 = vsel %vm375_vm1, %v13021_v47, %v3643_v38  ;;  %v13026_v54 = vld [vmem:[#allocation26_spill] sm:$0xff]  ;;  %v11382_v47 = vsel %vm551_vm2, %v3770_v40, %v3772_v59 }
 0x392   : > { %8438 = vmatprep.mubr.msk.f32.mxu1 %vm629_vm3, %v11282_v56  ;;  %v13027_v42 = vmax.f32 %v13026_v54, 0.0  ;;  %13028 = vst [vmem:[#allocation42_spill] sm:$0xff] %v11382_v47  ;;  %v3646_v45 = vrot.slane %v13037_v16, 5  ;;  %v3785_v16 = vrot.slane %v11090_v33, 1 }
 0x394   : > { %v3645_v38 = vrot.slane %v13027_v42, 5  ;;  %v13032_v42 = vld [vmem:[#allocation29_spill] sm:$0xff] }
 0x395   : > { %8439 = vmatmul.mubr.msk.f32.gmra.mrb[12].mxu1 %vm629_vm3, %v11301_v23  ;;  %v3767_v23 = vrot.slane %v11313_v26, 1  ;;  %v13033_v54 = vmax.f32 %v13032_v42, 0.0 }
 0x396   : > { %8441 = vmatprep.mubr.msk.f32.mxu1 %vm629_vm3, %v11307_v49 }
 0x397   : > { %v11352_v56 = vsel %vm551_vm2, %v3765_v24, %v3767_v23  ;;  %v13023_v23 = vld [vmem:[#allocation28_spill] sm:$0xff]  ;;  %v3518_v40 = vrot.slane %v13033_v54, 1 }
 0x398   : > { %13019 = vst [vmem:[#allocation39_spill] sm:$0xff] %v11352_v56  ;;  %v13024_v24 = vmax.f32 %v13023_v23, 0.0  ;;  %v3777_v23 = vrot.slane %v11364_v37, 1 }
 0x399   : > { %8442 = vmatmul.mubr.msk.f32.gmra.mrb[14].mxu1 %vm629_vm3, %v11326_v61  ;;  %v13018_v61 = vmax.f32 %v13017_v34, 0.0 }
 0x39a   : > { %8444 = vmatprep.mubr.msk.f32.mxu1 %vm629_vm3, %v11332_v15  ;;  %v3517_v17 = vrot.slane %v13024_v24, 1  ;;  %v11371_v15 = vsel %vm375_vm1, %v3516_v58, %v11046_v5  ;;  %v11388_v5 = vsel %vm551_vm2, %v3774_v53, %v3775_v60  ;;  %v13030_v24 = vld [vmem:[#allocation9_spill] sm:$0xff] }
 0x39b   : > { %v3644_v49 = vrot.slane %v13018_v61, 5  ;;  %v13022_v61 = vld [vmem:[#allocation5_spill] sm:$0xff]  ;;  %13029 = vst [vmem:[#allocation18_spill] sm:$0xff] %v11388_v5  ;;  %v3779_v58 = vrot.slane %v11371_v15, 1  ;;  %v3780_v34 = vrot.slane %v13030_v24, 1 }
 0x39c   : > { %v11400_v59 = vsel %vm375_vm1, %v3517_v17, %v11059_v46  ;;  %v13034_v53 = vmax.f32 %v13022_v61, 0.0 }
 0x39d   : > { %8445 = vmatmul.mubr.msk.f32.gmra.mrb[16].mxu1 %vm629_vm3, %v11352_v56  ;;  %v11377_v56 = vrot.slane %v13025_v50, 7  ;;  %v13031_v50 = vld [vmem:[#allocation7_spill] sm:$0xff]  ;;  %v11422_v17 = vsel %vm551_vm2, %v3779_v58, %v3780_v34  ;;  %v3784_v42 = vrot.slane %v11400_v59, 1  ;;  %v13043_v58 = vld [vmem:[#allocation2_spill] sm:$0xff] }
 0x39e   : > { %8447 = vmatprep.mubr.msk.f32.mxu1 %vm629_vm3, %v11358_v31  ;;  %v11394_v31 = vsel %vm375_vm1, %v13031_v50, %v3644_v49  ;;  %v11411_v49 = vsel %vm551_vm2, %v3775_v60, %v3777_v23  ;;  %13039 = vst [vmem:[#allocation27_spill] sm:$0xff] %v11422_v17  ;;  %v11428_v60 = vsel %vm375_vm1, %v13040_v10, %v3645_v38  ;;  %v13041_v23 = vld [vmem:[#allocation41_spill] sm:$0xff]  ;;  %v13044_v61 = vmax.f32 %v13043_v58, 0.0 }
 0x39f   : > { %13038 = vst [vmem:[#allocation16_spill] sm:$0xff] %v11411_v49  ;;  %v3782_v50 = vrot.slane %v11394_v31, 1  ;;  %v13042_v54 = vmax.f32 %v13041_v23, 0.0  ;;  %v3787_v57 = vrot.slane %v11428_v60, 1  ;;  %v11447_v38 = vsel %vm551_vm2, %v3784_v42, %v3785_v16  ;;  %v13048_v23 = vld [vmem:[#allocation10_spill] sm:$0xff]  ;;  %v13051_v42 = vld [vmem:[#allocation4_spill] sm:$0xff] }
 0x3a0   : > { %13046 = vst [vmem:[#allocation28_spill] sm:$0xff] %v11447_v38 }
 0x3a1   : > { %8448 = vmatmul.mubr.msk.f32.gmra.mrb[18].mxu1 %vm629_vm3, %v11382_v47  ;;  %v11406_v47 = vrot.slane %v13034_v53, 7  ;;  %v3519_v53 = vrot.slane %v13042_v54, 1  ;;  %v11453_v54 = vsel %vm375_vm1, %v13048_v23, %v3646_v45  ;;  %v11466_v35 = vsel %vm551_vm2, %v3785_v16, %v3787_v57 }
 0x3a2   : > { %8450 = vmatprep.mubr.msk.f32.mxu1 %vm629_vm3, %v11388_v5  ;;  %v11441_v5 = vsel %vm551_vm2, %v3780_v34, %v3782_v50  ;;  %13053 = vst [vmem:[#allocation26_spill] sm:$0xff] %v11466_v35  ;;  %v3792_v63 = vrot.slane %v11453_v54, 1 }
 0x3a3   : > { %13035 = vst [vmem:[#allocation22_spill] sm:$0xff] %v11406_v47  ;;  %v11417_v46 = vsel %vm375_vm1, %v11377_v56, %v11406_v47  ;;  %v11434_v47 = vsel %vm375_vm1, %v3518_v40, %v11067_v2  ;;  %13045 = vst [vmem:[#allocation6_spill] sm:$0xff] %v11441_v5  ;;  %v13047_v40 = vld [vmem:[#allocation13_spill] sm:$0xff]  ;;  %v11459_v50 = vsel %vm375_vm1, %v3519_v53, %v11085_v4  ;;  %v13055_v53 = vld [vmem:[#allocation14_spill] sm:$0xff] }
 0x3a4   : > { %v3789_v2 = vrot.slane %v11434_v47, 1  ;;  %v3790_v10 = vrot.slane %v13047_v40, 1  ;;  %v3794_v4 = vrot.slane %v11459_v50, 1  ;;  %v3795_v23 = vrot.slane %v13055_v53, 1 }
 0x3a5   : > { %8451 = vmatmul.mubr.msk.f32.gmra.mrb[20].mxu1 %vm629_vm3, %v11411_v49  ;;  %v3647_v49 = vrot.slane %v13044_v61, 5  ;;  %v13049_v61 = vld [vmem:[#allocation3_spill] sm:$0xff] }
 0x3a6   : > { %8453 = vmatprep.mubr.msk.f32.mxu1 %vm629_vm3, %v11422_v17  ;;  %v13050_v58 = vmax.f32 %v13049_v61, 0.0  ;;  %v11472_v45 = vsel %vm551_vm2, %v3789_v2, %v3790_v10  ;;  %v13056_v61 = vld [vmem:[#allocation11_spill] sm:$0xff]  ;;  %v11493_v2 = vsel %vm551_vm2, %v3794_v4, %v3795_v23 }
 0x3a7   : > { %13054 = vst [vmem:[#allocation9_spill] sm:$0xff] %v11472_v45  ;;  %13058 = vst [vmem:[#allocation29_spill] sm:$0xff] %v11493_v2 }
 0x3a8   : > { %v3520_v34 = vrot.slane %v13050_v58, 1  ;;  %v11478_v58 = vsel %vm375_vm1, %v13056_v61, %v3647_v49 }
 0x3a9   : > { %8454 = vmatmul.mubr.msk.f32.gmra.mrb[22].mxu1 %vm629_vm3, %v11441_v5  ;;  %v13052_v5 = vmax.f32 %v13051_v42, 0.0  ;;  %v3797_v16 = vrot.slane %v11478_v58, 1  ;;  %v13059_v42 = vld [vmem:[#allocation17_spill] sm:$0xff] }
 0x3aa   : > { %8456 = vmatprep.mubr.msk.f32.mxu1 %vm629_vm3, %v11447_v38  ;;  %v11482_v57 = vsel %vm375_vm1, %v3520_v34, %v11098_v19  ;;  %v3800_v61 = vrot.slane %v13059_v42, 1  ;;  %v13060_v19 = vld [vmem:[#allocation12_spill] sm:$0xff] }
 0x3ab   : > { %v3648_v17 = vrot.slane %v13052_v5, 5  ;;  %v11487_v5 = vsel %vm551_vm2, %v3790_v10, %v3792_v63  ;;  %v3799_v49 = vrot.slane %v11482_v57, 1  ;;  %v11504_v63 = vsel %vm551_vm2, %v3795_v23, %v3797_v16  ;;  %v7166_v23 = vld [vmem:[%s12638_s4 + $0xc] sm:$0xf] }
 0x3ac   : > { %13057 = vst [vmem:[#allocation7_spill] sm:$0xff] %v11487_v5  ;;  %v4383_v16 = vrot.slane %v10968_v1, 2 }
 0x3ad   : > { %8457 = vmatmul.mubr.msk.f32.gmra.mrb[24].mxu1 %vm629_vm3, %v11466_v35  ;;  %v11499_v34 = vsel %vm375_vm1, %v13060_v19, %v3648_v17  ;;  %v11510_v4 = vsel %vm551_vm2, %v3799_v49, %v3800_v61  ;;  %v4385_v49 = vrot.slane %v11131_v41, 2  ;;  %v4387_v19 = vrot.slane %v11140_v12, 2  ;;  %v11606_v41 = vld [vmem:[%s12638_s4 + $0x10] sm:$0xf] }
 0x3ae   : > { %8459 = vmatprep.mubr.msk.f32.mxu1 %vm629_vm3, %v11472_v45  ;;  %v3802_v10 = vrot.slane %v11499_v34, 1  ;;  %13061 = vst [vmem:[#allocation36_spill] sm:$0xff] %v11510_v4 }
 0x3b0   : > { %v11515_v17 = vsel %vm551_vm2, %v3800_v61, %v3802_v10  ;;  %v4388_v10 = vrot.slane %v11137_v9, 2 }
 0x3b1   : > { %8460 = vmatmul.mubr.msk.f32.gmra.mrb[26].mxu1 %vm629_vm3, %v11487_v5  ;;  %13062 = vst [vmem:[#allocation8_spill] sm:$0xff] %v11515_v17 }
 0x3b2   : > { %8462 = vmatprep.mubr.msk.f32.mxu1 %vm629_vm3, %v11493_v2 }
 0x3b5   : > { %8463 = vmatmul.mubr.msk.f32.gmra.mrb[28].mxu1 %vm629_vm3, %v11504_v63 }
 0x3b6   : > { %8465 = vmatprep.mubr.msk.f32.mxu1 %vm629_vm3, %v11510_v4  ;;  %v4390_v4 = vrot.slane %v11148_v7, 2 }
 0x3b8   : > { %v11619_v7 = vsel %vm1207_vm4, %v4388_v10, %v4390_v4  ;;  %v4397_v4 = vrot.slane %v11197_v43, 2 }
 0x3b9   : > { %8466 = vmatmul.mubr.msk.f32.gmra.mrb[30].mxu1 %vm629_vm3, %v11515_v17  ;;  %v11600_v17 = vsel %vm1207_vm4, %v4383_v16, %v4385_v49  ;;  %13065 = vst [vmem:[#allocation13_spill] sm:$0xff] %v11619_v7  ;;  %v4393_v49 = vrot.slane %v10985_v48, 2 }
 0x3ba   : > { %8470 = vmatprep.mubr.msk.f32.mxu1 %vm629_vm3, %v11126_v39  ;;  %13064 = vst [vmem:[#allocation2_spill] sm:$0xff] %v11600_v17 }
 0x3bd   : > { %8471 = vmatmul.mubr.msk.f32.vlgmr.msra.gmra.mrb[0].mxu1 %vm629_vm3, %v10968_v1 }
 0x3be   : > { %8519 = vmatpush3.msk.msra.mxu1 %vm690_vm0, %v11159_v3  ;;  %8473 = vmatprep.mubr.msk.f32.mxu1 %vm629_vm3, %v11140_v12  ;;  %v4382_v3 = vrot.slane %v11126_v39, 2 }
 0x3bf   : > { %8568 = vmatprep.subr.msk.mxu1 %vm690_vm0, %v7166_v23 }
 0x3c0   : > { %v11593_v61 = vsel %vm1207_vm4, %v4382_v3, %v4383_v16  ;;  %v11611_v3 = vsel %vm1207_vm4, %v4387_v19, %v4388_v10  ;;  %v4392_v16 = vrot.slane %v11172_v14, 2  ;;  %v4398_v10 = vrot.slane %v10990_v6, 2 }
 0x3c1   : > { %8474 = vmatmul.mubr.msk.f32.gmra.mrb[2].mxu1 %vm629_vm3, %v11137_v9  ;;  %13063 = vst [vmem:[#allocation41_spill] sm:$0xff] %v11593_v61 }
 0x3c2   : > { %8476 = vmatprep.mubr.msk.f32.mxu1 %vm629_vm3, %v11126_v39  ;;  %v11631_v19 = vsel %vm1207_vm4, %v4392_v16, %v4393_v49  ;;  %v4402_v16 = vrot.slane %v11219_v30, 2 }
 0x3c3   : > { %13066 = vst [vmem:[#allocation10_spill] sm:$0xff] %v11631_v19 }
 0x3c5   : > { %8477 = vmatmul.mubr.msk.f32.gmra.mrb[4].mxu1 %vm629_vm3, %v10968_v1 }
 0x3c6   : > { %8479 = vmatprep.mubr.msk.f32.mxu1 %vm629_vm3, %v11172_v14 }
 0x3c9   : > { %8480 = vmatmul.mubr.msk.f32.gmra.mrb[6].mxu1 %vm629_vm3, %v10985_v48 }
 0x3ca   : > { %8482 = vmatprep.mubr.msk.f32.mxu1 %vm629_vm3, %v11197_v43 }
 0x3cd   : > { %8483 = vmatmul.mubr.msk.f32.gmra.mrb[8].mxu1 %vm629_vm3, %v10990_v6 }
 0x3ce   : > { %8485 = vmatprep.mubr.msk.f32.mxu1 %vm629_vm3, %v11219_v30 }
 0x3d1   : > { %8486 = vmatmul.mubr.msk.f32.gmra.mrb[10].mxu1 %vm629_vm3, %v11003_v44 }
 0x3d2   : > { %8488 = vmatprep.mubr.msk.f32.mxu1 %vm629_vm3, %v11244_v27 }
 0x3d5   : > { %8489 = vmatmul.mubr.msk.f32.gmra.mrb[12].mxu1 %vm629_vm3, %v11008_v52 }
 0x3d6   : > { %8491 = vmatprep.mubr.msk.f32.mxu1 %vm629_vm3, %v11269_v20 }
 0x3d9   : > { %8492 = vmatmul.mubr.msk.f32.gmra.mrb[14].mxu1 %vm629_vm3, %v11021_v11 }
 0x3da   : > { %8494 = vmatprep.mubr.msk.f32.mxu1 %vm629_vm3, %v11294_v0 }
 0x3dd   : > { %8495 = vmatmul.mubr.msk.f32.gmra.mrb[16].mxu1 %vm629_vm3, %v11038_v55 }
 0x3de   : > { %8497 = vmatprep.mubr.msk.f32.mxu1 %vm629_vm3, %v11319_v8 }
 0x3e1   : > { %8498 = vmatmul.mubr.msk.f32.gmra.mrb[18].mxu1 %vm629_vm3, %v11055_v36 }
 0x3e2   : > { %8500 = vmatprep.mubr.msk.f32.mxu1 %vm629_vm3, %v11344_v22 }
 0x3e5   : > { %8501 = vmatmul.mubr.msk.f32.gmra.mrb[20].mxu1 %vm629_vm3, %v11072_v25 }
 0x3e6   : > { %8503 = vmatprep.mubr.msk.f32.mxu1 %vm629_vm3, %v11371_v15 }
 0x3e9   : > { %8504 = vmatmul.mubr.msk.f32.gmra.mrb[22].mxu1 %vm629_vm3, %v13030_v24 }
 0x3ea   : > { %8506 = vmatprep.mubr.msk.f32.mxu1 %vm629_vm3, %v11400_v59 }
 0x3ed   : > { %8507 = vmatmul.mubr.msk.f32.gmra.mrb[24].mxu1 %vm629_vm3, %v11090_v33 }
 0x3ee   : > { %8509 = vmatprep.mubr.msk.f32.mxu1 %vm629_vm3, %v11434_v47 }
 0x3f1   : > { %8510 = vmatmul.mubr.msk.f32.gmra.mrb[26].mxu1 %vm629_vm3, %v13047_v40 }
 0x3f2   : > { %8512 = vmatprep.mubr.msk.f32.mxu1 %vm629_vm3, %v11459_v50 }
 0x3f5   : > { %8513 = vmatmul.mubr.msk.f32.gmra.mrb[28].mxu1 %vm629_vm3, %v13055_v53 }
 0x3f6   : > { %8515 = vmatprep.mubr.msk.f32.mxu1 %vm629_vm3, %v11482_v57 }
 0x3f9   : > { %8516 = vmatmul.mubr.msk.f32.gmra.mrb[30].mxu1 %vm629_vm3, %v13059_v42 }
 0x3fa   : > { %8520 = vmatprep.mubr.msk.f32.mxu1 %vm629_vm3, %v11593_v61 }
 0x3fd   : > { %8521 = vmatmul.mubr.msk.f32.vlgmr.msra.gmra.mrb[0].mxu1 %vm629_vm3, %v11600_v17 }
 0x3fe   : > { %8569 = vmatpush3.msk.msra.mxu1 %vm690_vm0, %v7166_v23  ;;  %8523 = vmatprep.mubr.msk.f32.mxu1 %vm629_vm3, %v11611_v3  ;;  %v4395_v23 = vrot.slane %v11191_v32, 2  ;;  %v11644_v32 = vsel %vm1207_vm4, %v4397_v4, %v4398_v10  ;;  %v4408_v4 = vrot.slane %v11008_v52, 2 }
 0x3ff   : > { %8618 = vmatprep.subr.msk.mxu1 %vm690_vm0, %v11606_v41  ;;  %13067 = vst [vmem:[#allocation3_spill] sm:$0xff] %v11644_v32 }
 0x401   : > { %8524 = vmatmul.mubr.msk.f32.gmra.mrb[2].mxu1 %vm629_vm3, %v11619_v7  ;;  %v11638_v7 = vsel %vm1207_vm4, %v4393_v49, %v4395_v23  ;;  %v4405_v49 = vrot.slane %v11238_v21, 2  ;;  %v4407_v23 = vrot.slane %v11244_v27, 2 }
 0x402   : > { %8526 = vmatprep.mubr.msk.f32.mxu1 %vm629_vm3, %v11593_v61  ;;  %v4400_v61 = vrot.slane %v11213_v51, 2 }
 0x403   : > { %v11670_v21 = vsel %vm1207_vm4, %v4407_v23, %v4408_v4  ;;  %v4418_v23 = vrot.slane %v11038_v55, 2 }
 0x404   : > { %13069 = vst [vmem:[#allocation14_spill] sm:$0xff] %v11670_v21 }
 0x405   : > { %8527 = vmatmul.mubr.msk.f32.gmra.mrb[4].mxu1 %vm629_vm3, %v11600_v17  ;;  %v4403_v17 = vrot.slane %v11003_v44, 2 }
 0x406   : > { %8529 = vmatprep.mubr.msk.f32.mxu1 %vm629_vm3, %v11631_v19  ;;  %v11651_v19 = vsel %vm1207_vm4, %v4398_v10, %v4400_v61  ;;  %v4410_v61 = vrot.slane %v11263_v18, 2  ;;  %v4412_v10 = vrot.slane %v11269_v20, 2 }
 0x407   : > { %v11657_v51 = vsel %vm1207_vm4, %v4402_v16, %v4403_v17  ;;  %v4413_v16 = vrot.slane %v11021_v11, 2 }
 0x408   : > { %13068 = vst [vmem:[#allocation4_spill] sm:$0xff] %v11657_v51 }
 0x409   : > { %8530 = vmatmul.mubr.msk.f32.gmra.mrb[6].mxu1 %vm629_vm3, %v11638_v7  ;;  %v11683_v18 = vsel %vm1207_vm4, %v4412_v10, %v4413_v16  ;;  %v4423_v10 = vrot.slane %v11055_v36, 2 }
 0x40a   : > { %8532 = vmatprep.mubr.msk.f32.mxu1 %vm629_vm3, %v11644_v32  ;;  %v11664_v32 = vsel %vm1207_vm4, %v4403_v17, %v4405_v49  ;;  %v4415_v17 = vrot.slane %v11288_v29, 2  ;;  %13070 = vst [vmem:[#allocation11_spill] sm:$0xff] %v11683_v18  ;;  %v4417_v49 = vrot.slane %v11294_v0, 2 }
 0x40c   : > { %v11696_v29 = vsel %vm1207_vm4, %v4417_v49, %v4418_v23  ;;  %v4428_v49 = vrot.slane %v11072_v25, 2 }
 0x40d   : > { %8533 = vmatmul.mubr.msk.f32.gmra.mrb[8].mxu1 %vm629_vm3, %v11651_v19  ;;  %13071 = vst [vmem:[#allocation17_spill] sm:$0xff] %v11696_v29 }
 0x40e   : > { %8535 = vmatprep.mubr.msk.f32.mxu1 %vm629_vm3, %v11657_v51  ;;  %v11677_v51 = vsel %vm1207_vm4, %v4408_v4, %v4410_v61  ;;  %v4420_v4 = vrot.slane %v11313_v26, 2  ;;  %v4422_v61 = vrot.slane %v11319_v8, 2 }
 0x410   : > { %v11709_v26 = vsel %vm1207_vm4, %v4422_v61, %v4423_v10  ;;  %v4433_v61 = vrot.slane %v13030_v24, 2 }
 0x411   : > { %8536 = vmatmul.mubr.msk.f32.gmra.mrb[10].mxu1 %vm629_vm3, %v11664_v32  ;;  %13072 = vst [vmem:[#allocation12_spill] sm:$0xff] %v11709_v26 }
 0x412   : > { %8538 = vmatprep.mubr.msk.f32.mxu1 %vm629_vm3, %v11670_v21  ;;  %v11690_v21 = vsel %vm1207_vm4, %v4413_v16, %v4415_v17  ;;  %v4425_v16 = vrot.slane %v11338_v13, 2  ;;  %v4427_v17 = vrot.slane %v11344_v22, 2 }
 0x414   : > { %v11722_v13 = vsel %vm1207_vm4, %v4427_v17, %v4428_v49  ;;  %v4438_v17 = vrot.slane %v11090_v33, 2 }
 0x415   : > { %8539 = vmatmul.mubr.msk.f32.gmra.mrb[12].mxu1 %vm629_vm3, %v11677_v51  ;;  %13073 = vst [vmem:[#allocation43_spill] sm:$0xff] %v11722_v13 }
 0x416   : > { %8541 = vmatprep.mubr.msk.f32.mxu1 %vm629_vm3, %v11683_v18  ;;  %v11703_v18 = vsel %vm1207_vm4, %v4418_v23, %v4420_v4  ;;  %v4430_v23 = vrot.slane %v11364_v37, 2  ;;  %v4432_v4 = vrot.slane %v11371_v15, 2 }
 0x418   : > { %v11735_v37 = vsel %vm1207_vm4, %v4432_v4, %v4433_v61  ;;  %v4443_v4 = vrot.slane %v13047_v40, 2 }
 0x419   : > { %8542 = vmatmul.mubr.msk.f32.gmra.mrb[14].mxu1 %vm629_vm3, %v11690_v21  ;;  %13075 = vst [vmem:[#allocation45_spill] sm:$0xff] %v11735_v37 }
 0x41a   : > { %8544 = vmatprep.mubr.msk.f32.mxu1 %vm629_vm3, %v11696_v29  ;;  %v11716_v29 = vsel %vm1207_vm4, %v4423_v10, %v4425_v16  ;;  %v4435_v10 = vrot.slane %v11394_v31, 2  ;;  %v4437_v16 = vrot.slane %v11400_v59, 2 }
 0x41c   : > { %v11748_v31 = vsel %vm1207_vm4, %v4437_v16, %v4438_v17  ;;  %v4448_v16 = vrot.slane %v13055_v53, 2 }
 0x41d   : > { %8545 = vmatmul.mubr.msk.f32.gmra.mrb[16].mxu1 %vm629_vm3, %v11703_v18  ;;  %13076 = vst [vmem:[#allocation46_spill] sm:$0xff] %v11748_v31 }
 0x41e   : > { %8547 = vmatprep.mubr.msk.f32.mxu1 %vm629_vm3, %v11709_v26  ;;  %v11729_v26 = vsel %vm1207_vm4, %v4428_v49, %v4430_v23  ;;  %v4440_v49 = vrot.slane %v11428_v60, 2  ;;  %v4442_v23 = vrot.slane %v11434_v47, 2 }
 0x41f   : > { %13074 = vst [vmem:[#allocation44_spill] sm:$0xff] %v11729_v26 }
 0x420   : > { %v11761_v60 = vsel %vm1207_vm4, %v4442_v23, %v4443_v4  ;;  %v4453_v23 = vrot.slane %v13059_v42, 2 }
 0x421   : > { %8548 = vmatmul.mubr.msk.f32.gmra.mrb[18].mxu1 %vm629_vm3, %v11716_v29  ;;  %13078 = vst [vmem:[#allocation48_spill] sm:$0xff] %v11761_v60 }
 0x422   : > { %8550 = vmatprep.mubr.msk.f32.mxu1 %vm629_vm3, %v11722_v13  ;;  %v11742_v13 = vsel %vm1207_vm4, %v4433_v61, %v4435_v10  ;;  %v4445_v61 = vrot.slane %v11453_v54, 2  ;;  %v4447_v10 = vrot.slane %v11459_v50, 2 }
 0x424   : > { %v11774_v54 = vsel %vm1207_vm4, %v4447_v10, %v4448_v16  ;;  %v13081_v10 = vld [vmem:[#allocation21_spill] sm:$0xff] }
 0x425   : > { %8551 = vmatmul.mubr.msk.f32.gmra.mrb[20].mxu1 %vm629_vm3, %v11729_v26  ;;  %13079 = vst [vmem:[#allocation49_spill] sm:$0xff] %v11774_v54 }
 0x426   : > { %8553 = vmatprep.mubr.msk.f32.mxu1 %vm629_vm3, %v11735_v37  ;;  %v11755_v37 = vsel %vm1207_vm4, %v4438_v17, %v4440_v49  ;;  %v4450_v17 = vrot.slane %v11478_v58, 2  ;;  %v4452_v49 = vrot.slane %v11482_v57, 2 }
 0x427   : > { %13077 = vst [vmem:[#allocation47_spill] sm:$0xff] %v11755_v37 }
 0x428   : > { %v11787_v58 = vsel %vm1207_vm4, %v4452_v49, %v4453_v23  ;;  %v13086_v49 = vld [vmem:[#allocation25_spill] sm:$0xff] }
 0x429   : > { %8554 = vmatmul.mubr.msk.f32.gmra.mrb[22].mxu1 %vm629_vm3, %v11742_v13 }
 0x42a   : > { %8556 = vmatprep.mubr.msk.f32.mxu1 %vm629_vm3, %v11748_v31  ;;  %v11768_v31 = vsel %vm1207_vm4, %v4443_v4, %v4445_v61  ;;  %v4455_v4 = vrot.slane %v11499_v34, 2  ;;  %v7234_v34 = vld [vmem:[%s12638_s4 + $0x14] sm:$0xf] }
 0x42c   : > { %v11792_v61 = vsel %vm1207_vm4, %v4453_v23, %v4455_v4  ;;  %v13087_v23 = vld [vmem:[#allocation30_spill] sm:$0xff]  ;;  %v13088_v4 = vld [vmem:[#allocation31_spill] sm:$0xff] }
 0x42d   : > { %8557 = vmatmul.mubr.msk.f32.gmra.mrb[24].mxu1 %vm629_vm3, %v11755_v37 }
 0x42e   : > { %8559 = vmatprep.mubr.msk.f32.mxu1 %vm629_vm3, %v11761_v60  ;;  %v11781_v60 = vsel %vm1207_vm4, %v4448_v16, %v4450_v17  ;;  %v13083_v16 = vld [vmem:[#allocation20_spill] sm:$0xff]  ;;  %v13084_v17 = vld [vmem:[#allocation23_spill] sm:$0xff] }
 0x431   : > { %8560 = vmatmul.mubr.msk.f32.gmra.mrb[26].mxu1 %vm629_vm3, %v11768_v31 }
 0x432   : > { %8562 = vmatprep.mubr.msk.f32.mxu1 %vm629_vm3, %v11774_v54 }
 0x435   : > { %8563 = vmatmul.mubr.msk.f32.gmra.mrb[28].mxu1 %vm629_vm3, %v11781_v60 }
 0x436   : > { %8565 = vmatprep.mubr.msk.f32.mxu1 %vm629_vm3, %v11787_v58 }
 0x439   : > { %8566 = vmatmul.mubr.msk.f32.gmra.mrb[30].mxu1 %vm629_vm3, %v11792_v61 }
 0x43a   : > { %8570 = vmatprep.mubr.msk.f32.mxu1 %vm629_vm3, %v11140_v12 }
 0x43d   : > { %8571 = vmatmul.mubr.msk.f32.vlgmr.msra.gmra.mrb[0].mxu1 %vm629_vm3, %v11137_v9  ;;  %v13080_v9 = vmax.f32 %v13016_v62, 0.0  ;;  %v7268_v62 = vld [vmem:[%s12638_s4 + $0x18] sm:$0xf] }
 0x43e   : > { %8619 = vmatpush3.msk.msra.mxu1 %vm690_vm0, %v11606_v41  ;;  %8573 = vmatprep.mubr.msk.f32.mxu1 %vm629_vm3, %v11126_v39 }
 0x43f   : > { %8668 = vmatprep.subr.msk.mxu1 %vm690_vm0, %v7234_v34  ;;  %v3521_v12 = vrot.slane %v13080_v9, 1  ;;  %v13090_v9 = vld [vmem:[#allocation33_spill] sm:$0xff] }
 0x441   : > { %8574 = vmatmul.mubr.msk.f32.gmra.mrb[2].mxu1 %vm629_vm3, %v10968_v1  ;;  %v11866_v41 = vsel %vm375_vm1, %v3521_v12, %v11377_v56  ;;  %v13082_v56 = vld [vmem:[#allocation19_spill] sm:$0xff]  ;;  %v13091_v12 = vld [vmem:[#allocation34_spill] sm:$0xff] }
 0x442   : > { %8576 = vmatprep.mubr.msk.f32.mxu1 %vm629_vm3, %v11172_v14 }
 0x445   : > { %8577 = vmatmul.mubr.msk.f32.gmra.mrb[4].mxu1 %vm629_vm3, %v10985_v48 }
 0x446   : > { %8579 = vmatprep.mubr.msk.f32.mxu1 %vm629_vm3, %v11197_v43 }
 0x449   : > { %8580 = vmatmul.mubr.msk.f32.gmra.mrb[6].mxu1 %vm629_vm3, %v10990_v6 }
 0x44a   : > { %8582 = vmatprep.mubr.msk.f32.mxu1 %vm629_vm3, %v11219_v30 }
 0x44d   : > { %8583 = vmatmul.mubr.msk.f32.gmra.mrb[8].mxu1 %vm629_vm3, %v11003_v44 }
 0x44e   : > { %8585 = vmatprep.mubr.msk.f32.mxu1 %vm629_vm3, %v11244_v27 }
 0x451   : > { %8586 = vmatmul.mubr.msk.f32.gmra.mrb[10].mxu1 %vm629_vm3, %v11008_v52 }
 0x452   : > { %8588 = vmatprep.mubr.msk.f32.mxu1 %vm629_vm3, %v11269_v20 }
 0x455   : > { %8589 = vmatmul.mubr.msk.f32.gmra.mrb[12].mxu1 %vm629_vm3, %v11021_v11 }
 0x456   : > { %8591 = vmatprep.mubr.msk.f32.mxu1 %vm629_vm3, %v11294_v0 }
 0x459   : > { %8592 = vmatmul.mubr.msk.f32.gmra.mrb[14].mxu1 %vm629_vm3, %v11038_v55 }
 0x45a   : > { %8594 = vmatprep.mubr.msk.f32.mxu1 %vm629_vm3, %v11319_v8 }
 0x45d   : > { %8595 = vmatmul.mubr.msk.f32.gmra.mrb[16].mxu1 %vm629_vm3, %v11055_v36 }
 0x45e   : > { %8597 = vmatprep.mubr.msk.f32.mxu1 %vm629_vm3, %v11344_v22 }
 0x461   : > { %8598 = vmatmul.mubr.msk.f32.gmra.mrb[18].mxu1 %vm629_vm3, %v11072_v25 }
 0x462   : > { %8600 = vmatprep.mubr.msk.f32.mxu1 %vm629_vm3, %v11371_v15 }
 0x465   : > { %8601 = vmatmul.mubr.msk.f32.gmra.mrb[20].mxu1 %vm629_vm3, %v13030_v24 }
 0x466   : > { %8603 = vmatprep.mubr.msk.f32.mxu1 %vm629_vm3, %v11400_v59 }
 0x469   : > { %8604 = vmatmul.mubr.msk.f32.gmra.mrb[22].mxu1 %vm629_vm3, %v11090_v33 }
 0x46a   : > { %8606 = vmatprep.mubr.msk.f32.mxu1 %vm629_vm3, %v11434_v47 }
 0x46d   : > { %8607 = vmatmul.mubr.msk.f32.gmra.mrb[24].mxu1 %vm629_vm3, %v13047_v40 }
 0x46e   : > { %8609 = vmatprep.mubr.msk.f32.mxu1 %vm629_vm3, %v11459_v50 }
 0x471   : > { %8610 = vmatmul.mubr.msk.f32.gmra.mrb[26].mxu1 %vm629_vm3, %v13055_v53 }
 0x472   : > { %8612 = vmatprep.mubr.msk.f32.mxu1 %vm629_vm3, %v11482_v57 }
 0x475   : > { %8613 = vmatmul.mubr.msk.f32.gmra.mrb[28].mxu1 %vm629_vm3, %v13059_v42 }
 0x476   : > { %8615 = vmatprep.mubr.msk.f32.mxu1 %vm629_vm3, %v11866_v41 }
 0x479   : > { %8616 = vmatmul.mubr.msk.f32.gmra.mrb[30].mxu1 %vm629_vm3, %v11417_v46 }
 0x47a   : > { %8620 = vmatprep.mubr.msk.f32.mxu1 %vm629_vm3, %v11166_v28  ;;  %v13085_v28 = vld [vmem:[#allocation24_spill] sm:$0xff] }
 0x47d   : > { %8621 = vmatmul.mubr.msk.f32.vlgmr.msra.gmra.mrb[0].mxu1 %vm629_vm3, %v13081_v10  ;;  %v13092_v10 = vld [vmem:[#allocation35_spill] sm:$0xff] }
 0x47e   : > { %8669 = vmatpush3.msk.msra.mxu1 %vm690_vm0, %v7234_v34  ;;  %8623 = vmatprep.mubr.msk.f32.mxu1 %vm629_vm3, %v13082_v56  ;;  %v13089_v34 = vld [vmem:[#allocation32_spill] sm:$0xff] }
 0x47f   : > { %8718 = vmatprep.subr.msk.mxu1 %vm690_vm0, %v7268_v62 }
 0x481   : > { %8624 = vmatmul.mubr.msk.f32.gmra.mrb[2].mxu1 %vm629_vm3, %v13083_v16 }
 0x482   : > { %8626 = vmatprep.mubr.msk.f32.mxu1 %vm629_vm3, %v13084_v17 }
 0x485   : > { %8627 = vmatmul.mubr.msk.f32.gmra.mrb[4].mxu1 %vm629_vm3, %v13085_v28  ;;  %v13093_v28 = vld [vmem:[#allocation37_spill] sm:$0xff] }
 0x486   : > { %8629 = vmatprep.mubr.msk.f32.mxu1 %vm629_vm3, %v13086_v49  ;;  %v13094_v49 = vld [vmem:[#allocation38_spill] sm:$0xff] }
 0x489   : > { %8630 = vmatmul.mubr.msk.f32.gmra.mrb[6].mxu1 %vm629_vm3, %v13087_v23  ;;  %v13095_v23 = vld [vmem:[#allocation39_spill] sm:$0xff] }
 0x48a   : > { %8632 = vmatprep.mubr.msk.f32.mxu1 %vm629_vm3, %v13088_v4  ;;  %v13096_v4 = vld [vmem:[#allocation40_spill] sm:$0xff] }
 0x48d   : > { %8633 = vmatmul.mubr.msk.f32.gmra.mrb[8].mxu1 %vm629_vm3, %v13089_v34  ;;  %v13097_v34 = vld [vmem:[#allocation42_spill] sm:$0xff] }
 0x48e   : > { %8635 = vmatprep.mubr.msk.f32.mxu1 %vm629_vm3, %v13090_v9  ;;  %v13098_v9 = vld [vmem:[#allocation18_spill] sm:$0xff] }
 0x491   : > { %8636 = vmatmul.mubr.msk.f32.gmra.mrb[10].mxu1 %vm629_vm3, %v13091_v12  ;;  %v13099_v12 = vld [vmem:[#allocation16_spill] sm:$0xff] }
 0x492   : > { %8638 = vmatprep.mubr.msk.f32.mxu1 %vm629_vm3, %v13092_v10  ;;  %v13100_v10 = vld [vmem:[#allocation27_spill] sm:$0xff] }
 0x495   : > { %8639 = vmatmul.mubr.msk.f32.gmra.mrb[12].mxu1 %vm629_vm3, %v13093_v28  ;;  %v13101_v28 = vld [vmem:[#allocation6_spill] sm:$0xff] }
 0x496   : > { %8641 = vmatprep.mubr.msk.f32.mxu1 %vm629_vm3, %v13094_v49 }
 0x499   : > { %8642 = vmatmul.mubr.msk.f32.gmra.mrb[14].mxu1 %vm629_vm3, %v13095_v23 }
 0x49a   : > { %8644 = vmatprep.mubr.msk.f32.mxu1 %vm629_vm3, %v13096_v4 }
 0x49d   : > { %8645 = vmatmul.mubr.msk.f32.gmra.mrb[16].mxu1 %vm629_vm3, %v13097_v34  ;;  %v13102_v34 = vld [vmem:[#allocation5_spill] sm:$0xff] }
 0x49e   : > { %8647 = vmatprep.mubr.msk.f32.mxu1 %vm629_vm3, %v13098_v9  ;;  %v13103_v9 = vmax.f32 %v13102_v34, 0.0 }
 0x4a0   : > { %v3649_v4 = vrot.slane %v13103_v9, 5  ;;  %v13106_v9 = vld [vmem:[#allocation8_spill] sm:$0xff] }
 0x4a1   : > { %8648 = vmatmul.mubr.msk.f32.gmra.mrb[18].mxu1 %vm629_vm3, %v13099_v12 }
 0x4a2   : > { %8650 = vmatprep.mubr.msk.f32.mxu1 %vm629_vm3, %v13100_v10  ;;  %v5048_v10 = vrot.slane %v11417_v46, 1 }
 0x4a5   : > { %8651 = vmatmul.mubr.msk.f32.gmra.mrb[20].mxu1 %vm629_vm3, %v13101_v28  ;;  %v5047_v28 = vrot.slane %v11866_v41, 1 }
 0x4a6   : > { %8653 = vmatprep.mubr.msk.f32.mxu1 %vm629_vm3, %v11447_v38 }
 0x4a9   : > { %8654 = vmatmul.mubr.msk.f32.gmra.mrb[22].mxu1 %vm629_vm3, %v11466_v35  ;;  %v13104_v35 = vld [vmem:[#allocation22_spill] sm:$0xff] }
 0x4aa   : > { %8656 = vmatprep.mubr.msk.f32.mxu1 %vm629_vm3, %v11472_v45  ;;  %v3697_v38 = vsel %vm375_vm1, %v13104_v35, %v3649_v4  ;;  %v13105_v45 = vld [vmem:[#allocation36_spill] sm:$0xff]  ;;  %v7302_v35 = vld [vmem:[%s12638_s4 + $0x1c] sm:$0xf] }
 0x4ab   : > { %v5050_v34 = vrot.slane %v3697_v38, 1  ;;  %v13107_v4 = vld [vmem:[#allocation13_spill] sm:$0xff] }
 0x4ad   : > { %8657 = vmatmul.mubr.msk.f32.gmra.mrb[24].mxu1 %vm629_vm3, %v11487_v5  ;;  %v11944_v5 = vsel %vm551_vm2, %v5047_v28, %v5048_v10  ;;  %v13108_v28 = vld [vmem:[#allocation41_spill] sm:$0xff] }
 0x4ae   : > { %8659 = vmatprep.mubr.msk.f32.mxu1 %vm629_vm3, %v11493_v2  ;;  %v11949_v2 = vsel %vm551_vm2, %v5048_v10, %v5050_v34  ;;  %v13109_v10 = vld [vmem:[#allocation2_spill] sm:$0xff] }
 0x4af   : > { %v13110_v34 = vld [vmem:[#allocation10_spill] sm:$0xff] }
 0x4b1   : > { %8660 = vmatmul.mubr.msk.f32.gmra.mrb[26].mxu1 %vm629_vm3, %v11504_v63 }
 0x4b2   : > { %8662 = vmatprep.mubr.msk.f32.mxu1 %vm629_vm3, %v13105_v45 }
 0x4b5   : > { %8663 = vmatmul.mubr.msk.f32.gmra.mrb[28].mxu1 %vm629_vm3, %v13106_v9 }
 0x4b6   : > { %8665 = vmatprep.mubr.msk.f32.mxu1 %vm629_vm3, %v11944_v5 }
 0x4b9   : > { %8666 = vmatmul.mubr.msk.f32.gmra.mrb[30].mxu1 %vm629_vm3, %v11949_v2 }
 0x4ba   : > { %8670 = vmatprep.mubr.msk.f32.mxu1 %vm629_vm3, %v11611_v3  ;;  %v13111_v3 = vld [vmem:[#allocation3_spill] sm:$0xff] }
 0x4bd   : > { %8671 = vmatmul.mubr.msk.f32.vlgmr.msra.gmra.mrb[0].mxu1 %vm629_vm3, %v13107_v4  ;;  %v13113_v4 = vld [vmem:[#allocation14_spill] sm:$0xff] }
 0x4be   : > { %8719 = vmatpush3.msk.msra.mxu1 %vm690_vm0, %v7268_v62  ;;  %8673 = vmatprep.mubr.msk.f32.mxu1 %vm629_vm3, %v13108_v28  ;;  %v13112_v62 = vld [vmem:[#allocation4_spill] sm:$0xff] }
 0x4bf   : > { %8768 = vmatprep.subr.msk.mxu1 %vm690_vm0, %v7302_v35 }
 0x4c1   : > { %8674 = vmatmul.mubr.msk.f32.gmra.mrb[2].mxu1 %vm629_vm3, %v13109_v10 }
 0x4c2   : > { %8676 = vmatprep.mubr.msk.f32.mxu1 %vm629_vm3, %v13110_v34  ;;  %v13114_v34 = vld [vmem:[#allocation11_spill] sm:$0xff] }
 0x4c5   : > { %8677 = vmatmul.mubr.msk.f32.gmra.mrb[4].mxu1 %vm629_vm3, %v11638_v7 }
 0x4c6   : > { %8679 = vmatprep.mubr.msk.f32.mxu1 %vm629_vm3, %v13111_v3  ;;  %v13115_v3 = vld [vmem:[#allocation17_spill] sm:$0xff] }
 0x4c9   : > { %8680 = vmatmul.mubr.msk.f32.gmra.mrb[6].mxu1 %vm629_vm3, %v11651_v19 }
 0x4ca   : > { %8682 = vmatprep.mubr.msk.f32.mxu1 %vm629_vm3, %v13112_v62  ;;  %v13116_v62 = vld [vmem:[#allocation12_spill] sm:$0xff] }
 0x4cd   : > { %8683 = vmatmul.mubr.msk.f32.gmra.mrb[8].mxu1 %vm629_vm3, %v11664_v32 }
 0x4ce   : > { %8685 = vmatprep.mubr.msk.f32.mxu1 %vm629_vm3, %v13113_v4  ;;  %v13117_v4 = vld [vmem:[#allocation43_spill] sm:$0xff] }
 0x4d1   : > { %8686 = vmatmul.mubr.msk.f32.gmra.mrb[10].mxu1 %vm629_vm3, %v11677_v51 }
 0x4d2   : > { %8688 = vmatprep.mubr.msk.f32.mxu1 %vm629_vm3, %v13114_v34  ;;  %v13118_v34 = vld [vmem:[#allocation45_spill] sm:$0xff] }
 0x4d5   : > { %8689 = vmatmul.mubr.msk.f32.gmra.mrb[12].mxu1 %vm629_vm3, %v11690_v21 }
 0x4d6   : > { %8691 = vmatprep.mubr.msk.f32.mxu1 %vm629_vm3, %v13115_v3  ;;  %v13119_v3 = vld [vmem:[#allocation46_spill] sm:$0xff] }
 0x4d9   : > { %8692 = vmatmul.mubr.msk.f32.gmra.mrb[14].mxu1 %vm629_vm3, %v11703_v18 }
 0x4da   : > { %8694 = vmatprep.mubr.msk.f32.mxu1 %vm629_vm3, %v13116_v62  ;;  %v13120_v62 = vld [vmem:[#allocation48_spill] sm:$0xff] }
 0x4dd   : > { %8695 = vmatmul.mubr.msk.f32.gmra.mrb[16].mxu1 %vm629_vm3, %v11716_v29 }
 0x4de   : > { %8697 = vmatprep.mubr.msk.f32.mxu1 %vm629_vm3, %v13117_v4 }
 0x4e1   : > { %8698 = vmatmul.mubr.msk.f32.gmra.mrb[18].mxu1 %vm629_vm3, %v11729_v26  ;;  %v5319_v26 = vrot.slane %v11417_v46, 2 }
 0x4e2   : > { %8700 = vmatprep.mubr.msk.f32.mxu1 %vm629_vm3, %v13118_v34  ;;  %v5318_v34 = vrot.slane %v11866_v41, 2 }
 0x4e5   : > { %8701 = vmatmul.mubr.msk.f32.gmra.mrb[20].mxu1 %vm629_vm3, %v11742_v13 }
 0x4e6   : > { %8703 = vmatprep.mubr.msk.f32.mxu1 %vm629_vm3, %v13119_v3 }
 0x4e9   : > { %8704 = vmatmul.mubr.msk.f32.gmra.mrb[22].mxu1 %vm629_vm3, %v11755_v37  ;;  %v5321_v37 = vrot.slane %v3697_v38, 2  ;;  %v7336_v38 = vld [vmem:[%s12638_s4 + $0x20] sm:$0xf] }
 0x4ea   : > { %8706 = vmatprep.mubr.msk.f32.mxu1 %vm629_vm3, %v13120_v62  ;;  %v12021_v62 = vsel %vm1207_vm4, %v5318_v34, %v5319_v26 }
 0x4ed   : > { %8707 = vmatmul.mubr.msk.f32.gmra.mrb[24].mxu1 %vm629_vm3, %v11768_v31 }
 0x4ee   : > { %8709 = vmatprep.mubr.msk.f32.mxu1 %vm629_vm3, %v11774_v54  ;;  %v12026_v54 = vsel %vm1207_vm4, %v5319_v26, %v5321_v37 }
 0x4f1   : > { %8710 = vmatmul.mubr.msk.f32.gmra.mrb[26].mxu1 %vm629_vm3, %v11781_v60 }
 0x4f2   : > { %8712 = vmatprep.mubr.msk.f32.mxu1 %vm629_vm3, %v11787_v58 }
 0x4f5   : > { %8713 = vmatmul.mubr.msk.f32.gmra.mrb[28].mxu1 %vm629_vm3, %v11792_v61 }
 0x4f6   : > { %8715 = vmatprep.mubr.msk.f32.mxu1 %vm629_vm3, %v12021_v62 }
 0x4f9   : > { %8716 = vmatmul.mubr.msk.f32.gmra.mrb[30].mxu1 %vm629_vm3, %v12026_v54 }
 0x4fa   : > { %8720 = vmatprep.mubr.msk.f32.mxu1 %vm629_vm3, %v11126_v39  ;;  %v13131_v39 = vld [vmem:[#allocation42_spill] sm:$0xff] }
 0x4fd   : > { %8721 = vmatmul.mubr.msk.f32.vlgmr.msra.gmra.mrb[0].mxu1 %vm629_vm3, %v10968_v1  ;;  %v13121_v1 = vld [vmem:[#allocation24_spill] sm:$0xff] }
 0x4fe   : > { %8769 = vmatpush3.msk.msra.mxu1 %vm690_vm0, %v7302_v35  ;;  %8723 = vmatprep.mubr.msk.f32.mxu1 %vm629_vm3, %v11172_v14  ;;  %v13132_v14 = vld [vmem:[#allocation18_spill] sm:$0xff] }
 0x4ff   : > { %8818 = vmatprep.subr.msk.mxu1 %vm690_vm0, %v7336_v38 }
 0x501   : > { %8724 = vmatmul.mubr.msk.f32.gmra.mrb[2].mxu1 %vm629_vm3, %v10985_v48  ;;  %v13123_v48 = vld [vmem:[#allocation30_spill] sm:$0xff] }
 0x502   : > { %8726 = vmatprep.mubr.msk.f32.mxu1 %vm629_vm3, %v11197_v43  ;;  %v13133_v43 = vld [vmem:[#allocation27_spill] sm:$0xff] }
 0x505   : > { %8727 = vmatmul.mubr.msk.f32.gmra.mrb[4].mxu1 %vm629_vm3, %v10990_v6  ;;  %v13122_v6 = vld [vmem:[#allocation25_spill] sm:$0xff] }
 0x506   : > { %8729 = vmatprep.mubr.msk.f32.mxu1 %vm629_vm3, %v11219_v30  ;;  %v13134_v30 = vld [vmem:[#allocation6_spill] sm:$0xff] }
 0x509   : > { %8730 = vmatmul.mubr.msk.f32.gmra.mrb[6].mxu1 %vm629_vm3, %v11003_v44  ;;  %v13124_v44 = vld [vmem:[#allocation31_spill] sm:$0xff] }
 0x50a   : > { %8732 = vmatprep.mubr.msk.f32.mxu1 %vm629_vm3, %v11244_v27  ;;  %v13135_v27 = vld [vmem:[#allocation28_spill] sm:$0xff] }
 0x50d   : > { %8733 = vmatmul.mubr.msk.f32.gmra.mrb[8].mxu1 %vm629_vm3, %v11008_v52  ;;  %v13128_v52 = vld [vmem:[#allocation35_spill] sm:$0xff] }
 0x50e   : > { %8735 = vmatprep.mubr.msk.f32.mxu1 %vm629_vm3, %v11269_v20  ;;  %v13136_v20 = vld [vmem:[#allocation26_spill] sm:$0xff] }
 0x511   : > { %8736 = vmatmul.mubr.msk.f32.gmra.mrb[10].mxu1 %vm629_vm3, %v11021_v11  ;;  %v13125_v11 = vld [vmem:[#allocation32_spill] sm:$0xff] }
 0x512   : > { %8738 = vmatprep.mubr.msk.f32.mxu1 %vm629_vm3, %v11294_v0  ;;  %v13137_v0 = vld [vmem:[#allocation9_spill] sm:$0xff] }
 0x515   : > { %8739 = vmatmul.mubr.msk.f32.gmra.mrb[12].mxu1 %vm629_vm3, %v11038_v55  ;;  %v13126_v55 = vld [vmem:[#allocation33_spill] sm:$0xff] }
 0x516   : > { %8741 = vmatprep.mubr.msk.f32.mxu1 %vm629_vm3, %v11319_v8  ;;  %v13138_v8 = vld [vmem:[#allocation7_spill] sm:$0xff] }
 0x519   : > { %8742 = vmatmul.mubr.msk.f32.gmra.mrb[14].mxu1 %vm629_vm3, %v11055_v36  ;;  %v13127_v36 = vld [vmem:[#allocation34_spill] sm:$0xff] }
 0x51a   : > { %8744 = vmatprep.mubr.msk.f32.mxu1 %vm629_vm3, %v11344_v22  ;;  %v13140_v22 = vld [vmem:[#allocation10_spill] sm:$0xff] }
 0x51d   : > { %8745 = vmatmul.mubr.msk.f32.gmra.mrb[16].mxu1 %vm629_vm3, %v11072_v25  ;;  %v13129_v25 = vld [vmem:[#allocation37_spill] sm:$0xff] }
 0x51e   : > { %8747 = vmatprep.mubr.msk.f32.mxu1 %vm629_vm3, %v11371_v15  ;;  %v13139_v15 = vld [vmem:[#allocation29_spill] sm:$0xff] }
 0x521   : > { %8748 = vmatmul.mubr.msk.f32.gmra.mrb[18].mxu1 %vm629_vm3, %v13030_v24  ;;  %v13142_v24 = vld [vmem:[#allocation4_spill] sm:$0xff] }
 0x522   : > { %8750 = vmatprep.mubr.msk.f32.mxu1 %vm629_vm3, %v11400_v59  ;;  %v13143_v59 = vld [vmem:[#allocation14_spill] sm:$0xff] }
 0x525   : > { %8751 = vmatmul.mubr.msk.f32.gmra.mrb[20].mxu1 %vm629_vm3, %v11090_v33  ;;  %v13130_v33 = vld [vmem:[#allocation40_spill] sm:$0xff] }
 0x526   : > { %8753 = vmatprep.mubr.msk.f32.mxu1 %vm629_vm3, %v11434_v47  ;;  %v13141_v47 = vld [vmem:[#allocation3_spill] sm:$0xff] }
 0x529   : > { %8754 = vmatmul.mubr.msk.f32.gmra.mrb[22].mxu1 %vm629_vm3, %v13047_v40  ;;  %v13145_v40 = vld [vmem:[#allocation17_spill] sm:$0xff] }
 0x52a   : > { %8756 = vmatprep.mubr.msk.f32.mxu1 %vm629_vm3, %v11459_v50  ;;  %v13146_v50 = vld [vmem:[#allocation12_spill] sm:$0xff] }
 0x52d   : > { %8757 = vmatmul.mubr.msk.f32.gmra.mrb[24].mxu1 %vm629_vm3, %v13055_v53  ;;  %v13148_v53 = vld [vmem:[#allocation45_spill] sm:$0xff] }
 0x52e   : > { %8759 = vmatprep.mubr.msk.f32.mxu1 %vm629_vm3, %v11482_v57 }
 0x531   : > { %8760 = vmatmul.mubr.msk.f32.gmra.mrb[26].mxu1 %vm629_vm3, %v13059_v42 }
 0x532   : > { %8762 = vmatprep.mubr.msk.f32.mxu1 %vm629_vm3, %v11866_v41 }
 0x535   : > { %8763 = vmatmul.mubr.msk.f32.gmra.mrb[28].mxu1 %vm629_vm3, %v11417_v46  ;;  %v13144_v46 = vld [vmem:[#allocation11_spill] sm:$0xff] }
 0x536   : > { %8765 = vmatprep.mubr.msk.f32.mxu1 %vm629_vm3, %v11482_v57  ;;  %v13149_v57 = vld [vmem:[#allocation47_spill] sm:$0xff] }
 0x539   : > { %8766 = vmatmul.mubr.msk.f32.gmra.mrb[30].mxu1 %vm629_vm3, %v13059_v42 }
 0x53a   : > { %8770 = vmatprep.mubr.msk.f32.mxu1 %vm629_vm3, %v13082_v56 }
 0x53d   : > { %8771 = vmatmul.mubr.msk.f32.vlgmr.msra.gmra.mrb[0].mxu1 %vm629_vm3, %v13083_v16 }
 0x53e   : > { %8819 = vmatpush3.msk.msra.mxu1 %vm690_vm0, %v7336_v38  ;;  %8773 = vmatprep.mubr.msk.f32.mxu1 %vm629_vm3, %v13084_v17 }
 0x541   : > { %8774 = vmatmul.mubr.msk.f32.gmra.mrb[2].mxu1 %vm629_vm3, %v13121_v1 }
 0x542   : > { %8776 = vmatprep.mubr.msk.f32.mxu1 %vm629_vm3, %v13122_v6 }
 0x545   : > { %8777 = vmatmul.mubr.msk.f32.gmra.mrb[4].mxu1 %vm629_vm3, %v13123_v48 }
 0x546   : > { %8779 = vmatprep.mubr.msk.f32.mxu1 %vm629_vm3, %v13124_v44 }
 0x549   : > { %8780 = vmatmul.mubr.msk.f32.gmra.mrb[6].mxu1 %vm629_vm3, %v13125_v11 }
 0x54a   : > { %8782 = vmatprep.mubr.msk.f32.mxu1 %vm629_vm3, %v13126_v55 }
 0x54d   : > { %8783 = vmatmul.mubr.msk.f32.gmra.mrb[8].mxu1 %vm629_vm3, %v13127_v36 }
 0x54e   : > { %8785 = vmatprep.mubr.msk.f32.mxu1 %vm629_vm3, %v13128_v52 }
 0x551   : > { %8786 = vmatmul.mubr.msk.f32.gmra.mrb[10].mxu1 %vm629_vm3, %v13129_v25 }
 0x552   : > { %8788 = vmatprep.mubr.msk.f32.mxu1 %vm629_vm3, %v13094_v49 }
 0x555   : > { %8789 = vmatmul.mubr.msk.f32.gmra.mrb[12].mxu1 %vm629_vm3, %v13095_v23 }
 0x556   : > { %8791 = vmatprep.mubr.msk.f32.mxu1 %vm629_vm3, %v13130_v33 }
 0x559   : > { %8792 = vmatmul.mubr.msk.f32.gmra.mrb[14].mxu1 %vm629_vm3, %v13131_v39 }
 0x55a   : > { %8794 = vmatprep.mubr.msk.f32.mxu1 %vm629_vm3, %v13132_v14 }
 0x55d   : > { %8795 = vmatmul.mubr.msk.f32.gmra.mrb[16].mxu1 %vm629_vm3, %v13099_v12 }
 0x55e   : > { %8797 = vmatprep.mubr.msk.f32.mxu1 %vm629_vm3, %v13133_v43 }
 0x561   : > { %8798 = vmatmul.mubr.msk.f32.gmra.mrb[18].mxu1 %vm629_vm3, %v13134_v30 }
 0x562   : > { %8800 = vmatprep.mubr.msk.f32.mxu1 %vm629_vm3, %v13135_v27 }
 0x565   : > { %8801 = vmatmul.mubr.msk.f32.gmra.mrb[20].mxu1 %vm629_vm3, %v13136_v20 }
 0x566   : > { %8803 = vmatprep.mubr.msk.f32.mxu1 %vm629_vm3, %v13137_v0 }
 0x569   : > { %8804 = vmatmul.mubr.msk.f32.gmra.mrb[22].mxu1 %vm629_vm3, %v13138_v8 }
 0x56a   : > { %8806 = vmatprep.mubr.msk.f32.mxu1 %vm629_vm3, %v13139_v15 }
 0x56d   : > { %8807 = vmatmul.mubr.msk.f32.gmra.mrb[24].mxu1 %vm629_vm3, %v11504_v63 }
 0x56e   : > { %8809 = vmatprep.mubr.msk.f32.mxu1 %vm629_vm3, %v13105_v45 }
 0x571   : > { %8810 = vmatmul.mubr.msk.f32.gmra.mrb[26].mxu1 %vm629_vm3, %v13106_v9 }
 0x572   : > { %8812 = vmatprep.mubr.msk.f32.mxu1 %vm629_vm3, %v11944_v5  ;;  %v13150_v5 = vld [vmem:[#allocation48_spill] sm:$0xff] }
 0x575   : > { %8813 = vmatmul.mubr.msk.f32.gmra.mrb[28].mxu1 %vm629_vm3, %v11949_v2  ;;  %v13151_v2 = vld [vmem:[#allocation49_spill] sm:$0xff] }
 0x576   : > { %8815 = vmatprep.mubr.msk.f32.mxu1 %vm629_vm3, %v13105_v45  ;;  %v13147_v45 = vld [vmem:[#allocation44_spill] sm:$0xff] }
 0x579   : > { %8816 = vmatmul.mubr.msk.f32.gmra.mrb[30].mxu1 %vm629_vm3, %v13106_v9 }
 0x57a   : > { %8820 = vmatprep.mubr.msk.f32.mxu1 %vm629_vm3, %v13108_v28 }
 0x57d   : > { %8821 = vmatmul.mubr.msk.f32.vlgmr.msra.gmra.mrb[0].mxu1 %vm629_vm3, %v13109_v10 }
 0x57e   : > { %8823 = vmatprep.mubr.msk.f32.mxu1 %vm629_vm3, %v13140_v22 }
 0x581   : > { %8824 = vmatmul.mubr.msk.f32.gmra.mrb[2].mxu1 %vm629_vm3, %v11638_v7 }
 0x582   : > { %8826 = vmatprep.mubr.msk.f32.mxu1 %vm629_vm3, %v13141_v47 }
 0x585   : > { %8827 = vmatmul.mubr.msk.f32.gmra.mrb[4].mxu1 %vm629_vm3, %v11651_v19 }
 0x586   : > { %8829 = vmatprep.mubr.msk.f32.mxu1 %vm629_vm3, %v13142_v24 }
 0x589   : > { %8830 = vmatmul.mubr.msk.f32.gmra.mrb[6].mxu1 %vm629_vm3, %v11664_v32 }
 0x58a   : > { %8832 = vmatprep.mubr.msk.f32.mxu1 %vm629_vm3, %v13143_v59 }
 0x58d   : > { %8833 = vmatmul.mubr.msk.f32.gmra.mrb[8].mxu1 %vm629_vm3, %v11677_v51 }
 0x58e   : > { %8835 = vmatprep.mubr.msk.f32.mxu1 %vm629_vm3, %v13144_v46 }
 0x591   : > { %8836 = vmatmul.mubr.msk.f32.gmra.mrb[10].mxu1 %vm629_vm3, %v11690_v21 }
 0x592   : > { %8838 = vmatprep.mubr.msk.f32.mxu1 %vm629_vm3, %v13145_v40 }
 0x595   : > { %8839 = vmatmul.mubr.msk.f32.gmra.mrb[12].mxu1 %vm629_vm3, %v11703_v18 }
 0x596   : > { %8841 = vmatprep.mubr.msk.f32.mxu1 %vm629_vm3, %v13146_v50 }
 0x599   : > { %8842 = vmatmul.mubr.msk.f32.gmra.mrb[14].mxu1 %vm629_vm3, %v11716_v29 }
 0x59a   : > { %8844 = vmatprep.mubr.msk.f32.mxu1 %vm629_vm3, %v13117_v4 }
 0x59d   : > { %8845 = vmatmul.mubr.msk.f32.gmra.mrb[16].mxu1 %vm629_vm3, %v13147_v45 }
 0x59e   : > { %8847 = vmatprep.mubr.msk.f32.mxu1 %vm629_vm3, %v13148_v53 }
 0x5a1   : > { %8848 = vmatmul.mubr.msk.f32.gmra.mrb[18].mxu1 %vm629_vm3, %v11742_v13 }
 0x5a2   : > { %8850 = vmatprep.mubr.msk.f32.mxu1 %vm629_vm3, %v13119_v3 }
 0x5a5   : > { %8851 = vmatmul.mubr.msk.f32.gmra.mrb[20].mxu1 %vm629_vm3, %v13149_v57 }
 0x5a6   : > { %8853 = vmatprep.mubr.msk.f32.mxu1 %vm629_vm3, %v13150_v5 }
 0x5a9   : > { %8854 = vmatmul.mubr.msk.f32.gmra.mrb[22].mxu1 %vm629_vm3, %v11768_v31 }
 0x5aa   : > { %8856 = vmatprep.mubr.msk.f32.mxu1 %vm629_vm3, %v13151_v2 }
 0x5ad   : > { %8857 = vmatmul.mubr.msk.f32.gmra.mrb[24].mxu1 %vm629_vm3, %v11781_v60 }
 0x5ae   : > { %8859 = vmatprep.mubr.msk.f32.mxu1 %vm629_vm3, %v11787_v58 }
 0x5b1   : > { %8860 = vmatmul.mubr.msk.f32.gmra.mrb[26].mxu1 %vm629_vm3, %v11792_v61 }
 0x5b2   : > { %8862 = vmatprep.mubr.msk.f32.mxu1 %vm629_vm3, %v12021_v62 }
 0x5b5   : > { %8863 = vmatmul.mubr.msk.f32.gmra.mrb[28].mxu1 %vm629_vm3, %v12026_v54 }
 0x5b6   : > { %8865 = vmatprep.mubr.msk.f32.mxu1 %vm629_vm3, %v11787_v58 }
 0x5b9   : > { %8866 = vmatmul.mubr.msk.f32.gmra.mrb[30].mxu1 %vm629_vm3, %v11792_v61 }
 0x650   : > { %v12228_v42 = vpop.f32.mrb[0].mxu1 }
 0x651   : > { %v6376_v63 = vsel %vm629_vm3, %v12228_v42, 0.0  ;;  %v6445_v7 = vmul.f32 %v12228_v42, %v12228_v42  ;;  %v12234_v19 = vpop.f32.mrb[1].mxu1 }
 0x652   : > { %v6375_v32 = vsel %vm629_vm3, %v12234_v19, 0.0  ;;  %v6444_v51 = vmul.f32 %v12234_v19, %v12234_v19 }
 0x653   : > { %v6477_v21 = vsel %vm629_vm3, %v6445_v7, 0.0  ;;  %v6377_v18 = vadd.f32 %v6376_v63, %v6375_v32 }
 0x654   : > { %v6476_v29 = vsel %vm629_vm3, %v6444_v51, 0.0  ;;  %v12242_v26 = vpop.f32.mrb[2].mxu1 }
 0x655   : > { %v6478_v13 = vadd.f32 %v6477_v21, %v6476_v29  ;;  %v12244_v37 = vpop.f32.mrb[3].mxu1  ;;  %v6447_v31 = vmul.f32 %v12242_v26, %v12242_v26  ;;  %v6380_v61 = vsel %vm629_vm3, %v12242_v26, 0.0 }
 0x656   : > { %v6378_v60 = vsel %vm629_vm3, %v12244_v37, 0.0  ;;  %v6446_v54 = vmul.f32 %v12244_v37, %v12244_v37 }
 0x657   : > { %v6379_v58 = vadd.f32 %v6378_v60, %v6377_v18  ;;  %v6481_v23 = vsel %vm629_vm3, %v6447_v31, 0.0 }
 0x658   : > { %v6479_v41 = vsel %vm629_vm3, %v6446_v54, 0.0  ;;  %v12255_v56 = vpop.f32.mrb[4].mxu1 }
 0x659   : > { %v6480_v16 = vadd.f32 %v6479_v41, %v6478_v13  ;;  %v12257_v17 = vpop.f32.mrb[5].mxu1  ;;  %v6381_v49 = vadd.f32 %v6380_v61, %v6379_v58  ;;  %v6449_v12 = vmul.f32 %v12255_v56, %v12255_v56  ;;  %v6384_v34 = vsel %vm629_vm3, %v12255_v56, 0.0 }
 0x65a   : > { %v6382_v9 = vsel %vm629_vm3, %v12257_v17, 0.0  ;;  %v6448_v35 = vmul.f32 %v12257_v17, %v12257_v17 }
 0x65b   : > { %v6383_v28 = vadd.f32 %v6382_v9, %v6381_v49  ;;  %v6482_v10 = vadd.f32 %v6481_v23, %v6480_v16  ;;  %v6485_v6 = vsel %vm629_vm3, %v6449_v12, 0.0 }
 0x65c   : > { %v6483_v3 = vsel %vm629_vm3, %v6448_v35, 0.0  ;;  %v12269_v62 = vpop.f32.mrb[6].mxu1 }
 0x65d   : > { %v6484_v4 = vadd.f32 %v6483_v3, %v6482_v10  ;;  %v12271_v38 = vpop.f32.mrb[7].mxu1  ;;  %v6385_v1 = vadd.f32 %v6384_v34, %v6383_v28  ;;  %v6451_v48 = vmul.f32 %v12269_v62, %v12269_v62  ;;  %v6388_v52 = vsel %vm629_vm3, %v12269_v62, 0.0 }
 0x65e   : > { %v6386_v44 = vsel %vm629_vm3, %v12271_v38, 0.0  ;;  %v6450_v11 = vmul.f32 %v12271_v38, %v12271_v38 }
 0x65f   : > { %v6387_v55 = vadd.f32 %v6386_v44, %v6385_v1  ;;  %v6486_v36 = vadd.f32 %v6485_v6, %v6484_v4  ;;  %v6489_v30 = vsel %vm629_vm3, %v6451_v48, 0.0 }
 0x660   : > { %v6487_v25 = vsel %vm629_vm3, %v6450_v11, 0.0  ;;  %v12283_v33 = vpop.f32.mrb[8].mxu1 }
 0x661   : > { %v6488_v39 = vadd.f32 %v6487_v25, %v6486_v36  ;;  %v12285_v14 = vpop.f32.mrb[9].mxu1  ;;  %v6389_v43 = vadd.f32 %v6388_v52, %v6387_v55  ;;  %v6453_v27 = vmul.f32 %v12283_v33, %v12283_v33  ;;  %v6392_v22 = vsel %vm629_vm3, %v12283_v33, 0.0 }
 0x662   : > { %v6390_v20 = vsel %vm629_vm3, %v12285_v14, 0.0  ;;  %v6452_v0 = vmul.f32 %v12285_v14, %v12285_v14 }
 0x663   : > { %v6391_v8 = vadd.f32 %v6390_v20, %v6389_v43  ;;  %v6490_v15 = vadd.f32 %v6489_v30, %v6488_v39  ;;  %v6493_v50 = vsel %vm629_vm3, %v6453_v27, 0.0 }
 0x664   : > { %v6491_v47 = vsel %vm629_vm3, %v6452_v0, 0.0  ;;  %v12297_v24 = vpop.f32.mrb[10].mxu1 }
 0x665   : > { %v6492_v59 = vadd.f32 %v6491_v47, %v6490_v15  ;;  %v12299_v46 = vpop.f32.mrb[11].mxu1  ;;  %v6393_v40 = vadd.f32 %v6392_v22, %v6391_v8  ;;  %v6455_v45 = vmul.f32 %v12297_v24, %v12297_v24  ;;  %v6396_v63 = vsel %vm629_vm3, %v12297_v24, 0.0 }
 0x666   : > { %v6394_v53 = vsel %vm629_vm3, %v12299_v46, 0.0  ;;  %v6454_v57 = vmul.f32 %v12299_v46, %v12299_v46 }
 0x667   : > { %v6395_v5 = vadd.f32 %v6394_v53, %v6393_v40  ;;  %v6494_v2 = vadd.f32 %v6493_v50, %v6492_v59  ;;  %v6497_v29 = vsel %vm629_vm3, %v6455_v45, 0.0 }
 0x668   : > { %v6495_v7 = vsel %vm629_vm3, %v6454_v57, 0.0  ;;  %v12311_v32 = vpop.f32.mrb[12].mxu1 }
 0x669   : > { %v6496_v51 = vadd.f32 %v6495_v7, %v6494_v2  ;;  %v12313_v21 = vpop.f32.mrb[13].mxu1  ;;  %v6397_v18 = vadd.f32 %v6396_v63, %v6395_v5  ;;  %v6457_v13 = vmul.f32 %v12311_v32, %v12311_v32  ;;  %v6400_v61 = vsel %vm629_vm3, %v12311_v32, 0.0 }
 0x66a   : > { %v6398_v31 = vsel %vm629_vm3, %v12313_v21, 0.0  ;;  %v6456_v60 = vmul.f32 %v12313_v21, %v12313_v21 }
 0x66b   : > { %v6399_v54 = vadd.f32 %v6398_v31, %v6397_v18  ;;  %v6498_v58 = vadd.f32 %v6497_v29, %v6496_v51  ;;  %v6501_v9 = vsel %vm629_vm3, %v6457_v13, 0.0 }
 0x66c   : > { %v6499_v41 = vsel %vm629_vm3, %v6456_v60, 0.0  ;;  %v12325_v16 = vpop.f32.mrb[14].mxu1 }
 0x66d   : > { %v6500_v49 = vadd.f32 %v6499_v41, %v6498_v58  ;;  %v12327_v23 = vpop.f32.mrb[15].mxu1  ;;  %v6401_v12 = vadd.f32 %v6400_v61, %v6399_v54  ;;  %v6459_v35 = vmul.f32 %v12325_v16, %v12325_v16  ;;  %v6404_v4 = vsel %vm629_vm3, %v12325_v16, 0.0 }
 0x66e   : > { %v6402_v28 = vsel %vm629_vm3, %v12327_v23, 0.0  ;;  %v6458_v10 = vmul.f32 %v12327_v23, %v12327_v23 }
 0x66f   : > { %v6403_v34 = vadd.f32 %v6402_v28, %v6401_v12  ;;  %v6502_v3 = vadd.f32 %v6501_v9, %v6500_v49  ;;  %v6505_v55 = vsel %vm629_vm3, %v6459_v35, 0.0 }
 0x670   : > { %v6503_v1 = vsel %vm629_vm3, %v6458_v10, 0.0  ;;  %v12339_v6 = vpop.f32.mrb[16].mxu1 }
 0x671   : > { %v6504_v48 = vadd.f32 %v6503_v1, %v6502_v3  ;;  %v12341_v44 = vpop.f32.mrb[17].mxu1  ;;  %v6405_v11 = vadd.f32 %v6404_v4, %v6403_v34  ;;  %v6461_v36 = vmul.f32 %v12339_v6, %v12339_v6  ;;  %v6408_v30 = vsel %vm629_vm3, %v12339_v6, 0.0 }
 0x672   : > { %v6406_v52 = vsel %vm629_vm3, %v12341_v44, 0.0  ;;  %v6460_v25 = vmul.f32 %v12341_v44, %v12341_v44 }
 0x673   : > { %v6407_v39 = vadd.f32 %v6406_v52, %v6405_v11  ;;  %v6506_v43 = vadd.f32 %v6505_v55, %v6504_v48  ;;  %v6509_v22 = vsel %vm629_vm3, %v6461_v36, 0.0 }
 0x674   : > { %v6507_v27 = vsel %vm629_vm3, %v6460_v25, 0.0  ;;  %v12353_v20 = vpop.f32.mrb[18].mxu1 }
 0x675   : > { %v6508_v0 = vadd.f32 %v6507_v27, %v6506_v43  ;;  %v12355_v8 = vpop.f32.mrb[19].mxu1  ;;  %v6409_v15 = vadd.f32 %v6408_v30, %v6407_v39  ;;  %v6463_v47 = vmul.f32 %v12353_v20, %v12353_v20  ;;  %v6412_v53 = vsel %vm629_vm3, %v12353_v20, 0.0 }
 0x676   : > { %v6410_v59 = vsel %vm629_vm3, %v12355_v8, 0.0  ;;  %v6462_v40 = vmul.f32 %v12355_v8, %v12355_v8 }
 0x677   : > { %v6411_v50 = vadd.f32 %v6410_v59, %v6409_v15  ;;  %v6510_v45 = vadd.f32 %v6509_v22, %v6508_v0  ;;  %v6513_v51 = vsel %vm629_vm3, %v6463_v47, 0.0 }
 0x678   : > { %v6511_v57 = vsel %vm629_vm3, %v6462_v40, 0.0  ;;  %v12367_v5 = vpop.f32.mrb[20].mxu1 }
 0x679   : > { %v6512_v2 = vadd.f32 %v6511_v57, %v6510_v45  ;;  %v12369_v63 = vpop.f32.mrb[21].mxu1  ;;  %v6413_v7 = vadd.f32 %v6412_v53, %v6411_v50  ;;  %v6465_v18 = vmul.f32 %v12367_v5, %v12367_v5  ;;  %v6416_v54 = vsel %vm629_vm3, %v12367_v5, 0.0 }
 0x67a   : > { %v6414_v29 = vsel %vm629_vm3, %v12369_v63, 0.0  ;;  %v6464_v13 = vmul.f32 %v12369_v63, %v12369_v63 }
 0x67b   : > { %v6415_v31 = vadd.f32 %v6414_v29, %v6413_v7  ;;  %v6514_v60 = vadd.f32 %v6513_v51, %v6512_v2  ;;  %v6517_v9 = vsel %vm629_vm3, %v6465_v18, 0.0 }
 0x67c   : > { %v6515_v58 = vsel %vm629_vm3, %v6464_v13, 0.0  ;;  %v12381_v61 = vpop.f32.mrb[22].mxu1 }
 0x67d   : > { %v6516_v41 = vadd.f32 %v6515_v58, %v6514_v60  ;;  %v12383_v49 = vpop.f32.mrb[23].mxu1  ;;  %v6417_v12 = vadd.f32 %v6416_v54, %v6415_v31  ;;  %v6467_v35 = vmul.f32 %v12381_v61, %v12381_v61  ;;  %v6420_v4 = vsel %vm629_vm3, %v12381_v61, 0.0 }
 0x67e   : > { %v6418_v28 = vsel %vm629_vm3, %v12383_v49, 0.0  ;;  %v6466_v10 = vmul.f32 %v12383_v49, %v12383_v49 }
 0x67f   : > { %v6419_v34 = vadd.f32 %v6418_v28, %v6417_v12  ;;  %v6518_v3 = vadd.f32 %v6517_v9, %v6516_v41  ;;  %v6521_v52 = vsel %vm629_vm3, %v6467_v35, 0.0 }
 0x680   : > { %v6519_v1 = vsel %vm629_vm3, %v6466_v10, 0.0  ;;  %v12395_v48 = vpop.f32.mrb[24].mxu1 }
 0x681   : > { %v6520_v11 = vadd.f32 %v6519_v1, %v6518_v3  ;;  %v12397_v55 = vpop.f32.mrb[25].mxu1  ;;  %v6421_v36 = vadd.f32 %v6420_v4, %v6419_v34  ;;  %v6469_v25 = vmul.f32 %v12395_v48, %v12395_v48  ;;  %v6424_v0 = vsel %vm629_vm3, %v12395_v48, 0.0 }
 0x682   : > { %v6422_v39 = vsel %vm629_vm3, %v12397_v55, 0.0  ;;  %v6468_v43 = vmul.f32 %v12397_v55, %v12397_v55 }
 0x683   : > { %v6423_v30 = vadd.f32 %v6422_v39, %v6421_v36  ;;  %v6522_v27 = vadd.f32 %v6521_v52, %v6520_v11  ;;  %v6525_v50 = vsel %vm629_vm3, %v6469_v25, 0.0 }
 0x684   : > { %v6523_v15 = vsel %vm629_vm3, %v6468_v43, 0.0  ;;  %v12409_v22 = vpop.f32.mrb[26].mxu1 }
 0x685   : > { %v6524_v47 = vadd.f32 %v6523_v15, %v6522_v27  ;;  %v12411_v59 = vpop.f32.mrb[27].mxu1  ;;  %v6425_v40 = vadd.f32 %v6424_v0, %v6423_v30  ;;  %v6471_v45 = vmul.f32 %v12409_v22, %v12409_v22  ;;  %v6428_v51 = vsel %vm629_vm3, %v12409_v22, 0.0 }
 0x686   : > { %v6426_v53 = vsel %vm629_vm3, %v12411_v59, 0.0  ;;  %v6470_v57 = vmul.f32 %v12411_v59, %v12411_v59 }
 0x687   : > { %v6427_v2 = vadd.f32 %v6426_v53, %v6425_v40  ;;  %v6526_v7 = vadd.f32 %v6525_v50, %v6524_v47  ;;  %v6529_v54 = vsel %vm629_vm3, %v6471_v45, 0.0 }
 0x688   : > { %v6527_v18 = vsel %vm629_vm3, %v6470_v57, 0.0  ;;  %v12423_v29 = vpop.f32.mrb[28].mxu1 }
 0x689   : > { %v6528_v13 = vadd.f32 %v6527_v18, %v6526_v7  ;;  %v12425_v31 = vpop.f32.mrb[29].mxu1  ;;  %v6429_v60 = vadd.f32 %v6428_v51, %v6427_v2  ;;  %v6473_v58 = vmul.f32 %v12423_v29, %v12423_v29  ;;  %v6432_v28 = vsel %vm629_vm3, %v12423_v29, 0.0 }
 0x68a   : > { %v6430_v41 = vsel %vm629_vm3, %v12425_v31, 0.0  ;;  %v6472_v12 = vmul.f32 %v12425_v31, %v12425_v31 }
 0x68b   : > { %v6431_v9 = vadd.f32 %v6430_v41, %v6429_v60  ;;  %v6530_v35 = vadd.f32 %v6529_v54, %v6528_v13  ;;  %v6533_v11 = vsel %vm629_vm3, %v6473_v58, 0.0 }
 0x68c   : > { %v6531_v10 = vsel %vm629_vm3, %v6472_v12, 0.0  ;;  %v12437_v34 = vpop.f32.mrb[30].mxu1 }
 0x68d   : > { %v6532_v3 = vadd.f32 %v6531_v10, %v6530_v35  ;;  %v12439_v4 = vpop.f32.mrb[31].mxu1  ;;  %v6433_v1 = vadd.f32 %v6432_v28, %v6431_v9  ;;  %v6475_v36 = vmul.f32 %v12437_v34, %v12437_v34  ;;  %v6436_v30 = vsel %vm629_vm3, %v12437_v34, 0.0  ;;  %v6549_v10 = vld [vmem:[%s12639_s5] sm:$0x1] }
 0x68e   : > { %v6434_v52 = vsel %vm629_vm3, %v12439_v4, 0.0  ;;  %v6474_v25 = vmul.f32 %v12439_v4, %v12439_v4 }
 0x68f   : > { %v6435_v39 = vadd.f32 %v6434_v52, %v6433_v1  ;;  %v6534_v43 = vadd.f32 %v6533_v11, %v6532_v3  ;;  %v6537_v47 = vsel %vm629_vm3, %v6475_v36, 0.0  ;;  %v6553_v11 = vld [vmem:[%s12640_s6] sm:$0x1]  ;;  %v13152_v52 = vld [vmem:[#allocation15_spill] sm:$0xff] }
 0x690   : > { %v6535_v27 = vsel %vm629_vm3, %v6474_v25, 0.0 }
 0x691   : > { %v6437_v0 = vadd.f32 %v6436_v30, %v6435_v39  ;;  %v6536_v15 = vadd.f32 %v6535_v27, %v6534_v43 }
 0x693   : > { %v6438_v40 = vrot.slane %v6437_v0, 4  ;;  %v6538_v50 = vadd.f32 %v6537_v47, %v6536_v15 }
 0x695   : > { %v6439_v45 = vadd.f32 %v6438_v40, %v6437_v0  ;;  %v6539_v53 = vrot.slane %v6538_v50, 4 }
 0x697   : > { %v6440_v57 = vrot.slane %v6439_v45, 2  ;;  %v6540_v2 = vadd.f32 %v6539_v53, %v6538_v50 }
 0x699   : > { %v6441_v7 = vadd.f32 %v6440_v57, %v6439_v45  ;;  %v6541_v51 = vrot.slane %v6540_v2, 2 }
 0x69b   : > { %v6442_v18 = vrot.slane %v6441_v7, 1  ;;  %v6542_v13 = vadd.f32 %v6541_v51, %v6540_v2 }
 0x69d   : > { %v6443_v60 = vadd.f32 %v6442_v18, %v6441_v7  ;;  %v6543_v54 = vrot.slane %v6542_v13, 1 }
 0x69f   : > { %v6544_v58 = vadd.f32 %v6543_v54, %v6542_v13  ;;  %v6545_v41 = vmul.f32 0.00390625, %v6443_v60 }
 0x6a1   : > { %v6546_v12 = vmul.f32 0.00390625, %v6544_v58  ;;  %v6547_v9 = vmul.f32 %v6545_v41, %v6545_v41 }
 0x6a3   : > { %v6548_v35 = vsub.f32 %v6546_v12, %v6547_v9 }
 0x6a5   : > { %v6550_v28 = vadd.f32 1e-05, %v6548_v35 }
 0x6a7   : > { %9390 = vrsqrt.f32 %v6550_v28 }
 0x6b1   : > { %v9391_v3 = vpop.eup %9390 }
 0x6b2   : > { %v6552_v1 = vmul.f32 %v9391_v3, %v6549_v10 }
 0x6b4   : > { %v6554_v36 = vmul.f32 %v6552_v1, %v6545_v41  ;;  %v6560_v25 = vrot.slane %v6552_v1, %v13152_v52 }
 0x6b6   : > { %v6555_v39 = vsub.f32 %v6553_v11, %v6554_v36  ;;  %v6562_v43 = vmul.f32 %v6560_v25, %v12234_v19  ;;  %v6563_v30 = vmul.f32 %v12228_v42, %v6560_v25  ;;  %v6564_v27 = vmul.f32 %v6560_v25, %v12244_v37 }
 0x6b7   : > { %v6565_v0 = vmul.f32 %v12242_v26, %v6560_v25  ;;  %v6566_v15 = vmul.f32 %v6560_v25, %v12257_v17  ;;  %v6567_v47 = vmul.f32 %v12255_v56, %v6560_v25  ;;  %v6568_v40 = vmul.f32 %v6560_v25, %v12271_v38 }
 0x6b8   : > { %v6569_v50 = vmul.f32 %v12269_v62, %v6560_v25  ;;  %v6570_v45 = vmul.f32 %v6560_v25, %v12285_v14  ;;  %v6571_v53 = vmul.f32 %v12283_v33, %v6560_v25  ;;  %v6572_v19 = vmul.f32 %v6560_v25, %v12299_v46 }
 0x6b9   : > { %v6573_v42 = vmul.f32 %v12297_v24, %v6560_v25  ;;  %v6574_v37 = vmul.f32 %v6560_v25, %v12313_v21  ;;  %v6575_v26 = vmul.f32 %v12311_v32, %v6560_v25  ;;  %v6576_v17 = vmul.f32 %v6560_v25, %v12327_v23 }
 0x6ba   : > { %v6577_v56 = vmul.f32 %v12325_v16, %v6560_v25  ;;  %v6578_v38 = vmul.f32 %v6560_v25, %v12341_v44  ;;  %v6579_v62 = vmul.f32 %v12339_v6, %v6560_v25  ;;  %v6580_v14 = vmul.f32 %v6560_v25, %v12355_v8 }
 0x6bb   : > { %v6581_v33 = vmul.f32 %v12353_v20, %v6560_v25  ;;  %v6582_v46 = vmul.f32 %v6560_v25, %v12369_v63  ;;  %v6583_v24 = vmul.f32 %v12367_v5, %v6560_v25  ;;  %v6584_v21 = vmul.f32 %v6560_v25, %v12383_v49 }
 0x6bc   : > { %v6585_v32 = vmul.f32 %v12381_v61, %v6560_v25  ;;  %v6586_v23 = vmul.f32 %v6560_v25, %v12397_v55  ;;  %v6587_v16 = vmul.f32 %v12395_v48, %v6560_v25  ;;  %v6588_v44 = vmul.f32 %v6560_v25, %v12411_v59 }
 0x6bd   : > { %v6589_v6 = vmul.f32 %v12409_v22, %v6560_v25  ;;  %v6590_v8 = vmul.f32 %v6560_v25, %v12425_v31  ;;  %v6591_v20 = vmul.f32 %v12423_v29, %v6560_v25  ;;  %v6592_v63 = vmul.f32 %v6560_v25, %v12439_v4 }
 0x6be   : > { %v6593_v5 = vmul.f32 %v12437_v34, %v6560_v25  ;;  %v6598_v49 = vrot.slane %v6555_v39, %v13152_v52 }
 0x6c0   : > { %v6600_v57 = vadd.f32 %v6598_v49, %v6562_v43  ;;  %v6601_v61 = vadd.f32 %v6598_v49, %v6563_v30  ;;  %v6602_v2 = vadd.f32 %v6598_v49, %v6564_v27  ;;  %v6603_v55 = vadd.f32 %v6598_v49, %v6565_v0  ;;  %v9392_v30 = vld [vmem:[%s9497_s10] sm:$0xff]  ;;  %v9393_v0 = vld [vmem:[%s9497_s10 + $0x8] sm:$0xff] }
 0x6c1   : > { %v6604_v7 = vadd.f32 %v6598_v49, %v6566_v15  ;;  %v6605_v48 = vadd.f32 %v6598_v49, %v6567_v47  ;;  %v6606_v51 = vadd.f32 %v6598_v49, %v6568_v40  ;;  %v6607_v59 = vadd.f32 %v6598_v49, %v6569_v50  ;;  %v9394_v47 = vld [vmem:[%s9497_s10 + $0x10] sm:$0xff]  ;;  %v9395_v50 = vld [vmem:[%s9497_s10 + $0x18] sm:$0xff] }
 0x6c2   : > { %v6608_v18 = vadd.f32 %v6598_v49, %v6570_v45  ;;  %v6609_v22 = vadd.f32 %v6598_v49, %v6571_v53  ;;  %v6610_v13 = vadd.f32 %v6598_v49, %v6572_v19  ;;  %v6611_v31 = vadd.f32 %v6598_v49, %v6573_v42  ;;  %v9396_v53 = vld [vmem:[%s9497_s10 + $0x20] sm:$0xff]  ;;  %v9397_v42 = vld [vmem:[%s9497_s10 + $0x28] sm:$0xff] }
 0x6c3   : > { %v6612_v60 = vadd.f32 %v6598_v49, %v6574_v37  ;;  %v6613_v29 = vadd.f32 %v6598_v49, %v6575_v26  ;;  %v6614_v4 = vadd.f32 %v6598_v49, %v6576_v17  ;;  %v6615_v54 = vadd.f32 %v6598_v49, %v6577_v56  ;;  %v9398_v26 = vld [vmem:[%s9497_s10 + $0x30] sm:$0xff]  ;;  %v9399_v56 = vld [vmem:[%s9497_s10 + $0x38] sm:$0xff] }
 0x6c4   : > { %v6616_v34 = vadd.f32 %v6598_v49, %v6578_v38  ;;  %v6617_v58 = vadd.f32 %v6598_v49, %v6579_v62  ;;  %v6618_v41 = vadd.f32 %v6598_v49, %v6580_v14  ;;  %v6619_v12 = vadd.f32 %v6598_v49, %v6581_v33  ;;  %v9400_v62 = vld [vmem:[%s9497_s10 + $0x40] sm:$0xff]  ;;  %v9401_v33 = vld [vmem:[%s9497_s10 + $0x48] sm:$0xff] }
 0x6c5   : > { %v12492_v9 = vadd.f32 %v6598_v49, %v6582_v46  ;;  %v12494_v35 = vadd.f32 %v6598_v49, %v6583_v24  ;;  %v12496_v28 = vadd.f32 %v6598_v49, %v6584_v21  ;;  %v12498_v10 = vadd.f32 %v6598_v49, %v6585_v32  ;;  %v9402_v24 = vld [vmem:[%s9497_s10 + $0x50] sm:$0xff]  ;;  %v9403_v32 = vld [vmem:[%s9497_s10 + $0x58] sm:$0xff] }
 0x6c6   : > { %v12500_v3 = vadd.f32 %v6598_v49, %v6586_v23  ;;  %v12502_v1 = vadd.f32 %v6598_v49, %v6587_v16  ;;  %v12504_v11 = vadd.f32 %v6598_v49, %v6588_v44  ;;  %v12506_v36 = vadd.f32 %v6598_v49, %v6589_v6  ;;  %v9404_v16 = vld [vmem:[%s9497_s10 + $0x60] sm:$0xff]  ;;  %v9405_v6 = vld [vmem:[%s9497_s10 + $0x68] sm:$0xff] }
 0x6c7   : > { %v12515_v52 = vadd.f32 %v6598_v49, %v6590_v8  ;;  %v12517_v25 = vadd.f32 %v6598_v49, %v6591_v20  ;;  %v12519_v39 = vadd.f32 %v6598_v49, %v6592_v63  ;;  %v12521_v43 = vadd.f32 %v6598_v49, %v6593_v5  ;;  %v9406_v20 = vld [vmem:[%s9497_s10 + $0x70] sm:$0xff]  ;;  %v9407_v5 = vld [vmem:[%s9497_s10 + $0x78] sm:$0xff] }
 0x6c8   : > { %v6632_v27 = vadd.f32 %v9392_v30, %v6600_v57  ;;  %v6633_v15 = vadd.f32 %v9393_v0, %v6601_v61  ;;  %v6634_v40 = vadd.f32 %v9394_v47, %v6602_v2  ;;  %v6635_v45 = vadd.f32 %v9395_v50, %v6603_v55  ;;  %v9408_v57 = vld [vmem:[%s9497_s10 + $0x80] sm:$0xff]  ;;  %v9409_v2 = vld [vmem:[%s9497_s10 + $0x88] sm:$0xff]  ;;  %v9422_v30 = vld [vmem:[%s9497_s10 + $0xf0] sm:$0xff] }
 0x6c9   : > { %v6636_v19 = vadd.f32 %v9396_v53, %v6604_v7  ;;  %v6637_v37 = vadd.f32 %v9397_v42, %v6605_v48  ;;  %v6638_v17 = vadd.f32 %v9398_v26, %v6606_v51  ;;  %v6639_v38 = vadd.f32 %v9399_v56, %v6607_v59  ;;  %v9410_v7 = vld [vmem:[%s9497_s10 + $0x90] sm:$0xff]  ;;  %v9411_v51 = vld [vmem:[%s9497_s10 + $0x98] sm:$0xff] }
 0x6ca   : > { %v6640_v14 = vadd.f32 %v9400_v62, %v6608_v18  ;;  %v6641_v46 = vadd.f32 %v9401_v33, %v6609_v22  ;;  %v6642_v21 = vadd.f32 %v9402_v24, %v6610_v13  ;;  %v6643_v23 = vadd.f32 %v9403_v32, %v6611_v31  ;;  %6664 = vst.msk [vmem:[%s12513_s15] sm:$0xff] %vm629_vm3, %v6632_v27  ;;  %v9412_v18 = vld [vmem:[%s9497_s10 + $0xa0] sm:$0xff]  ;;  %v9413_v13 = vld [vmem:[%s9497_s10 + $0xa8] sm:$0xff]  ;;  %v9423_v0 = vld [vmem:[%s9497_s10 + $0xf8] sm:$0xff] }
 0x6cb   : > { %6665 = vst.msk [vmem:[%s12513_s15 + $0x8] sm:$0xff] %vm629_vm3, %v6633_v15  ;;  %6666 = vst.msk [vmem:[%s12513_s15 + $0x10] sm:$0xff] %vm629_vm3, %v6634_v40  ;;  %v6644_v44 = vadd.f32 %v9404_v16, %v6612_v60  ;;  %v6645_v8 = vadd.f32 %v9405_v6, %v6613_v29  ;;  %v6646_v63 = vadd.f32 %v9406_v20, %v6614_v4  ;;  %v9414_v60 = vld [vmem:[%s9497_s10 + $0xb0] sm:$0xff]  ;;  %v9415_v4 = vld [vmem:[%s9497_s10 + $0xb8] sm:$0xff] }
 0x6cc   : > { %6667 = vst.msk [vmem:[%s12513_s15 + $0x18] sm:$0xff] %vm629_vm3, %v6635_v45  ;;  %v6647_v49 = vadd.f32 %v9407_v5, %v6615_v54  ;;  %6668 = vst.msk [vmem:[%s12513_s15 + $0x20] sm:$0xff] %vm629_vm3, %v6636_v19  ;;  %v6648_v61 = vadd.f32 %v9408_v57, %v6616_v34  ;;  %v6649_v55 = vadd.f32 %v9409_v2, %v6617_v58  ;;  %v9416_v34 = vld [vmem:[%s9497_s10 + $0xc0] sm:$0xff] }
 0x6cd   : > { %6669 = vst.msk [vmem:[%s12513_s15 + $0x28] sm:$0xff] %vm629_vm3, %v6637_v37  ;;  %6670 = vst.msk [vmem:[%s12513_s15 + $0x30] sm:$0xff] %vm629_vm3, %v6638_v17  ;;  %v6650_v48 = vadd.f32 %v9410_v7, %v6618_v41  ;;  %v6651_v59 = vadd.f32 %v9411_v51, %v6619_v12  ;;  %v6652_v22 = vadd.f32 %v9412_v18, %v12492_v9  ;;  %v9417_v41 = vld [vmem:[%s9497_s10 + $0xc8] sm:$0xff]  ;;  %v9418_v9 = vld [vmem:[%s9497_s10 + $0xd0] sm:$0xff] }
 0x6ce   : > { %6671 = vst.msk [vmem:[%s12513_s15 + $0x38] sm:$0xff] %vm629_vm3, %v6639_v38  ;;  %6672 = vst.msk [vmem:[%s12513_s15 + $0x40] sm:$0xff] %vm629_vm3, %v6640_v14  ;;  %v6653_v31 = vadd.f32 %v9413_v13, %v12494_v35  ;;  %v6654_v29 = vadd.f32 %v9414_v60, %v12496_v28  ;;  %v6655_v54 = vadd.f32 %v9415_v4, %v12498_v10  ;;  %v9419_v28 = vld [vmem:[%s9497_s10 + $0xd8] sm:$0xff] }
 0x6cf   : > { %6673 = vst.msk [vmem:[%s12513_s15 + $0x48] sm:$0xff] %vm629_vm3, %v6641_v46  ;;  %6674 = vst.msk [vmem:[%s12513_s15 + $0x50] sm:$0xff] %vm629_vm3, %v6642_v21  ;;  %v6656_v58 = vadd.f32 %v9416_v34, %v12500_v3  ;;  %v6657_v12 = vadd.f32 %v9417_v41, %v12502_v1  ;;  %v6658_v35 = vadd.f32 %v9418_v9, %v12504_v11  ;;  %v9420_v3 = vld [vmem:[%s9497_s10 + $0xe0] sm:$0xff]  ;;  %v9421_v11 = vld [vmem:[%s9497_s10 + $0xe8] sm:$0xff] }
 0x6d0   : > { %6675 = vst.msk [vmem:[%s12513_s15 + $0x58] sm:$0xff] %vm629_vm3, %v6643_v23  ;;  %6676 = vst.msk [vmem:[%s12513_s15 + $0x60] sm:$0xff] %vm629_vm3, %v6644_v44  ;;  %v6659_v10 = vadd.f32 %v9419_v28, %v12506_v36  ;;  %v6660_v1 = vadd.f32 %v9420_v3, %v12515_v52  ;;  %v6661_v36 = vadd.f32 %v9421_v11, %v12517_v25 }
 0x6d1   : > { %6677 = vst.msk [vmem:[%s12513_s15 + $0x68] sm:$0xff] %vm629_vm3, %v6645_v8  ;;  %6678 = vst.msk [vmem:[%s12513_s15 + $0x70] sm:$0xff] %vm629_vm3, %v6646_v63  ;;  %v6662_v27 = vadd.f32 %v9422_v30, %v12519_v39  ;;  %v6663_v15 = vadd.f32 %v9423_v0, %v12521_v43 }
 0x6d2   : > { %6679 = vst.msk [vmem:[%s12513_s15 + $0x78] sm:$0xff] %vm629_vm3, %v6647_v49  ;;  %6680 = vst.msk [vmem:[%s12513_s15 + $0x80] sm:$0xff] %vm629_vm3, %v6648_v61 }
 0x6d3   : > { %6681 = vst.msk [vmem:[%s12513_s15 + $0x88] sm:$0xff] %vm629_vm3, %v6649_v55  ;;  %6682 = vst.msk [vmem:[%s12513_s15 + $0x90] sm:$0xff] %vm629_vm3, %v6650_v48 }
 0x6d4   : > { %6683 = vst.msk [vmem:[%s12513_s15 + $0x98] sm:$0xff] %vm629_vm3, %v6651_v59  ;;  %6684 = vst.msk [vmem:[%s12513_s15 + $0xa0] sm:$0xff] %vm629_vm3, %v6652_v22 }
 0x6d5   : > { %6685 = vst.msk [vmem:[%s12513_s15 + $0xa8] sm:$0xff] %vm629_vm3, %v6653_v31  ;;  %6686 = vst.msk [vmem:[%s12513_s15 + $0xb0] sm:$0xff] %vm629_vm3, %v6654_v29 }
 0x6d6   : > { %6687 = vst.msk [vmem:[%s12513_s15 + $0xb8] sm:$0xff] %vm629_vm3, %v6655_v54  ;;  %6688 = vst.msk [vmem:[%s12513_s15 + $0xc0] sm:$0xff] %vm629_vm3, %v6656_v58 }
 0x6d7   : > { %6689 = vst.msk [vmem:[%s12513_s15 + $0xc8] sm:$0xff] %vm629_vm3, %v6657_v12  ;;  %6690 = vst.msk [vmem:[%s12513_s15 + $0xd0] sm:$0xff] %vm629_vm3, %v6658_v35 }
 0x6d8   : > { %6691 = vst.msk [vmem:[%s12513_s15 + $0xd8] sm:$0xff] %vm629_vm3, %v6659_v10  ;;  %6692 = vst.msk [vmem:[%s12513_s15 + $0xe0] sm:$0xff] %vm629_vm3, %v6660_v1 }
 0x6d9   : > { %6693 = vst.msk [vmem:[%s12513_s15 + $0xe8] sm:$0xff] %vm629_vm3, %v6661_v36  ;;  %6694 = vst.msk [vmem:[%s12513_s15 + $0xf0] sm:$0xff] %vm629_vm3, %v6662_v27 }
 0x6da   : > { %6695 = vst.msk [vmem:[%s12513_s15 + $0xf8] sm:$0xff] %vm629_vm3, %v6663_v15 }
 0x6db PF: > { %s17_s24 = sadd.s32 1, %s9430_s24  }
 0x6dc   : > { %p14_p4 = scmp.ge.s32.totalorder %s17_s24, 4  }
 0x6de   :  { %16 = sbr.rel (!%p14_p4) target bundleno = 1 (0x1), region = 94 }

</bundles_post_ra>
